<compile_context>
chip_gen: v7x
topology: tpu7x:2x2x1
jax: 0.10.0
libtpu: 0.0.40
codegen_flags: <defaults>
</compile_context>

<pallas_src>
import jax
import jax.numpy as jnp
from jax.experimental import pallas as pl
from jax.experimental.pallas import tpu as pltpu

NET_WIDTH = 128
NET_DEPTH = 3
LRELU_SLOPE = 0.01
GN_EPS = 1e-5
MAX_BATCH_TILE = 8
# Optional: run MXU matmuls in bf16 (f32 accumulation).  Off by default to keep
# numerical parity with the f32 PyTorch reference.
USE_BF16_MATMUL = False


def _mm(a, b):
    if USE_BF16_MATMUL:
        a = a.astype(jnp.bfloat16)
        b = b.astype(jnp.bfloat16)
    return jnp.dot(a, b, preferred_element_type=jnp.float32)


# ----------------------------------------------------------------------------
# In-kernel helpers (traced into the single fused kernel)
# ----------------------------------------------------------------------------
def _gn_act_pool(y, g_ref, be_ref):
    """GroupNorm(groups == channels) -> LeakyReLU(0.01) -> AvgPool2d(2,2).
    y: (B, H, W, C) f32."""
    B, H, W, C = y.shape
    inv_hw = 1.0 / float(H * W)
    # One-pass stats: sum and sum-of-squares together (no d*d second sweep).
    s1 = jnp.sum(jnp.sum(y, axis=2, keepdims=True), axis=1, keepdims=True)
    s2 = jnp.sum(jnp.sum(y * y, axis=2, keepdims=True), axis=1, keepdims=True)
    mean = s1 * inv_hw
    var = jnp.maximum(s2 * inv_hw - mean * mean, 0.0)
    y = (y - mean) * jax.lax.rsqrt(var + GN_EPS)
    y = y * g_ref[0] + be_ref[0]
    # LeakyReLU(0.01): mul + max (cheaper than compare + select).
    y = jnp.maximum(y, LRELU_SLOPE * y)
    # AvgPool2d(kernel=2, stride=2), floor behaviour for odd sizes.
    Hp, Wp = (H // 2) * 2, (W // 2) * 2
    if Hp != H or Wp != W:
        y = y[:, :Hp, :Wp]
    y = y.reshape(B, Hp // 2, 2, Wp, C)          # row pairs: free outer split
    y = y[:, :, 0] + y[:, :, 1]                  # (B, Hp//2, Wp, C)
    y = y.reshape(B, Hp // 2, Wp // 2, 2 * C)    # column pairs -> lanes
    y = (y[..., :C] + y[..., C:]) * 0.25         # lane-tile-aligned slices
    return y


def _shift_w(xp, direction, keep_mask):
    """Shift xp (B, Hp, W, C) along W: direction=+1 -> out[w] = xp[w-1],
    direction=-1 -> out[w] = xp[w+1]; out-of-image columns become zero."""
    B, Hp, W, C = xp.shape
    if keep_mask is not None:
        # Sublane rotate (XLU) + zero mask (VPU): no sublane relayout copies.
        flat = xp.reshape(B * Hp, W, C)                     # free outer merge
        r = pltpu.roll(flat, shift=direction % W, axis=1)
        r = jnp.where(keep_mask, r, 0.0)
        return r.reshape(B, Hp, W, C)
    # Fallback for W not sublane-tile aligned: zero-column concat.
    zcol = jnp.zeros((B, Hp, 1, C), jnp.float32)
    if direction > 0:
        return jnp.concatenate([zcol, xp[:, :, :W - 1]], axis=2)
    return jnp.concatenate([xp[:, :, 1:], zcol], axis=2)


def _conv_block_128(x, w_ref, b_ref, g_ref, be_ref):
    """3x3 conv (pad=1, Cin=128 lanes) + bias -> GN -> LeakyReLU -> AvgPool.
    Nine K=128 MXU matmuls with M = B*H*W."""
    B, H, W, C = x.shape
    Cout = w_ref.shape[-1]
    # Row (H) padding is a free outer-dim concat.
    zrow = jnp.zeros((B, 1, W, C), jnp.float32)
    xp = jnp.concatenate([zrow, x, zrow], axis=1)            # (B, H+2, W, C)
    # Column (W) shifts hoisted out of the dy loop: 2 shifted copies per layer.
    use_roll = (W % 8 == 0) and W >= 8
    if use_roll:
        w_iota = jax.lax.broadcasted_iota(jnp.int32, (1, W, C), 1)
        keep_m = w_iota >= 1             # valid columns after +1 shift (dx=0)
        keep_p = w_iota < W - 1          # valid columns after -1 shift (dx=2)
    else:
        keep_m = keep_p = None
    xs = [_shift_w(xp, +1, keep_m), xp, _shift_w(xp, -1, keep_p)]

    acc = jnp.zeros((B * H * W, Cout), jnp.float32)
    for dy in range(3):
        for dx in range(3):
            # dy slice is a free outer-dim slice; reshape is layout-preserving.
            slab = xs[dx][:, dy:dy + H].reshape(B * H * W, C)
            acc = acc + _mm(slab, w_ref[dy, dx])
    y = acc.reshape(B, H, W, Cout) + b_ref[0]
    return _gn_act_pool(y, g_ref, be_ref)


# ----------------------------------------------------------------------------
# Single fused kernel: 3 conv blocks + Linear, one batch tile per grid step.
# ----------------------------------------------------------------------------
def _net_kernel(xc_ref,
                w1, b1, g1, be1,
                w2, b2, g2, be2,
                w3, b3, g3, be3,
                lw_ref, lb_ref, o_ref):
    xc = xc_ref[...]
    B, H1, W1, K1 = xc.shape
    # Block 1: conv == ONE im2col matmul (K = 9*Cin), patches built in wrapper.
    y = _mm(xc.reshape(B * H1 * W1, K1), w1[...])
    y = y.reshape(B, H1, W1, w1.shape[-1]) + b1[0]
    y = _gn_act_pool(y, g1, be1)
    # Blocks 2 & 3: Cin = Cout = 128 -> nine full-depth K=128 matmuls each.
    y = _conv_block_128(y, w2, b2, g2, be2)
    y = _conv_block_128(y, w3, b3, g3, be3)
    # Head: flatten in (H, W, C) order; Linear weight pre-permuted to match
    # torch's (C, H, W) flatten and zero-padded to 128 output lanes.
    feat = y.reshape(B, -1)
    out = _mm(feat, lw_ref[...]) + lb_ref[0]
    o_ref[...] = out.reshape(B, 1, -1).astype(o_ref.dtype)


# ----------------------------------------------------------------------------
# Parameter construction (deterministic; shapes mirror the PyTorch __init__)
# ----------------------------------------------------------------------------
def init_params(key, inputsize, nclass):
    """Conv weights stored HWIO (3,3,Cin,Cout); Linear weight stored transposed
    as (num_feat, nclass) with rows in torch's (C,H,W) flatten order."""
    channel, h, w = inputsize
    if h == 28:                      # reference sizes its head assuming 32x32
        h, w = 32, 32
    params = {"blocks": []}
    in_ch = channel
    for _ in range(NET_DEPTH):
        key, k1, k2 = jax.random.split(key, 3)
        bound = float(in_ch * 9) ** -0.5
        cw = jax.random.uniform(k1, (3, 3, in_ch, NET_WIDTH), jnp.float32,
                                minval=-bound, maxval=bound)
        cb = jax.random.uniform(k2, (NET_WIDTH,), jnp.float32,
                                minval=-bound, maxval=bound)
        gamma = jnp.ones((NET_WIDTH,), jnp.float32)
        beta = jnp.zeros((NET_WIDTH,), jnp.float32)
        params["blocks"].append((cw, cb, gamma, beta))
        in_ch = NET_WIDTH
        h //= 2
        w //= 2
    num_feat = NET_WIDTH * h * w
    key, k3, k4 = jax.random.split(key, 3)
    bound = float(num_feat) ** -0.5
    lw = jax.random.uniform(k3, (num_feat, nclass), jnp.float32,
                            minval=-bound, maxval=bound)
    lb = jax.random.uniform(k4, (nclass,), jnp.float32,
                            minval=-bound, maxval=bound)
    params["last"] = (lw, lb)
    return params


def _pick_vmem_limit():
    """~3/4 of per-core VMEM: ~48 MiB on v7x (64 MiB/TC), ~96 MiB on v5e/v6e."""
    try:
        info = pltpu.get_tpu_info()
        cap = int(getattr(info, "vmem_capacity_bytes", 0))
        if cap > 0:
            return int(min(cap * 3 // 4, 100 * 1024 * 1024))
    except Exception:
        pass
    return 48 * 1024 * 1024


# ----------------------------------------------------------------------------
# Forward pass wrapper: single pallas_call for the whole network.
# ----------------------------------------------------------------------------
def net_forward(params, x_nchw):
    blocks = params["blocks"]
    lw, lb = params["last"]
    nclass = lb.shape[0]

    # NCHW (PyTorch) -> NHWC (TPU), f32.
    x = jnp.transpose(x_nchw, (0, 2, 3, 1)).astype(jnp.float32)
    N, H, W, Cin = x.shape

    # First conv padding follows the reference: 3 iff single-channel input.
    p1 = 3 if Cin == 1 else 1
    H1, W1 = H + 2 * p1 - 2, W + 2 * p1 - 2

    # ---- Layer-1 im2col built once here (input is tiny): the in-kernel conv
    # becomes one K = 9*Cin MXU matmul instead of nine K=Cin matmuls.
    K1 = 9 * Cin
    xp = jnp.pad(x, ((0, 0), (p1, p1), (p1, p1), (0, 0)))
    xc = jnp.concatenate(
        [xp[:, dy:dy + H1, dx:dx + W1, :] for dy in range(3) for dx in range(3)],
        axis=-1)                                          # (N, H1, W1, 9*Cin)

    cw1, cb1, g1, be1 = blocks[0]
    w1 = cw1.reshape(K1, NET_WIDTH)                       # (dy, dx, ci) row order

    # Feature spatial sizes after the three blocks (AvgPool floors each stage).
    hf, wf = H1, W1
    for _ in range(NET_DEPTH):
        hf //= 2
        wf //= 2
    num_feat = NET_WIDTH * hf * wf
    assert lw.shape == (num_feat, nclass), (
        f"Linear weight {lw.shape} inconsistent with feature size {num_feat}")

    # Torch flattens (C, H, W); the kernel flattens (H, W, C) -> permute the
    # Linear weight rows once, zero-pad classes to 128 lanes (unmasked vst).
    ncp = max(128, ((nclass + 127) // 128) * 128)
    lw_hwc = (lw.reshape(NET_WIDTH, hf, wf, nclass)
                .transpose(1, 2, 0, 3)
                .reshape(num_feat, nclass))
    lw_p = jnp.zeros((num_feat, ncp), jnp.float32).at[:, :nclass].set(lw_hwc)
    lb_p = jnp.zeros((1, ncp), jnp.float32).at[0, :nclass].set(lb)

    # Batch tiling: guarantee >= 2 grid steps whenever N > 1 so the "parallel"
    # batch axis can shard across both TensorCores on v7x.
    bt = max(1, min(MAX_BATCH_TILE, -(-N // 2)))
    n_pad = (-N) % bt
    if n_pad:
        xc = jnp.pad(xc, ((0, n_pad), (0, 0), (0, 0), (0, 0)))
    n_tot = N + n_pad

    def invariant(shape):
        nd = len(shape)
        return pl.BlockSpec(shape, lambda n, _nd=nd: (0,) * _nd)

    in_specs = [pl.BlockSpec((bt, H1, W1, K1), lambda n: (n, 0, 0, 0)),
                invariant(w1.shape), invariant((1, NET_WIDTH)),
                invariant((1, NET_WIDTH)), invariant((1, NET_WIDTH))]
    operands = [xc, w1, cb1.reshape(1, -1), g1.reshape(1, -1), be1.reshape(1, -1)]
    for (cw, cb, gam, bet) in blocks[1:]:
        in_specs += [invariant(cw.shape), invariant((1, NET_WIDTH)),
                     invariant((1, NET_WIDTH)), invariant((1, NET_WIDTH))]
        operands += [cw, cb.reshape(1, -1), gam.reshape(1, -1), bet.reshape(1, -1)]
    in_specs += [invariant((num_feat, ncp)), invariant((1, ncp))]
    operands += [lw_p, lb_p]

    # NOTE: grid-invariant weight blocks are double-buffered by default
    # (~2 MiB extra); acceptable given the explicit vmem_limit below.
    out = pl.pallas_call(
        _net_kernel,
        out_shape=jax.ShapeDtypeStruct((n_tot, 1, ncp), jnp.float32),
        grid=(n_tot // bt,),
        in_specs=in_specs,
        out_specs=pl.BlockSpec((bt, 1, ncp), lambda n: (n, 0, 0)),
        compiler_params=pltpu.CompilerParams(
            dimension_semantics=("parallel",),
            vmem_limit_bytes=_pick_vmem_limit()),
    )(*operands)
    return out[:N, 0, :nclass]


if __name__ == "__main__":
    key = jax.random.PRNGKey(0)
    # Small shapes consistent with the module: inputsize=(channel=4, 16, 16)
    inputsize = (4, 16, 16)
    nclass = 10
    batch = 2

    kp, kx = jax.random.split(key)
    params = init_params(kp, inputsize, nclass)
    x = jax.random.normal(kx, (batch,) + inputsize, jnp.float32)

    y = jax.jit(net_forward)(params, x)
    y = jax.block_until_ready(y)
    assert y.shape == (batch, nclass), y.shape
    assert y.dtype == jnp.float32
    assert bool(jnp.all(jnp.isfinite(y)))
    print("KERNEL_OK")
</pallas_src>

<mosaic_0001>
module attributes {stable_mosaic.version = 11 : i64} {
  func.func @_net_kernel(%arg0: i32, %arg1: memref<1x16x16x36xf32, #tpu.memory_space<vmem>>, %arg2: memref<36x128xf32, #tpu.memory_space<vmem>>, %arg3: memref<1x128xf32, #tpu.memory_space<vmem>>, %arg4: memref<1x128xf32, #tpu.memory_space<vmem>>, %arg5: memref<1x128xf32, #tpu.memory_space<vmem>>, %arg6: memref<3x3x128x128xf32, #tpu.memory_space<vmem>>, %arg7: memref<1x128xf32, #tpu.memory_space<vmem>>, %arg8: memref<1x128xf32, #tpu.memory_space<vmem>>, %arg9: memref<1x128xf32, #tpu.memory_space<vmem>>, %arg10: memref<3x3x128x128xf32, #tpu.memory_space<vmem>>, %arg11: memref<1x128xf32, #tpu.memory_space<vmem>>, %arg12: memref<1x128xf32, #tpu.memory_space<vmem>>, %arg13: memref<1x128xf32, #tpu.memory_space<vmem>>, %arg14: memref<512x128xf32, #tpu.memory_space<vmem>>, %arg15: memref<1x128xf32, #tpu.memory_space<vmem>>, %arg16: memref<1x1x128xf32, #tpu.memory_space<vmem>>) attributes {dimension_semantics = [#tpu.dimension_semantics<parallel>], iteration_bounds = array<i64: 2>, scalar_prefetch = 0 : i64, scratch_operands = 0 : i64, tpu.core_type = #tpu.core_type<tc>, window_params = [{transform_indices = @transform_0, window_bounds = array<i64: 1, 16, 16, 36>}, {pipeline_mode = #tpu.pipeline_mode<synchronous>, transform_indices = @transform_1, window_bounds = array<i64: 36, 128>}, {pipeline_mode = #tpu.pipeline_mode<synchronous>, transform_indices = @transform_2, window_bounds = array<i64: 1, 128>}, {pipeline_mode = #tpu.pipeline_mode<synchronous>, transform_indices = @transform_3, window_bounds = array<i64: 1, 128>}, {pipeline_mode = #tpu.pipeline_mode<synchronous>, transform_indices = @transform_4, window_bounds = array<i64: 1, 128>}, {pipeline_mode = #tpu.pipeline_mode<synchronous>, transform_indices = @transform_5, window_bounds = array<i64: 3, 3, 128, 128>}, {pipeline_mode = #tpu.pipeline_mode<synchronous>, transform_indices = @transform_6, window_bounds = array<i64: 1, 128>}, {pipeline_mode = #tpu.pipeline_mode<synchronous>, transform_indices = @transform_7, window_bounds = array<i64: 1, 128>}, {pipeline_mode = #tpu.pipeline_mode<synchronous>, transform_indices = @transform_8, window_bounds = array<i64: 1, 128>}, {pipeline_mode = #tpu.pipeline_mode<synchronous>, transform_indices = @transform_9, window_bounds = array<i64: 3, 3, 128, 128>}, {pipeline_mode = #tpu.pipeline_mode<synchronous>, transform_indices = @transform_10, window_bounds = array<i64: 1, 128>}, {pipeline_mode = #tpu.pipeline_mode<synchronous>, transform_indices = @transform_11, window_bounds = array<i64: 1, 128>}, {pipeline_mode = #tpu.pipeline_mode<synchronous>, transform_indices = @transform_12, window_bounds = array<i64: 1, 128>}, {pipeline_mode = #tpu.pipeline_mode<synchronous>, transform_indices = @transform_13, window_bounds = array<i64: 512, 128>}, {pipeline_mode = #tpu.pipeline_mode<synchronous>, transform_indices = @transform_14, window_bounds = array<i64: 1, 128>}, {transform_indices = @transform_15, window_bounds = array<i64: 1, 1, 128>}]} {
    %c0 = arith.constant 0 : index
    %c0_0 = arith.constant 0 : index
    %c0_1 = arith.constant 0 : index
    %c0_2 = arith.constant 0 : index
    %0 = vector.load %arg1[%c0, %c0_0, %c0_1, %c0_2] : memref<1x16x16x36xf32, #tpu.memory_space<vmem>>, vector<1x16x16x36xf32>
    %1 = vector.shape_cast %0 : vector<1x16x16x36xf32> to vector<256x36xf32>
    %c0_3 = arith.constant 0 : index
    %c0_4 = arith.constant 0 : index
    %2 = vector.load %arg2[%c0_3, %c0_4] : memref<36x128xf32, #tpu.memory_space<vmem>>, vector<36x128xf32>
    %cst = arith.constant dense<0.000000e+00> : vector<256x128xf32>
    %3 = tpu.matmul %1, %2, %cst {dimension_numbers = #tpu.dot_dimension_numbers<[1], [0], [0], [1], [0, 0, 1, 1], [], []>} : vector<256x36xf32>, vector<36x128xf32>, vector<256x128xf32> -> vector<256x128xf32>
    %4 = vector.shape_cast %3 : vector<256x128xf32> to vector<1x16x16x128xf32>
    %c0_5 = arith.constant 0 : index
    %c0_6 = arith.constant 0 : index
    %5 = vector.load %arg3[%c0_5, %c0_6] : memref<1x128xf32, #tpu.memory_space<vmem>>, vector<1x128xf32>
    %6 = vector.shape_cast %5 : vector<1x128xf32> to vector<128xf32>
    %7 = vector.shape_cast %6 : vector<128xf32> to vector<1x1x1x128xf32>
    %8 = vector.broadcast %7 : vector<1x1x1x128xf32> to vector<1x16x16x128xf32>
    %9 = arith.addf %4, %8 : vector<1x16x16x128xf32>
    %cst_7 = arith.constant dense<0.000000e+00> : vector<1x16x128xf32>
    %10 = vector.multi_reduction <add>, %9, %cst_7 [2] : vector<1x16x16x128xf32> to vector<1x16x128xf32>
    %11 = vector.shape_cast %10 : vector<1x16x128xf32> to vector<1x16x1x128xf32>
    %cst_8 = arith.constant dense<0.000000e+00> : vector<1x1x128xf32>
    %12 = vector.multi_reduction <add>, %11, %cst_8 [1] : vector<1x16x1x128xf32> to vector<1x1x128xf32>
    %13 = vector.shape_cast %12 : vector<1x1x128xf32> to vector<1x1x1x128xf32>
    %14 = arith.mulf %9, %9 : vector<1x16x16x128xf32>
    %cst_9 = arith.constant dense<0.000000e+00> : vector<1x16x128xf32>
    %15 = vector.multi_reduction <add>, %14, %cst_9 [2] : vector<1x16x16x128xf32> to vector<1x16x128xf32>
    %16 = vector.shape_cast %15 : vector<1x16x128xf32> to vector<1x16x1x128xf32>
    %cst_10 = arith.constant dense<0.000000e+00> : vector<1x1x128xf32>
    %17 = vector.multi_reduction <add>, %16, %cst_10 [1] : vector<1x16x1x128xf32> to vector<1x1x128xf32>
    %18 = vector.shape_cast %17 : vector<1x1x128xf32> to vector<1x1x1x128xf32>
    %cst_11 = arith.constant 3.906250e-03 : f32
    %19 = vector.broadcast %cst_11 : f32 to vector<1x1x1x128xf32>
    %20 = arith.mulf %13, %19 : vector<1x1x1x128xf32>
    %cst_12 = arith.constant 3.906250e-03 : f32
    %21 = vector.broadcast %cst_12 : f32 to vector<1x1x1x128xf32>
    %22 = arith.mulf %18, %21 : vector<1x1x1x128xf32>
    %23 = arith.mulf %20, %20 : vector<1x1x1x128xf32>
    %24 = arith.subf %22, %23 : vector<1x1x1x128xf32>
    %cst_13 = arith.constant 0.000000e+00 : f32
    %25 = vector.broadcast %cst_13 : f32 to vector<1x1x1x128xf32>
    %26 = arith.maximumf %24, %25 : vector<1x1x1x128xf32>
    %27 = vector.broadcast %20 : vector<1x1x1x128xf32> to vector<1x16x16x128xf32>
    %28 = arith.subf %9, %27 : vector<1x16x16x128xf32>
    %cst_14 = arith.constant 9.99999974E-6 : f32
    %29 = vector.broadcast %cst_14 : f32 to vector<1x1x1x128xf32>
    %30 = arith.addf %26, %29 : vector<1x1x1x128xf32>
    %31 = math.rsqrt %30 : vector<1x1x1x128xf32>
    %32 = vector.broadcast %31 : vector<1x1x1x128xf32> to vector<1x16x16x128xf32>
    %33 = arith.mulf %28, %32 : vector<1x16x16x128xf32>
    %c0_15 = arith.constant 0 : index
    %c0_16 = arith.constant 0 : index
    %34 = vector.load %arg4[%c0_15, %c0_16] : memref<1x128xf32, #tpu.memory_space<vmem>>, vector<1x128xf32>
    %35 = vector.shape_cast %34 : vector<1x128xf32> to vector<128xf32>
    %36 = vector.shape_cast %35 : vector<128xf32> to vector<1x1x1x128xf32>
    %37 = vector.broadcast %36 : vector<1x1x1x128xf32> to vector<1x16x16x128xf32>
    %38 = arith.mulf %33, %37 : vector<1x16x16x128xf32>
    %c0_17 = arith.constant 0 : index
    %c0_18 = arith.constant 0 : index
    %39 = vector.load %arg5[%c0_17, %c0_18] : memref<1x128xf32, #tpu.memory_space<vmem>>, vector<1x128xf32>
    %40 = vector.shape_cast %39 : vector<1x128xf32> to vector<128xf32>
    %41 = vector.shape_cast %40 : vector<128xf32> to vector<1x1x1x128xf32>
    %42 = vector.broadcast %41 : vector<1x1x1x128xf32> to vector<1x16x16x128xf32>
    %43 = arith.addf %38, %42 : vector<1x16x16x128xf32>
    %cst_19 = arith.constant 0.00999999977 : f32
    %44 = vector.broadcast %cst_19 : f32 to vector<1x16x16x128xf32>
    %45 = arith.mulf %44, %43 : vector<1x16x16x128xf32>
    %46 = arith.maximumf %43, %45 : vector<1x16x16x128xf32>
    %47 = vector.shape_cast %46 : vector<1x16x16x128xf32> to vector<1x8x2x16x128xf32>
    %48 = vector.extract_strided_slice %47 {offsets = [0, 0, 0, 0, 0], sizes = [1, 8, 1, 16, 128], strides = [1, 1, 1, 1, 1]} : vector<1x8x2x16x128xf32> to vector<1x8x1x16x128xf32>
    %49 = vector.shape_cast %48 : vector<1x8x1x16x128xf32> to vector<1x8x16x128xf32>
    %50 = vector.extract_strided_slice %47 {offsets = [0, 0, 1, 0, 0], sizes = [1, 8, 1, 16, 128], strides = [1, 1, 1, 1, 1]} : vector<1x8x2x16x128xf32> to vector<1x8x1x16x128xf32>
    %51 = vector.shape_cast %50 : vector<1x8x1x16x128xf32> to vector<1x8x16x128xf32>
    %52 = arith.addf %49, %51 : vector<1x8x16x128xf32>
    %53 = vector.shape_cast %52 : vector<1x8x16x128xf32> to vector<1x8x8x256xf32>
    %54 = vector.extract_strided_slice %53 {offsets = [0, 0, 0, 0], sizes = [1, 8, 8, 128], strides = [1, 1, 1, 1]} : vector<1x8x8x256xf32> to vector<1x8x8x128xf32>
    %55 = vector.extract_strided_slice %53 {offsets = [0, 0, 0, 128], sizes = [1, 8, 8, 128], strides = [1, 1, 1, 1]} : vector<1x8x8x256xf32> to vector<1x8x8x128xf32>
    %56 = arith.addf %54, %55 : vector<1x8x8x128xf32>
    %cst_20 = arith.constant 2.500000e-01 : f32
    %57 = vector.broadcast %cst_20 : f32 to vector<1x8x8x128xf32>
    %58 = arith.mulf %56, %57 : vector<1x8x8x128xf32>
    %cst_21 = arith.constant 0.000000e+00 : f32
    %59 = vector.broadcast %cst_21 : f32 to vector<1x1x8x128xf32>
    %60 = tpu.concatenate %59, %58, %59 in 1 : vector<1x1x8x128xf32>, vector<1x8x8x128xf32>, vector<1x1x8x128xf32> -> vector<1x10x8x128xf32>
    %61 = tpu.iota {dimensions = array<i32: 1>} : vector<1x8x128xi32>
    %c1_i32 = arith.constant 1 : i32
    %62 = vector.broadcast %c1_i32 : i32 to vector<1x8x128xi32>
    %63 = arith.cmpi sge, %61, %62 : vector<1x8x128xi32>
    %c7_i32 = arith.constant 7 : i32
    %64 = vector.broadcast %c7_i32 : i32 to vector<1x8x128xi32>
    %65 = arith.cmpi slt, %61, %64 : vector<1x8x128xi32>
    %66 = vector.shape_cast %60 : vector<1x10x8x128xf32> to vector<10x8x128xf32>
    %c1_i32_22 = arith.constant 1 : i32
    %67 = tpu.dynamic_rotate %66 by %c1_i32_22 dim 1 : vector<10x8x128xf32>, i32 -> vector<10x8x128xf32>
    %cst_23 = arith.constant 0.000000e+00 : f32
    %68 = vector.shape_cast %63 : vector<1x8x128xi1> to vector<1x8x128xi1>
    %69 = vector.broadcast %68 : vector<1x8x128xi1> to vector<10x8x128xi1>
    %70 = vector.broadcast %cst_23 : f32 to vector<10x8x128xf32>
    %71 = arith.select %69, %67, %70 : vector<10x8x128xi1>, vector<10x8x128xf32>
    %72 = vector.shape_cast %71 : vector<10x8x128xf32> to vector<1x10x8x128xf32>
    %73 = vector.shape_cast %60 : vector<1x10x8x128xf32> to vector<10x8x128xf32>
    %c7_i32_24 = arith.constant 7 : i32
    %74 = tpu.dynamic_rotate %73 by %c7_i32_24 dim 1 : vector<10x8x128xf32>, i32 -> vector<10x8x128xf32>
    %cst_25 = arith.constant 0.000000e+00 : f32
    %75 = vector.shape_cast %65 : vector<1x8x128xi1> to vector<1x8x128xi1>
    %76 = vector.broadcast %75 : vector<1x8x128xi1> to vector<10x8x128xi1>
    %77 = vector.broadcast %cst_25 : f32 to vector<10x8x128xf32>
    %78 = arith.select %76, %74, %77 : vector<10x8x128xi1>, vector<10x8x128xf32>
    %79 = vector.shape_cast %78 : vector<10x8x128xf32> to vector<1x10x8x128xf32>
    %cst_26 = arith.constant 0.000000e+00 : f32
    %80 = vector.broadcast %cst_26 : f32 to vector<64x128xf32>
    %81 = vector.extract_strided_slice %72 {offsets = [0, 0, 0, 0], sizes = [1, 8, 8, 128], strides = [1, 1, 1, 1]} : vector<1x10x8x128xf32> to vector<1x8x8x128xf32>
    %82 = vector.shape_cast %81 : vector<1x8x8x128xf32> to vector<64x128xf32>
    %c0_27 = arith.constant 0 : index
    %c0_28 = arith.constant 0 : index
    %c0_29 = arith.constant 0 : index
    %c0_30 = arith.constant 0 : index
    %83 = vector.load %arg6[%c0_27, %c0_28, %c0_29, %c0_30] : memref<3x3x128x128xf32, #tpu.memory_space<vmem>>, vector<1x1x128x128xf32>
    %84 = vector.shape_cast %83 : vector<1x1x128x128xf32> to vector<128x128xf32>
    %cst_31 = arith.constant dense<0.000000e+00> : vector<64x128xf32>
    %85 = tpu.matmul %82, %84, %cst_31 {dimension_numbers = #tpu.dot_dimension_numbers<[1], [0], [0], [1], [0, 0, 1, 1], [], []>} : vector<64x128xf32>, vector<128x128xf32>, vector<64x128xf32> -> vector<64x128xf32>
    %86 = arith.addf %80, %85 : vector<64x128xf32>
    %87 = vector.extract_strided_slice %60 {offsets = [0, 0, 0, 0], sizes = [1, 8, 8, 128], strides = [1, 1, 1, 1]} : vector<1x10x8x128xf32> to vector<1x8x8x128xf32>
    %88 = vector.shape_cast %87 : vector<1x8x8x128xf32> to vector<64x128xf32>
    %c0_32 = arith.constant 0 : index
    %c1 = arith.constant 1 : index
    %c0_33 = arith.constant 0 : index
    %c0_34 = arith.constant 0 : index
    %89 = vector.load %arg6[%c0_32, %c1, %c0_33, %c0_34] : memref<3x3x128x128xf32, #tpu.memory_space<vmem>>, vector<1x1x128x128xf32>
    %90 = vector.shape_cast %89 : vector<1x1x128x128xf32> to vector<128x128xf32>
    %cst_35 = arith.constant dense<0.000000e+00> : vector<64x128xf32>
    %91 = tpu.matmul %88, %90, %cst_35 {dimension_numbers = #tpu.dot_dimension_numbers<[1], [0], [0], [1], [0, 0, 1, 1], [], []>} : vector<64x128xf32>, vector<128x128xf32>, vector<64x128xf32> -> vector<64x128xf32>
    %92 = arith.addf %86, %91 : vector<64x128xf32>
    %93 = vector.extract_strided_slice %79 {offsets = [0, 0, 0, 0], sizes = [1, 8, 8, 128], strides = [1, 1, 1, 1]} : vector<1x10x8x128xf32> to vector<1x8x8x128xf32>
    %94 = vector.shape_cast %93 : vector<1x8x8x128xf32> to vector<64x128xf32>
    %c0_36 = arith.constant 0 : index
    %c2 = arith.constant 2 : index
    %c0_37 = arith.constant 0 : index
    %c0_38 = arith.constant 0 : index
    %95 = vector.load %arg6[%c0_36, %c2, %c0_37, %c0_38] : memref<3x3x128x128xf32, #tpu.memory_space<vmem>>, vector<1x1x128x128xf32>
    %96 = vector.shape_cast %95 : vector<1x1x128x128xf32> to vector<128x128xf32>
    %cst_39 = arith.constant dense<0.000000e+00> : vector<64x128xf32>
    %97 = tpu.matmul %94, %96, %cst_39 {dimension_numbers = #tpu.dot_dimension_numbers<[1], [0], [0], [1], [0, 0, 1, 1], [], []>} : vector<64x128xf32>, vector<128x128xf32>, vector<64x128xf32> -> vector<64x128xf32>
    %98 = arith.addf %92, %97 : vector<64x128xf32>
    %99 = vector.extract_strided_slice %72 {offsets = [0, 1, 0, 0], sizes = [1, 8, 8, 128], strides = [1, 1, 1, 1]} : vector<1x10x8x128xf32> to vector<1x8x8x128xf32>
    %100 = vector.shape_cast %99 : vector<1x8x8x128xf32> to vector<64x128xf32>
    %c1_40 = arith.constant 1 : index
    %c0_41 = arith.constant 0 : index
    %c0_42 = arith.constant 0 : index
    %c0_43 = arith.constant 0 : index
    %101 = vector.load %arg6[%c1_40, %c0_41, %c0_42, %c0_43] : memref<3x3x128x128xf32, #tpu.memory_space<vmem>>, vector<1x1x128x128xf32>
    %102 = vector.shape_cast %101 : vector<1x1x128x128xf32> to vector<128x128xf32>
    %cst_44 = arith.constant dense<0.000000e+00> : vector<64x128xf32>
    %103 = tpu.matmul %100, %102, %cst_44 {dimension_numbers = #tpu.dot_dimension_numbers<[1], [0], [0], [1], [0, 0, 1, 1], [], []>} : vector<64x128xf32>, vector<128x128xf32>, vector<64x128xf32> -> vector<64x128xf32>
    %104 = arith.addf %98, %103 : vector<64x128xf32>
    %105 = vector.extract_strided_slice %60 {offsets = [0, 1, 0, 0], sizes = [1, 8, 8, 128], strides = [1, 1, 1, 1]} : vector<1x10x8x128xf32> to vector<1x8x8x128xf32>
    %106 = vector.shape_cast %105 : vector<1x8x8x128xf32> to vector<64x128xf32>
    %c1_45 = arith.constant 1 : index
    %c1_46 = arith.constant 1 : index
    %c0_47 = arith.constant 0 : index
    %c0_48 = arith.constant 0 : index
    %107 = vector.load %arg6[%c1_45, %c1_46, %c0_47, %c0_48] : memref<3x3x128x128xf32, #tpu.memory_space<vmem>>, vector<1x1x128x128xf32>
    %108 = vector.shape_cast %107 : vector<1x1x128x128xf32> to vector<128x128xf32>
    %cst_49 = arith.constant dense<0.000000e+00> : vector<64x128xf32>
    %109 = tpu.matmul %106, %108, %cst_49 {dimension_numbers = #tpu.dot_dimension_numbers<[1], [0], [0], [1], [0, 0, 1, 1], [], []>} : vector<64x128xf32>, vector<128x128xf32>, vector<64x128xf32> -> vector<64x128xf32>
    %110 = arith.addf %104, %109 : vector<64x128xf32>
    %111 = vector.extract_strided_slice %79 {offsets = [0, 1, 0, 0], sizes = [1, 8, 8, 128], strides = [1, 1, 1, 1]} : vector<1x10x8x128xf32> to vector<1x8x8x128xf32>
    %112 = vector.shape_cast %111 : vector<1x8x8x128xf32> to vector<64x128xf32>
    %c1_50 = arith.constant 1 : index
    %c2_51 = arith.constant 2 : index
    %c0_52 = arith.constant 0 : index
    %c0_53 = arith.constant 0 : index
    %113 = vector.load %arg6[%c1_50, %c2_51, %c0_52, %c0_53] : memref<3x3x128x128xf32, #tpu.memory_space<vmem>>, vector<1x1x128x128xf32>
    %114 = vector.shape_cast %113 : vector<1x1x128x128xf32> to vector<128x128xf32>
    %cst_54 = arith.constant dense<0.000000e+00> : vector<64x128xf32>
    %115 = tpu.matmul %112, %114, %cst_54 {dimension_numbers = #tpu.dot_dimension_numbers<[1], [0], [0], [1], [0, 0, 1, 1], [], []>} : vector<64x128xf32>, vector<128x128xf32>, vector<64x128xf32> -> vector<64x128xf32>
    %116 = arith.addf %110, %115 : vector<64x128xf32>
    %117 = vector.extract_strided_slice %72 {offsets = [0, 2, 0, 0], sizes = [1, 8, 8, 128], strides = [1, 1, 1, 1]} : vector<1x10x8x128xf32> to vector<1x8x8x128xf32>
    %118 = vector.shape_cast %117 : vector<1x8x8x128xf32> to vector<64x128xf32>
    %c2_55 = arith.constant 2 : index
    %c0_56 = arith.constant 0 : index
    %c0_57 = arith.constant 0 : index
    %c0_58 = arith.constant 0 : index
    %119 = vector.load %arg6[%c2_55, %c0_56, %c0_57, %c0_58] : memref<3x3x128x128xf32, #tpu.memory_space<vmem>>, vector<1x1x128x128xf32>
    %120 = vector.shape_cast %119 : vector<1x1x128x128xf32> to vector<128x128xf32>
    %cst_59 = arith.constant dense<0.000000e+00> : vector<64x128xf32>
    %121 = tpu.matmul %118, %120, %cst_59 {dimension_numbers = #tpu.dot_dimension_numbers<[1], [0], [0], [1], [0, 0, 1, 1], [], []>} : vector<64x128xf32>, vector<128x128xf32>, vector<64x128xf32> -> vector<64x128xf32>
    %122 = arith.addf %116, %121 : vector<64x128xf32>
    %123 = vector.extract_strided_slice %60 {offsets = [0, 2, 0, 0], sizes = [1, 8, 8, 128], strides = [1, 1, 1, 1]} : vector<1x10x8x128xf32> to vector<1x8x8x128xf32>
    %124 = vector.shape_cast %123 : vector<1x8x8x128xf32> to vector<64x128xf32>
    %c2_60 = arith.constant 2 : index
    %c1_61 = arith.constant 1 : index
    %c0_62 = arith.constant 0 : index
    %c0_63 = arith.constant 0 : index
    %125 = vector.load %arg6[%c2_60, %c1_61, %c0_62, %c0_63] : memref<3x3x128x128xf32, #tpu.memory_space<vmem>>, vector<1x1x128x128xf32>
    %126 = vector.shape_cast %125 : vector<1x1x128x128xf32> to vector<128x128xf32>
    %cst_64 = arith.constant dense<0.000000e+00> : vector<64x128xf32>
    %127 = tpu.matmul %124, %126, %cst_64 {dimension_numbers = #tpu.dot_dimension_numbers<[1], [0], [0], [1], [0, 0, 1, 1], [], []>} : vector<64x128xf32>, vector<128x128xf32>, vector<64x128xf32> -> vector<64x128xf32>
    %128 = arith.addf %122, %127 : vector<64x128xf32>
    %129 = vector.extract_strided_slice %79 {offsets = [0, 2, 0, 0], sizes = [1, 8, 8, 128], strides = [1, 1, 1, 1]} : vector<1x10x8x128xf32> to vector<1x8x8x128xf32>
    %130 = vector.shape_cast %129 : vector<1x8x8x128xf32> to vector<64x128xf32>
    %c2_65 = arith.constant 2 : index
    %c2_66 = arith.constant 2 : index
    %c0_67 = arith.constant 0 : index
    %c0_68 = arith.constant 0 : index
    %131 = vector.load %arg6[%c2_65, %c2_66, %c0_67, %c0_68] : memref<3x3x128x128xf32, #tpu.memory_space<vmem>>, vector<1x1x128x128xf32>
    %132 = vector.shape_cast %131 : vector<1x1x128x128xf32> to vector<128x128xf32>
    %cst_69 = arith.constant dense<0.000000e+00> : vector<64x128xf32>
    %133 = tpu.matmul %130, %132, %cst_69 {dimension_numbers = #tpu.dot_dimension_numbers<[1], [0], [0], [1], [0, 0, 1, 1], [], []>} : vector<64x128xf32>, vector<128x128xf32>, vector<64x128xf32> -> vector<64x128xf32>
    %134 = arith.addf %128, %133 : vector<64x128xf32>
    %135 = vector.shape_cast %134 : vector<64x128xf32> to vector<1x8x8x128xf32>
    %c0_70 = arith.constant 0 : index
    %c0_71 = arith.constant 0 : index
    %136 = vector.load %arg7[%c0_70, %c0_71] : memref<1x128xf32, #tpu.memory_space<vmem>>, vector<1x128xf32>
    %137 = vector.shape_cast %136 : vector<1x128xf32> to vector<128xf32>
    %138 = vector.shape_cast %137 : vector<128xf32> to vector<1x1x1x128xf32>
    %139 = vector.broadcast %138 : vector<1x1x1x128xf32> to vector<1x8x8x128xf32>
    %140 = arith.addf %135, %139 : vector<1x8x8x128xf32>
    %cst_72 = arith.constant dense<0.000000e+00> : vector<1x8x128xf32>
    %141 = vector.multi_reduction <add>, %140, %cst_72 [2] : vector<1x8x8x128xf32> to vector<1x8x128xf32>
    %142 = vector.shape_cast %141 : vector<1x8x128xf32> to vector<1x8x1x128xf32>
    %cst_73 = arith.constant dense<0.000000e+00> : vector<1x1x128xf32>
    %143 = vector.multi_reduction <add>, %142, %cst_73 [1] : vector<1x8x1x128xf32> to vector<1x1x128xf32>
    %144 = vector.shape_cast %143 : vector<1x1x128xf32> to vector<1x1x1x128xf32>
    %145 = arith.mulf %140, %140 : vector<1x8x8x128xf32>
    %cst_74 = arith.constant dense<0.000000e+00> : vector<1x8x128xf32>
    %146 = vector.multi_reduction <add>, %145, %cst_74 [2] : vector<1x8x8x128xf32> to vector<1x8x128xf32>
    %147 = vector.shape_cast %146 : vector<1x8x128xf32> to vector<1x8x1x128xf32>
    %cst_75 = arith.constant dense<0.000000e+00> : vector<1x1x128xf32>
    %148 = vector.multi_reduction <add>, %147, %cst_75 [1] : vector<1x8x1x128xf32> to vector<1x1x128xf32>
    %149 = vector.shape_cast %148 : vector<1x1x128xf32> to vector<1x1x1x128xf32>
    %cst_76 = arith.constant 1.562500e-02 : f32
    %150 = vector.broadcast %cst_76 : f32 to vector<1x1x1x128xf32>
    %151 = arith.mulf %144, %150 : vector<1x1x1x128xf32>
    %cst_77 = arith.constant 1.562500e-02 : f32
    %152 = vector.broadcast %cst_77 : f32 to vector<1x1x1x128xf32>
    %153 = arith.mulf %149, %152 : vector<1x1x1x128xf32>
    %154 = arith.mulf %151, %151 : vector<1x1x1x128xf32>
    %155 = arith.subf %153, %154 : vector<1x1x1x128xf32>
    %cst_78 = arith.constant 0.000000e+00 : f32
    %156 = vector.broadcast %cst_78 : f32 to vector<1x1x1x128xf32>
    %157 = arith.maximumf %155, %156 : vector<1x1x1x128xf32>
    %158 = vector.broadcast %151 : vector<1x1x1x128xf32> to vector<1x8x8x128xf32>
    %159 = arith.subf %140, %158 : vector<1x8x8x128xf32>
    %cst_79 = arith.constant 9.99999974E-6 : f32
    %160 = vector.broadcast %cst_79 : f32 to vector<1x1x1x128xf32>
    %161 = arith.addf %157, %160 : vector<1x1x1x128xf32>
    %162 = math.rsqrt %161 : vector<1x1x1x128xf32>
    %163 = vector.broadcast %162 : vector<1x1x1x128xf32> to vector<1x8x8x128xf32>
    %164 = arith.mulf %159, %163 : vector<1x8x8x128xf32>
    %c0_80 = arith.constant 0 : index
    %c0_81 = arith.constant 0 : index
    %165 = vector.load %arg8[%c0_80, %c0_81] : memref<1x128xf32, #tpu.memory_space<vmem>>, vector<1x128xf32>
    %166 = vector.shape_cast %165 : vector<1x128xf32> to vector<128xf32>
    %167 = vector.shape_cast %166 : vector<128xf32> to vector<1x1x1x128xf32>
    %168 = vector.broadcast %167 : vector<1x1x1x128xf32> to vector<1x8x8x128xf32>
    %169 = arith.mulf %164, %168 : vector<1x8x8x128xf32>
    %c0_82 = arith.constant 0 : index
    %c0_83 = arith.constant 0 : index
    %170 = vector.load %arg9[%c0_82, %c0_83] : memref<1x128xf32, #tpu.memory_space<vmem>>, vector<1x128xf32>
    %171 = vector.shape_cast %170 : vector<1x128xf32> to vector<128xf32>
    %172 = vector.shape_cast %171 : vector<128xf32> to vector<1x1x1x128xf32>
    %173 = vector.broadcast %172 : vector<1x1x1x128xf32> to vector<1x8x8x128xf32>
    %174 = arith.addf %169, %173 : vector<1x8x8x128xf32>
    %cst_84 = arith.constant 0.00999999977 : f32
    %175 = vector.broadcast %cst_84 : f32 to vector<1x8x8x128xf32>
    %176 = arith.mulf %175, %174 : vector<1x8x8x128xf32>
    %177 = arith.maximumf %174, %176 : vector<1x8x8x128xf32>
    %178 = vector.shape_cast %177 : vector<1x8x8x128xf32> to vector<1x4x2x8x128xf32>
    %179 = vector.extract_strided_slice %178 {offsets = [0, 0, 0, 0, 0], sizes = [1, 4, 1, 8, 128], strides = [1, 1, 1, 1, 1]} : vector<1x4x2x8x128xf32> to vector<1x4x1x8x128xf32>
    %180 = vector.shape_cast %179 : vector<1x4x1x8x128xf32> to vector<1x4x8x128xf32>
    %181 = vector.extract_strided_slice %178 {offsets = [0, 0, 1, 0, 0], sizes = [1, 4, 1, 8, 128], strides = [1, 1, 1, 1, 1]} : vector<1x4x2x8x128xf32> to vector<1x4x1x8x128xf32>
    %182 = vector.shape_cast %181 : vector<1x4x1x8x128xf32> to vector<1x4x8x128xf32>
    %183 = arith.addf %180, %182 : vector<1x4x8x128xf32>
    %184 = vector.shape_cast %183 : vector<1x4x8x128xf32> to vector<1x4x4x256xf32>
    %185 = vector.extract_strided_slice %184 {offsets = [0, 0, 0, 0], sizes = [1, 4, 4, 128], strides = [1, 1, 1, 1]} : vector<1x4x4x256xf32> to vector<1x4x4x128xf32>
    %186 = vector.extract_strided_slice %184 {offsets = [0, 0, 0, 128], sizes = [1, 4, 4, 128], strides = [1, 1, 1, 1]} : vector<1x4x4x256xf32> to vector<1x4x4x128xf32>
    %187 = arith.addf %185, %186 : vector<1x4x4x128xf32>
    %cst_85 = arith.constant 2.500000e-01 : f32
    %188 = vector.broadcast %cst_85 : f32 to vector<1x4x4x128xf32>
    %189 = arith.mulf %187, %188 : vector<1x4x4x128xf32>
    %cst_86 = arith.constant 0.000000e+00 : f32
    %190 = vector.broadcast %cst_86 : f32 to vector<1x1x4x128xf32>
    %191 = tpu.concatenate %190, %189, %190 in 1 : vector<1x1x4x128xf32>, vector<1x4x4x128xf32>, vector<1x1x4x128xf32> -> vector<1x6x4x128xf32>
    %cst_87 = arith.constant 0.000000e+00 : f32
    %192 = vector.broadcast %cst_87 : f32 to vector<1x6x1x128xf32>
    %193 = vector.extract_strided_slice %191 {offsets = [0, 0, 0, 0], sizes = [1, 6, 3, 128], strides = [1, 1, 1, 1]} : vector<1x6x4x128xf32> to vector<1x6x3x128xf32>
    %194 = tpu.concatenate %192, %193 in 2 : vector<1x6x1x128xf32>, vector<1x6x3x128xf32> -> vector<1x6x4x128xf32>
    %cst_88 = arith.constant 0.000000e+00 : f32
    %195 = vector.broadcast %cst_88 : f32 to vector<1x6x1x128xf32>
    %196 = vector.extract_strided_slice %191 {offsets = [0, 0, 1, 0], sizes = [1, 6, 3, 128], strides = [1, 1, 1, 1]} : vector<1x6x4x128xf32> to vector<1x6x3x128xf32>
    %197 = tpu.concatenate %196, %195 in 2 : vector<1x6x3x128xf32>, vector<1x6x1x128xf32> -> vector<1x6x4x128xf32>
    %cst_89 = arith.constant 0.000000e+00 : f32
    %198 = vector.broadcast %cst_89 : f32 to vector<16x128xf32>
    %199 = vector.extract_strided_slice %194 {offsets = [0, 0, 0, 0], sizes = [1, 4, 4, 128], strides = [1, 1, 1, 1]} : vector<1x6x4x128xf32> to vector<1x4x4x128xf32>
    %200 = vector.shape_cast %199 : vector<1x4x4x128xf32> to vector<16x128xf32>
    %c0_90 = arith.constant 0 : index
    %c0_91 = arith.constant 0 : index
    %c0_92 = arith.constant 0 : index
    %c0_93 = arith.constant 0 : index
    %201 = vector.load %arg10[%c0_90, %c0_91, %c0_92, %c0_93] : memref<3x3x128x128xf32, #tpu.memory_space<vmem>>, vector<1x1x128x128xf32>
    %202 = vector.shape_cast %201 : vector<1x1x128x128xf32> to vector<128x128xf32>
    %cst_94 = arith.constant dense<0.000000e+00> : vector<16x128xf32>
    %203 = tpu.matmul %200, %202, %cst_94 {dimension_numbers = #tpu.dot_dimension_numbers<[1], [0], [0], [1], [0, 0, 1, 1], [], []>} : vector<16x128xf32>, vector<128x128xf32>, vector<16x128xf32> -> vector<16x128xf32>
    %204 = arith.addf %198, %203 : vector<16x128xf32>
    %205 = vector.extract_strided_slice %191 {offsets = [0, 0, 0, 0], sizes = [1, 4, 4, 128], strides = [1, 1, 1, 1]} : vector<1x6x4x128xf32> to vector<1x4x4x128xf32>
    %206 = vector.shape_cast %205 : vector<1x4x4x128xf32> to vector<16x128xf32>
    %c0_95 = arith.constant 0 : index
    %c1_96 = arith.constant 1 : index
    %c0_97 = arith.constant 0 : index
    %c0_98 = arith.constant 0 : index
    %207 = vector.load %arg10[%c0_95, %c1_96, %c0_97, %c0_98] : memref<3x3x128x128xf32, #tpu.memory_space<vmem>>, vector<1x1x128x128xf32>
    %208 = vector.shape_cast %207 : vector<1x1x128x128xf32> to vector<128x128xf32>
    %cst_99 = arith.constant dense<0.000000e+00> : vector<16x128xf32>
    %209 = tpu.matmul %206, %208, %cst_99 {dimension_numbers = #tpu.dot_dimension_numbers<[1], [0], [0], [1], [0, 0, 1, 1], [], []>} : vector<16x128xf32>, vector<128x128xf32>, vector<16x128xf32> -> vector<16x128xf32>
    %210 = arith.addf %204, %209 : vector<16x128xf32>
    %211 = vector.extract_strided_slice %197 {offsets = [0, 0, 0, 0], sizes = [1, 4, 4, 128], strides = [1, 1, 1, 1]} : vector<1x6x4x128xf32> to vector<1x4x4x128xf32>
    %212 = vector.shape_cast %211 : vector<1x4x4x128xf32> to vector<16x128xf32>
    %c0_100 = arith.constant 0 : index
    %c2_101 = arith.constant 2 : index
    %c0_102 = arith.constant 0 : index
    %c0_103 = arith.constant 0 : index
    %213 = vector.load %arg10[%c0_100, %c2_101, %c0_102, %c0_103] : memref<3x3x128x128xf32, #tpu.memory_space<vmem>>, vector<1x1x128x128xf32>
    %214 = vector.shape_cast %213 : vector<1x1x128x128xf32> to vector<128x128xf32>
    %cst_104 = arith.constant dense<0.000000e+00> : vector<16x128xf32>
    %215 = tpu.matmul %212, %214, %cst_104 {dimension_numbers = #tpu.dot_dimension_numbers<[1], [0], [0], [1], [0, 0, 1, 1], [], []>} : vector<16x128xf32>, vector<128x128xf32>, vector<16x128xf32> -> vector<16x128xf32>
    %216 = arith.addf %210, %215 : vector<16x128xf32>
    %217 = vector.extract_strided_slice %194 {offsets = [0, 1, 0, 0], sizes = [1, 4, 4, 128], strides = [1, 1, 1, 1]} : vector<1x6x4x128xf32> to vector<1x4x4x128xf32>
    %218 = vector.shape_cast %217 : vector<1x4x4x128xf32> to vector<16x128xf32>
    %c1_105 = arith.constant 1 : index
    %c0_106 = arith.constant 0 : index
    %c0_107 = arith.constant 0 : index
    %c0_108 = arith.constant 0 : index
    %219 = vector.load %arg10[%c1_105, %c0_106, %c0_107, %c0_108] : memref<3x3x128x128xf32, #tpu.memory_space<vmem>>, vector<1x1x128x128xf32>
    %220 = vector.shape_cast %219 : vector<1x1x128x128xf32> to vector<128x128xf32>
    %cst_109 = arith.constant dense<0.000000e+00> : vector<16x128xf32>
    %221 = tpu.matmul %218, %220, %cst_109 {dimension_numbers = #tpu.dot_dimension_numbers<[1], [0], [0], [1], [0, 0, 1, 1], [], []>} : vector<16x128xf32>, vector<128x128xf32>, vector<16x128xf32> -> vector<16x128xf32>
    %222 = arith.addf %216, %221 : vector<16x128xf32>
    %223 = vector.extract_strided_slice %191 {offsets = [0, 1, 0, 0], sizes = [1, 4, 4, 128], strides = [1, 1, 1, 1]} : vector<1x6x4x128xf32> to vector<1x4x4x128xf32>
    %224 = vector.shape_cast %223 : vector<1x4x4x128xf32> to vector<16x128xf32>
    %c1_110 = arith.constant 1 : index
    %c1_111 = arith.constant 1 : index
    %c0_112 = arith.constant 0 : index
    %c0_113 = arith.constant 0 : index
    %225 = vector.load %arg10[%c1_110, %c1_111, %c0_112, %c0_113] : memref<3x3x128x128xf32, #tpu.memory_space<vmem>>, vector<1x1x128x128xf32>
    %226 = vector.shape_cast %225 : vector<1x1x128x128xf32> to vector<128x128xf32>
    %cst_114 = arith.constant dense<0.000000e+00> : vector<16x128xf32>
    %227 = tpu.matmul %224, %226, %cst_114 {dimension_numbers = #tpu.dot_dimension_numbers<[1], [0], [0], [1], [0, 0, 1, 1], [], []>} : vector<16x128xf32>, vector<128x128xf32>, vector<16x128xf32> -> vector<16x128xf32>
    %228 = arith.addf %222, %227 : vector<16x128xf32>
    %229 = vector.extract_strided_slice %197 {offsets = [0, 1, 0, 0], sizes = [1, 4, 4, 128], strides = [1, 1, 1, 1]} : vector<1x6x4x128xf32> to vector<1x4x4x128xf32>
    %230 = vector.shape_cast %229 : vector<1x4x4x128xf32> to vector<16x128xf32>
    %c1_115 = arith.constant 1 : index
    %c2_116 = arith.constant 2 : index
    %c0_117 = arith.constant 0 : index
    %c0_118 = arith.constant 0 : index
    %231 = vector.load %arg10[%c1_115, %c2_116, %c0_117, %c0_118] : memref<3x3x128x128xf32, #tpu.memory_space<vmem>>, vector<1x1x128x128xf32>
    %232 = vector.shape_cast %231 : vector<1x1x128x128xf32> to vector<128x128xf32>
    %cst_119 = arith.constant dense<0.000000e+00> : vector<16x128xf32>
    %233 = tpu.matmul %230, %232, %cst_119 {dimension_numbers = #tpu.dot_dimension_numbers<[1], [0], [0], [1], [0, 0, 1, 1], [], []>} : vector<16x128xf32>, vector<128x128xf32>, vector<16x128xf32> -> vector<16x128xf32>
    %234 = arith.addf %228, %233 : vector<16x128xf32>
    %235 = vector.extract_strided_slice %194 {offsets = [0, 2, 0, 0], sizes = [1, 4, 4, 128], strides = [1, 1, 1, 1]} : vector<1x6x4x128xf32> to vector<1x4x4x128xf32>
    %236 = vector.shape_cast %235 : vector<1x4x4x128xf32> to vector<16x128xf32>
    %c2_120 = arith.constant 2 : index
    %c0_121 = arith.constant 0 : index
    %c0_122 = arith.constant 0 : index
    %c0_123 = arith.constant 0 : index
    %237 = vector.load %arg10[%c2_120, %c0_121, %c0_122, %c0_123] : memref<3x3x128x128xf32, #tpu.memory_space<vmem>>, vector<1x1x128x128xf32>
    %238 = vector.shape_cast %237 : vector<1x1x128x128xf32> to vector<128x128xf32>
    %cst_124 = arith.constant dense<0.000000e+00> : vector<16x128xf32>
    %239 = tpu.matmul %236, %238, %cst_124 {dimension_numbers = #tpu.dot_dimension_numbers<[1], [0], [0], [1], [0, 0, 1, 1], [], []>} : vector<16x128xf32>, vector<128x128xf32>, vector<16x128xf32> -> vector<16x128xf32>
    %240 = arith.addf %234, %239 : vector<16x128xf32>
    %241 = vector.extract_strided_slice %191 {offsets = [0, 2, 0, 0], sizes = [1, 4, 4, 128], strides = [1, 1, 1, 1]} : vector<1x6x4x128xf32> to vector<1x4x4x128xf32>
    %242 = vector.shape_cast %241 : vector<1x4x4x128xf32> to vector<16x128xf32>
    %c2_125 = arith.constant 2 : index
    %c1_126 = arith.constant 1 : index
    %c0_127 = arith.constant 0 : index
    %c0_128 = arith.constant 0 : index
    %243 = vector.load %arg10[%c2_125, %c1_126, %c0_127, %c0_128] : memref<3x3x128x128xf32, #tpu.memory_space<vmem>>, vector<1x1x128x128xf32>
    %244 = vector.shape_cast %243 : vector<1x1x128x128xf32> to vector<128x128xf32>
    %cst_129 = arith.constant dense<0.000000e+00> : vector<16x128xf32>
    %245 = tpu.matmul %242, %244, %cst_129 {dimension_numbers = #tpu.dot_dimension_numbers<[1], [0], [0], [1], [0, 0, 1, 1], [], []>} : vector<16x128xf32>, vector<128x128xf32>, vector<16x128xf32> -> vector<16x128xf32>
    %246 = arith.addf %240, %245 : vector<16x128xf32>
    %247 = vector.extract_strided_slice %197 {offsets = [0, 2, 0, 0], sizes = [1, 4, 4, 128], strides = [1, 1, 1, 1]} : vector<1x6x4x128xf32> to vector<1x4x4x128xf32>
    %248 = vector.shape_cast %247 : vector<1x4x4x128xf32> to vector<16x128xf32>
    %c2_130 = arith.constant 2 : index
    %c2_131 = arith.constant 2 : index
    %c0_132 = arith.constant 0 : index
    %c0_133 = arith.constant 0 : index
    %249 = vector.load %arg10[%c2_130, %c2_131, %c0_132, %c0_133] : memref<3x3x128x128xf32, #tpu.memory_space<vmem>>, vector<1x1x128x128xf32>
    %250 = vector.shape_cast %249 : vector<1x1x128x128xf32> to vector<128x128xf32>
    %cst_134 = arith.constant dense<0.000000e+00> : vector<16x128xf32>
    %251 = tpu.matmul %248, %250, %cst_134 {dimension_numbers = #tpu.dot_dimension_numbers<[1], [0], [0], [1], [0, 0, 1, 1], [], []>} : vector<16x128xf32>, vector<128x128xf32>, vector<16x128xf32> -> vector<16x128xf32>
    %252 = arith.addf %246, %251 : vector<16x128xf32>
    %253 = vector.shape_cast %252 : vector<16x128xf32> to vector<1x4x4x128xf32>
    %c0_135 = arith.constant 0 : index
    %c0_136 = arith.constant 0 : index
    %254 = vector.load %arg11[%c0_135, %c0_136] : memref<1x128xf32, #tpu.memory_space<vmem>>, vector<1x128xf32>
    %255 = vector.shape_cast %254 : vector<1x128xf32> to vector<128xf32>
    %256 = vector.shape_cast %255 : vector<128xf32> to vector<1x1x1x128xf32>
    %257 = vector.broadcast %256 : vector<1x1x1x128xf32> to vector<1x4x4x128xf32>
    %258 = arith.addf %253, %257 : vector<1x4x4x128xf32>
    %cst_137 = arith.constant dense<0.000000e+00> : vector<1x4x128xf32>
    %259 = vector.multi_reduction <add>, %258, %cst_137 [2] : vector<1x4x4x128xf32> to vector<1x4x128xf32>
    %260 = vector.shape_cast %259 : vector<1x4x128xf32> to vector<1x4x1x128xf32>
    %cst_138 = arith.constant dense<0.000000e+00> : vector<1x1x128xf32>
    %261 = vector.multi_reduction <add>, %260, %cst_138 [1] : vector<1x4x1x128xf32> to vector<1x1x128xf32>
    %262 = vector.shape_cast %261 : vector<1x1x128xf32> to vector<1x1x1x128xf32>
    %263 = arith.mulf %258, %258 : vector<1x4x4x128xf32>
    %cst_139 = arith.constant dense<0.000000e+00> : vector<1x4x128xf32>
    %264 = vector.multi_reduction <add>, %263, %cst_139 [2] : vector<1x4x4x128xf32> to vector<1x4x128xf32>
    %265 = vector.shape_cast %264 : vector<1x4x128xf32> to vector<1x4x1x128xf32>
    %cst_140 = arith.constant dense<0.000000e+00> : vector<1x1x128xf32>
    %266 = vector.multi_reduction <add>, %265, %cst_140 [1] : vector<1x4x1x128xf32> to vector<1x1x128xf32>
    %267 = vector.shape_cast %266 : vector<1x1x128xf32> to vector<1x1x1x128xf32>
    %cst_141 = arith.constant 6.250000e-02 : f32
    %268 = vector.broadcast %cst_141 : f32 to vector<1x1x1x128xf32>
    %269 = arith.mulf %262, %268 : vector<1x1x1x128xf32>
    %cst_142 = arith.constant 6.250000e-02 : f32
    %270 = vector.broadcast %cst_142 : f32 to vector<1x1x1x128xf32>
    %271 = arith.mulf %267, %270 : vector<1x1x1x128xf32>
    %272 = arith.mulf %269, %269 : vector<1x1x1x128xf32>
    %273 = arith.subf %271, %272 : vector<1x1x1x128xf32>
    %cst_143 = arith.constant 0.000000e+00 : f32
    %274 = vector.broadcast %cst_143 : f32 to vector<1x1x1x128xf32>
    %275 = arith.maximumf %273, %274 : vector<1x1x1x128xf32>
    %276 = vector.broadcast %269 : vector<1x1x1x128xf32> to vector<1x4x4x128xf32>
    %277 = arith.subf %258, %276 : vector<1x4x4x128xf32>
    %cst_144 = arith.constant 9.99999974E-6 : f32
    %278 = vector.broadcast %cst_144 : f32 to vector<1x1x1x128xf32>
    %279 = arith.addf %275, %278 : vector<1x1x1x128xf32>
    %280 = math.rsqrt %279 : vector<1x1x1x128xf32>
    %281 = vector.broadcast %280 : vector<1x1x1x128xf32> to vector<1x4x4x128xf32>
    %282 = arith.mulf %277, %281 : vector<1x4x4x128xf32>
    %c0_145 = arith.constant 0 : index
    %c0_146 = arith.constant 0 : index
    %283 = vector.load %arg12[%c0_145, %c0_146] : memref<1x128xf32, #tpu.memory_space<vmem>>, vector<1x128xf32>
    %284 = vector.shape_cast %283 : vector<1x128xf32> to vector<128xf32>
    %285 = vector.shape_cast %284 : vector<128xf32> to vector<1x1x1x128xf32>
    %286 = vector.broadcast %285 : vector<1x1x1x128xf32> to vector<1x4x4x128xf32>
    %287 = arith.mulf %282, %286 : vector<1x4x4x128xf32>
    %c0_147 = arith.constant 0 : index
    %c0_148 = arith.constant 0 : index
    %288 = vector.load %arg13[%c0_147, %c0_148] : memref<1x128xf32, #tpu.memory_space<vmem>>, vector<1x128xf32>
    %289 = vector.shape_cast %288 : vector<1x128xf32> to vector<128xf32>
    %290 = vector.shape_cast %289 : vector<128xf32> to vector<1x1x1x128xf32>
    %291 = vector.broadcast %290 : vector<1x1x1x128xf32> to vector<1x4x4x128xf32>
    %292 = arith.addf %287, %291 : vector<1x4x4x128xf32>
    %cst_149 = arith.constant 0.00999999977 : f32
    %293 = vector.broadcast %cst_149 : f32 to vector<1x4x4x128xf32>
    %294 = arith.mulf %293, %292 : vector<1x4x4x128xf32>
    %295 = arith.maximumf %292, %294 : vector<1x4x4x128xf32>
    %296 = vector.shape_cast %295 : vector<1x4x4x128xf32> to vector<1x2x2x4x128xf32>
    %297 = vector.extract_strided_slice %296 {offsets = [0, 0, 0, 0, 0], sizes = [1, 2, 1, 4, 128], strides = [1, 1, 1, 1, 1]} : vector<1x2x2x4x128xf32> to vector<1x2x1x4x128xf32>
    %298 = vector.shape_cast %297 : vector<1x2x1x4x128xf32> to vector<1x2x4x128xf32>
    %299 = vector.extract_strided_slice %296 {offsets = [0, 0, 1, 0, 0], sizes = [1, 2, 1, 4, 128], strides = [1, 1, 1, 1, 1]} : vector<1x2x2x4x128xf32> to vector<1x2x1x4x128xf32>
    %300 = vector.shape_cast %299 : vector<1x2x1x4x128xf32> to vector<1x2x4x128xf32>
    %301 = arith.addf %298, %300 : vector<1x2x4x128xf32>
    %302 = vector.shape_cast %301 : vector<1x2x4x128xf32> to vector<1x2x2x256xf32>
    %303 = vector.extract_strided_slice %302 {offsets = [0, 0, 0, 0], sizes = [1, 2, 2, 128], strides = [1, 1, 1, 1]} : vector<1x2x2x256xf32> to vector<1x2x2x128xf32>
    %304 = vector.extract_strided_slice %302 {offsets = [0, 0, 0, 128], sizes = [1, 2, 2, 128], strides = [1, 1, 1, 1]} : vector<1x2x2x256xf32> to vector<1x2x2x128xf32>
    %305 = arith.addf %303, %304 : vector<1x2x2x128xf32>
    %cst_150 = arith.constant 2.500000e-01 : f32
    %306 = vector.broadcast %cst_150 : f32 to vector<1x2x2x128xf32>
    %307 = arith.mulf %305, %306 : vector<1x2x2x128xf32>
    %308 = vector.shape_cast %307 : vector<1x2x2x128xf32> to vector<1x512xf32>
    %c0_151 = arith.constant 0 : index
    %c0_152 = arith.constant 0 : index
    %309 = vector.load %arg14[%c0_151, %c0_152] : memref<512x128xf32, #tpu.memory_space<vmem>>, vector<512x128xf32>
    %cst_153 = arith.constant dense<0.000000e+00> : vector<1x128xf32>
    %310 = tpu.matmul %308, %309, %cst_153 {dimension_numbers = #tpu.dot_dimension_numbers<[1], [0], [0], [1], [0, 0, 1, 1], [], []>} : vector<1x512xf32>, vector<512x128xf32>, vector<1x128xf32> -> vector<1x128xf32>
    %c0_154 = arith.constant 0 : index
    %c0_155 = arith.constant 0 : index
    %311 = vector.load %arg15[%c0_154, %c0_155] : memref<1x128xf32, #tpu.memory_space<vmem>>, vector<1x128xf32>
    %312 = vector.shape_cast %311 : vector<1x128xf32> to vector<128xf32>
    %313 = vector.shape_cast %312 : vector<128xf32> to vector<1x128xf32>
    %314 = arith.addf %310, %313 : vector<1x128xf32>
    %315 = vector.shape_cast %314 : vector<1x128xf32> to vector<1x1x128xf32>
    %c0_156 = arith.constant 0 : index
    %c0_157 = arith.constant 0 : index
    %c0_158 = arith.constant 0 : index
    %316 = vector.load %arg16[%c0_156, %c0_157, %c0_158] : memref<1x1x128xf32, #tpu.memory_space<vmem>>, vector<1x1x128xf32>
    tpu.vector_store %arg16[%c0_156, %c0_157, %c0_158], %315 {strides = array<i32>} : memref<1x1x128xf32, #tpu.memory_space<vmem>>, vector<1x1x128xf32>,
    return
  }
  func.func @transform_0(%arg0: i32) -> (i32, i32, i32, i32) {
    %c0_i32 = arith.constant 0 : i32
    %c0_i32_0 = arith.constant 0 : i32
    %c0_i32_1 = arith.constant 0 : i32
    %c0_i32_2 = arith.constant 0 : i32
    return %arg0, %c0_i32, %c0_i32_0, %c0_i32_1 : i32, i32, i32, i32
  }
  func.func @transform_1(%arg0: i32) -> (i32, i32) {
    %c0_i32 = arith.constant 0 : i32
    %c0_i32_0 = arith.constant 0 : i32
    %c0_i32_1 = arith.constant 0 : i32
    return %c0_i32, %c0_i32_0 : i32, i32
  }
  func.func @transform_2(%arg0: i32) -> (i32, i32) {
    %c0_i32 = arith.constant 0 : i32
    %c0_i32_0 = arith.constant 0 : i32
    %c0_i32_1 = arith.constant 0 : i32
    return %c0_i32, %c0_i32_0 : i32, i32
  }
  func.func @transform_3(%arg0: i32) -> (i32, i32) {
    %c0_i32 = arith.constant 0 : i32
    %c0_i32_0 = arith.constant 0 : i32
    %c0_i32_1 = arith.constant 0 : i32
    return %c0_i32, %c0_i32_0 : i32, i32
  }
  func.func @transform_4(%arg0: i32) -> (i32, i32) {
    %c0_i32 = arith.constant 0 : i32
    %c0_i32_0 = arith.constant 0 : i32
    %c0_i32_1 = arith.constant 0 : i32
    return %c0_i32, %c0_i32_0 : i32, i32
  }
  func.func @transform_5(%arg0: i32) -> (i32, i32, i32, i32) {
    %c0_i32 = arith.constant 0 : i32
    %c0_i32_0 = arith.constant 0 : i32
    %c0_i32_1 = arith.constant 0 : i32
    %c0_i32_2 = arith.constant 0 : i32
    %c0_i32_3 = arith.constant 0 : i32
    return %c0_i32, %c0_i32_0, %c0_i32_1, %c0_i32_2 : i32, i32, i32, i32
  }
  func.func @transform_6(%arg0: i32) -> (i32, i32) {
    %c0_i32 = arith.constant 0 : i32
    %c0_i32_0 = arith.constant 0 : i32
    %c0_i32_1 = arith.constant 0 : i32
    return %c0_i32, %c0_i32_0 : i32, i32
  }
  func.func @transform_7(%arg0: i32) -> (i32, i32) {
    %c0_i32 = arith.constant 0 : i32
    %c0_i32_0 = arith.constant 0 : i32
    %c0_i32_1 = arith.constant 0 : i32
    return %c0_i32, %c0_i32_0 : i32, i32
  }
  func.func @transform_8(%arg0: i32) -> (i32, i32) {
    %c0_i32 = arith.constant 0 : i32
    %c0_i32_0 = arith.constant 0 : i32
    %c0_i32_1 = arith.constant 0 : i32
    return %c0_i32, %c0_i32_0 : i32, i32
  }
  func.func @transform_9(%arg0: i32) -> (i32, i32, i32, i32) {
    %c0_i32 = arith.constant 0 : i32
    %c0_i32_0 = arith.constant 0 : i32
    %c0_i32_1 = arith.constant 0 : i32
    %c0_i32_2 = arith.constant 0 : i32
    %c0_i32_3 = arith.constant 0 : i32
    return %c0_i32, %c0_i32_0, %c0_i32_1, %c0_i32_2 : i32, i32, i32, i32
  }
  func.func @transform_10(%arg0: i32) -> (i32, i32) {
    %c0_i32 = arith.constant 0 : i32
    %c0_i32_0 = arith.constant 0 : i32
    %c0_i32_1 = arith.constant 0 : i32
    return %c0_i32, %c0_i32_0 : i32, i32
  }
  func.func @transform_11(%arg0: i32) -> (i32, i32) {
    %c0_i32 = arith.constant 0 : i32
    %c0_i32_0 = arith.constant 0 : i32
    %c0_i32_1 = arith.constant 0 : i32
    return %c0_i32, %c0_i32_0 : i32, i32
  }
  func.func @transform_12(%arg0: i32) -> (i32, i32) {
    %c0_i32 = arith.constant 0 : i32
    %c0_i32_0 = arith.constant 0 : i32
    %c0_i32_1 = arith.constant 0 : i32
    return %c0_i32, %c0_i32_0 : i32, i32
  }
  func.func @transform_13(%arg0: i32) -> (i32, i32) {
    %c0_i32 = arith.constant 0 : i32
    %c0_i32_0 = arith.constant 0 : i32
    %c0_i32_1 = arith.constant 0 : i32
    return %c0_i32, %c0_i32_0 : i32, i32
  }
  func.func @transform_14(%arg0: i32) -> (i32, i32) {
    %c0_i32 = arith.constant 0 : i32
    %c0_i32_0 = arith.constant 0 : i32
    %c0_i32_1 = arith.constant 0 : i32
    return %c0_i32, %c0_i32_0 : i32, i32
  }
  func.func @transform_15(%arg0: i32) -> (i32, i32, i32) {
    %c0_i32 = arith.constant 0 : i32
    %c0_i32_0 = arith.constant 0 : i32
    %c0_i32_1 = arith.constant 0 : i32
    return %arg0, %c0_i32, %c0_i32_0 : i32, i32, i32
  }
}

</mosaic_0001>

<bundles_post_ra>
// kernel: net_forward.1
= control target key start
LH: loop header
LB: loop body
LE: loop exit
PB: predicated region body
PF: predicated region fallthrough
CT: control target
= control target key end

     0   :  { %s9176_s0 = inlined_call_operand.vmem [shape: f32[2,16,16,36], index: 0, kind: input, shape index: {}]   ;;  %s9177_s1 = inlined_call_operand.vmem [shape: f32[36,128], index: 1, kind: input, shape index: {}]   ;;  %s9178_s2 = inlined_call_operand.vmem [shape: f32[1,128], index: 2, kind: input, shape index: {}]   ;;  %s9179_s3 = inlined_call_operand.vmem [shape: f32[1,128], index: 3, kind: input, shape index: {}]   ;;  %s9180_s4 = inlined_call_operand.vmem [shape: f32[1,128], index: 4, kind: input, shape index: {}]   ;;  %s9181_s5 = inlined_call_operand.vmem [shape: f32[3,3,128,128], index: 5, kind: input, shape index: {}]   ;;  %s9182_s6 = inlined_call_operand.vmem [shape: f32[1,128], index: 6, kind: input, shape index: {}]   ;;  %s9183_s7 = inlined_call_operand.vmem [shape: f32[1,128], index: 7, kind: input, shape index: {}]   ;;  %s9184_s8 = inlined_call_operand.vmem [shape: f32[1,128], index: 8, kind: input, shape index: {}]   ;;  %s9185_s9 = inlined_call_operand.vmem [shape: f32[3,3,128,128], index: 9, kind: input, shape index: {}]   ;;  %s9186_s10 = inlined_call_operand.vmem [shape: f32[1,128], index: 10, kind: input, shape index: {}]   ;;  %s9187_s11 = inlined_call_operand.vmem [shape: f32[1,128], index: 11, kind: input, shape index: {}]   ;;  %s9188_s12 = inlined_call_operand.vmem [shape: f32[1,128], index: 12, kind: input, shape index: {}]   ;;  %s9189_s13 = inlined_call_operand.vmem [shape: f32[512,128], index: 13, kind: input, shape index: {}]   ;;  %s9190_s14 = inlined_call_operand.vmem [shape: f32[1,128], index: 14, kind: input, shape index: {}]   ;;  %s9191_s15 = inlined_call_operand.hbm [shape: f32[2,1,128], index: 15, kind: output, shape index: {}]  }
   0x1   :  { %9201 = sst [smem:[#allocation12_spill]] %s9176_s0 }
   0x2   :  { %9202 = sst [smem:[#allocation13_spill]] %s9177_s1 }
   0x3   :  { %20 = vsyncpa [#allocation3], 0 }
   0x4   :  { %22 = vsyncpa [#allocation3 + $0x1], 0  ;;  %s6966_s18 = smov 0   ;;  %s6968_s19 = smov 0  }
   0x5   :  { %s6970_s20 = smov 0   ;;  %s6972_s21 = smov 0  }
   0x6 LB: > { %9203 = sst [smem:[#allocation5_spill]] %s6877_s20  ;;  %s6987_s22 = sadd.s32 4294967295, %s6881_s21   ;;  %s6881_s21 = sphi %s6972_s21, %s9221_s21   ;;  %s6877_s20 = sphi %s6970_s20, %s9223_s20   ;;  %s6873_s19 = sphi %s6968_s19, %s9225_s19   ;;  %s6869_s18 = sphi %s6966_s18, %s9224_s18  }
   0x7   : > { %s4434_s23 = sadd.s32 4294967294, %s6881_s21   ;;  %s6991_s24 = sadd.s32 1, %s6881_s21  }
   0x8   : > { %9204 = sst [smem:[#allocation6_spill]] %s6991_s24  ;;  %s355_s25 = sadd.s32 1, %s6877_s20 }
   0x9   : > { %s352_s26 = ssub.s32 %s6881_s21, %s6991_s24  ;;  %p365_p0 = scmp.ne.s32.totalorder %s6877_s20, %s6873_s19 }
   0xa   : > { %p353_p1 = scmp.eq.s32.totalorder %s352_s26, 0  ;;  %p366_p2 = scmp.eq.s32.totalorder %s6987_s22, 1 }
   0xb   : > { %p371_p3 = scmp.ne.s32.totalorder %s6873_s19, %s6869_s18  ;;  %p372_p4 = scmp.eq.s32.totalorder %s4434_s23, 1 }
   0xc   : > { %s7002_s27 = scalar_select %p353_p1, %s6877_s20, %s355_s25  }
   0xd   : > { %p7004_p5 = por %p366_p2, %p365_p0  ;;  %p7008_p6 = por %p372_p4, %p371_p3 }
   0xe   : > { %9205 = sst [smem:[#allocation7_spill]] %s7002_s27  ;;  %p4437_p7 = scmp.ge.s32.totalorder %s6881_s21, 1 }
   0xf   : > { %p440_p8 = scmp.lt.s32.totalorder %s6881_s21, 3 }
  0x11   : > { %p441_p9 = pnand %p4437_p7, %p440_p8 }
  0x13   : > { %444 = sbr.rel (%p441_p9) target bundleno = 1784 (0x6f8), region = 80 }
  0x1a   : > { %s9208_s1 = sld [smem:[#allocation13_spill]]  ;;  %p487_p10 = scmp.lt.s32.totalorder %s6987_s22, 1  ;;  %vm529_vm0 = vcmask 293888   ;;  %vm626_vm1 = vcmask 1043456   ;;  %v7105_v39 = vld [vmem:[%s9178_s2] ss:$0 sm:$0xff] }
  0x1b   : > { %s9209_s0 = sld [smem:[#allocation12_spill]]  ;;  %v4476_v53 = vld [vmem:[%s9181_s5 + $0x80] sm:$0xff]  ;;  %v4477_v54 = vld [vmem:[%s9181_s5 + $0x88] sm:$0xff]  ;;  %vm3097_vm4 = vcmask 1040384   ;;  %vm3113_vm5 = vcmask 1042432   ;;  %s4786_s26 = sshll.u32 %s6987_s22, 4 }
  0x1c   : > { %s488_s24 = scalar_select %p487_p10, %s6987_s22, 1  ;;  %v6052_v56 = vpack.c.bf16 %v4477_v54, %v4476_v53 }
  0x1d   : > { %s9134_s16 = scalar_lea.hbm %s9191_s15, %s4786_s26  ;;  %s6885_s22 = smov [#allocation2]  }
  0x1e   : > { %s4789_s30 = sshll.u32 %s488_s24, 8  ;;  %6053 = vmatprep.subr.bf16.mxu1 %v6052_v56  ;;  %s6823_s25 = sshll.u32 %s6885_s22, 4  ;;  %s6824_s25 = int_to_ptr.vmem [resolvable:$false] %s6823_s25 }
  0x1f   : > { %6055 = vmatpush3.bf16.msra.mxu1 %v6052_v56 }
  0x20   : > { %v524_v0 = vld [vmem:[%s9208_s1] sm:$0xff]  ;;  %v525_v1 = vld [vmem:[%s9208_s1 + $0x8] sm:$0xff]  ;;  %v526_v2 = vld [vmem:[%s9208_s1 + $0x10] sm:$0xff] }
  0x21   : > { %v6044_v3 = vpack.c.bf16 %v525_v1, %v524_v0  ;;  %v527_v4 = vld [vmem:[%s9208_s1 + $0x18] sm:$0xff]  ;;  %s7031_s23 = scalar_lea.vmem %s9209_s0, %s4789_s30  ;;  %v528_v6 = vld [vmem:[%s9208_s1 + $0x20] sm:$0xf]  ;;  %s6825_s1 = scalar_lea.vmem %s6824_s25, 32 }
  0x22   : > { %v6048_v5 = vpack.c.bf16 %v527_v4, %v526_v2  ;;  %v492_v7 = vld [vmem:[%s7031_s23] sm:$0xff]  ;;  %v493_v8 = vld [vmem:[%s7031_s23 + $0x8] sm:$0xff]  ;;  %v494_v9 = vld [vmem:[%s7031_s23 + $0x10] sm:$0xff] }
  0x23   : > { %6045 = vmatprep.subr.bf16.mxu0 %v6044_v3  ;;  %5285 = vmatprep.mubr.msk.f32.mxu0 %vm529_vm0, %v492_v7  ;;  %v495_v10 = vld [vmem:[%s7031_s23 + $0x18] sm:$0xff]  ;;  %v496_v11 = vld [vmem:[%s7031_s23 + $0x20] sm:$0xff]  ;;  %v497_v12 = vld [vmem:[%s7031_s23 + $0x28] sm:$0xff] }
  0x24   : > { %6047 = vmatpush3.bf16.msra.mxu0 %v6044_v3  ;;  %v498_v13 = vld [vmem:[%s7031_s23 + $0x30] sm:$0xff]  ;;  %v499_v14 = vld [vmem:[%s7031_s23 + $0x38] sm:$0xff]  ;;  %v500_v15 = vld [vmem:[%s7031_s23 + $0x40] sm:$0xff] }
  0x25   : > { %6049 = vmatprep.subr.bf16.mxu0 %v6048_v5  ;;  %v501_v16 = vld [vmem:[%s7031_s23 + $0x48] sm:$0xff]  ;;  %v502_v17 = vld [vmem:[%s7031_s23 + $0x50] sm:$0xff]  ;;  %v503_v18 = vld [vmem:[%s7031_s23 + $0x58] sm:$0xff] }
  0x26   : > { %v504_v19 = vld [vmem:[%s7031_s23 + $0x60] sm:$0xff]  ;;  %v505_v20 = vld [vmem:[%s7031_s23 + $0x68] sm:$0xff]  ;;  %v506_v21 = vld [vmem:[%s7031_s23 + $0x70] sm:$0xff] }
  0x27   : > { %v507_v22 = vld [vmem:[%s7031_s23 + $0x78] sm:$0xff]  ;;  %v508_v23 = vld [vmem:[%s7031_s23 + $0x80] sm:$0xff]  ;;  %v509_v24 = vld [vmem:[%s7031_s23 + $0x88] sm:$0xff] }
  0x28   : > { %6051 = vmatpush3.bf16.msra.mxu0 %v6048_v5  ;;  %v510_v25 = vld [vmem:[%s7031_s23 + $0x90] sm:$0xff]  ;;  %v511_v26 = vld [vmem:[%s7031_s23 + $0x98] sm:$0xff]  ;;  %v512_v27 = vld [vmem:[%s7031_s23 + $0xa0] sm:$0xff] }
  0x29   : > { %5283 = vmatprep.subr.msk.mxu0 %vm626_vm1, %v528_v6  ;;  %v513_v28 = vld [vmem:[%s7031_s23 + $0xa8] sm:$0xff]  ;;  %v514_v29 = vld [vmem:[%s7031_s23 + $0xb0] sm:$0xff]  ;;  %v515_v30 = vld [vmem:[%s7031_s23 + $0xb8] sm:$0xff] }
  0x2a   : > { %v516_v31 = vld [vmem:[%s7031_s23 + $0xc0] sm:$0xff]  ;;  %v517_v32 = vld [vmem:[%s7031_s23 + $0xc8] sm:$0xff]  ;;  %v518_v33 = vld [vmem:[%s7031_s23 + $0xd0] sm:$0xff] }
  0x2b   : > { %v519_v34 = vld [vmem:[%s7031_s23 + $0xd8] sm:$0xff]  ;;  %v520_v35 = vld [vmem:[%s7031_s23 + $0xe0] sm:$0xff]  ;;  %v521_v36 = vld [vmem:[%s7031_s23 + $0xe8] sm:$0xff] }
  0x2c   : > { %5284 = vmatpush3.msk.msra.mxu0 %vm626_vm1, %v528_v6  ;;  %v522_v37 = vld [vmem:[%s7031_s23 + $0xf0] sm:$0xff]  ;;  %v523_v38 = vld [vmem:[%s7031_s23 + $0xf8] sm:$0xff]  ;;  %s485_s23 = sand.u32 1, %s6873_s19  }
  0x2d   : > { %5286 = vmatmul.mubr.msk.f32.vlgmr.msra.gmra.mrb[0].mxu0 %vm529_vm0, %v493_v8  ;;  %v4478_v4 = vld [vmem:[%s9181_s5 + $0x90] sm:$0xff]  ;;  %v4479_v5 = vld [vmem:[%s9181_s5 + $0x98] sm:$0xff]  ;;  %s486_s20 = scalar_lea.vmem [#allocation2], %s485_s23  ;;  %s4367_s17 = scalar_lea.sflag [#allocation3], %s485_s23 }
  0x2e   : > { %5288 = vmatprep.mubr.msk.f32.mxu0 %vm529_vm0, %v494_v9  ;;  %v6056_v8 = vpack.c.bf16 %v4479_v5, %v4478_v4  ;;  %s4379_s24 = sshll.u32 %s486_s20, 4  ;;  %s9136_s24 = int_to_ptr.vmem [resolvable:$true] %s4379_s24 }
  0x2f   : > { %s6819_s0 = scalar_lea.vmem %s9136_s24, 16  ;;  %p6826_p0 = scmp.lt.s32.totalorder %s9136_s24, %s6824_s25 }
  0x30   : > { %6057 = vmatprep.subr.bf16.mxu1 %v6056_v8  ;;  %p6820_p11 = scmp.ne.s32.totalorder %s9136_s24, %s6819_s0  ;;  %p6827_p1 = scmp.lt.s32.totalorder %s6825_s1, %s6819_s0 }
  0x31   : > { %5289 = vmatmul.mubr.msk.f32.gmra.mrb[2].mxu0 %vm529_vm0, %v495_v10  ;;  %6059 = vmatpush3.bf16.msra.mxu1 %v6056_v8 }
  0x32   : > { %5291 = vmatprep.mubr.msk.f32.mxu0 %vm529_vm0, %v496_v11  ;;  %p6821_p12 = pnand %p6820_p11, %p7004_p5  ;;  %p6828_p2 = por %p6827_p1, %p6826_p0 }
  0x34   : > { %p6822_p13 = pneg %p6821_p12 }
  0x35   : > { %5292 = vmatmul.mubr.msk.f32.gmra.mrb[4].mxu0 %vm529_vm0, %v497_v12 }
  0x36   : > { %5294 = vmatprep.mubr.msk.f32.mxu0 %vm529_vm0, %v498_v13  ;;  %p6829_p3 = pnand %p6828_p2, %p6822_p13 }
  0x39   : > { %5295 = vmatmul.mubr.msk.f32.gmra.mrb[6].mxu0 %vm529_vm0, %v499_v14 }
  0x3a   : > { %5297 = vmatprep.mubr.msk.f32.mxu0 %vm529_vm0, %v500_v15 }
  0x3d   : > { %5298 = vmatmul.mubr.msk.f32.gmra.mrb[8].mxu0 %vm529_vm0, %v501_v16 }
  0x3e   : > { %5300 = vmatprep.mubr.msk.f32.mxu0 %vm529_vm0, %v502_v17 }
  0x41   : > { %5301 = vmatmul.mubr.msk.f32.gmra.mrb[10].mxu0 %vm529_vm0, %v503_v18 }
  0x42   : > { %5303 = vmatprep.mubr.msk.f32.mxu0 %vm529_vm0, %v504_v19 }
  0x45   : > { %5304 = vmatmul.mubr.msk.f32.gmra.mrb[12].mxu0 %vm529_vm0, %v505_v20 }
  0x46   : > { %5306 = vmatprep.mubr.msk.f32.mxu0 %vm529_vm0, %v506_v21 }
  0x49   : > { %5307 = vmatmul.mubr.msk.f32.gmra.mrb[14].mxu0 %vm529_vm0, %v507_v22 }
  0x4a   : > { %5309 = vmatprep.mubr.msk.f32.mxu0 %vm529_vm0, %v508_v23 }
  0x4d   : > { %5310 = vmatmul.mubr.msk.f32.gmra.mrb[16].mxu0 %vm529_vm0, %v509_v24 }
  0x4e   : > { %5312 = vmatprep.mubr.msk.f32.mxu0 %vm529_vm0, %v510_v25 }
  0x51   : > { %5313 = vmatmul.mubr.msk.f32.gmra.mrb[18].mxu0 %vm529_vm0, %v511_v26 }
  0x52   : > { %5315 = vmatprep.mubr.msk.f32.mxu0 %vm529_vm0, %v512_v27 }
  0x55   : > { %5316 = vmatmul.mubr.msk.f32.gmra.mrb[20].mxu0 %vm529_vm0, %v513_v28 }
  0x56   : > { %5318 = vmatprep.mubr.msk.f32.mxu0 %vm529_vm0, %v514_v29 }
  0x59   : > { %5319 = vmatmul.mubr.msk.f32.gmra.mrb[22].mxu0 %vm529_vm0, %v515_v30 }
  0x5a   : > { %5321 = vmatprep.mubr.msk.f32.mxu0 %vm529_vm0, %v516_v31 }
  0x5d   : > { %5322 = vmatmul.mubr.msk.f32.gmra.mrb[24].mxu0 %vm529_vm0, %v517_v32 }
  0x5e   : > { %5324 = vmatprep.mubr.msk.f32.mxu0 %vm529_vm0, %v518_v33 }
  0x61   : > { %5325 = vmatmul.mubr.msk.f32.gmra.mrb[26].mxu0 %vm529_vm0, %v519_v34 }
  0x62   : > { %5327 = vmatprep.mubr.msk.f32.mxu0 %vm529_vm0, %v520_v35 }
  0x65   : > { %5328 = vmatmul.mubr.msk.f32.gmra.mrb[28].mxu0 %vm529_vm0, %v521_v36 }
  0x66   : > { %5330 = vmatprep.mubr.msk.f32.mxu0 %vm529_vm0, %v522_v37 }
  0x69   : > { %5331 = vmatmul.mubr.msk.f32.gmra.mrb[30].mxu0 %vm529_vm0, %v523_v38 }
 0x100   : > { %v5287_v40 = vpop.f32.mrb[0].mxu0 }
 0x101   : > { %v7108_v41 = vadd.f32 %v5287_v40, %v7105_v39  ;;  %v696_v42 = vpop.f32.mrb[1].mxu0 }
 0x102   : > { %v7111_v43 = vadd.f32 %v7105_v39, %v696_v42 }
 0x103   : > { %v1022_v44 = vmul.f32 %v7108_v41, %v7108_v41 }
 0x104   : > { %v894_v45 = vadd.f32 %v7108_v41, %v7111_v43  ;;  %v1021_v46 = vmul.f32 %v7111_v43, %v7111_v43  ;;  %v5290_v47 = vpop.f32.mrb[2].mxu0 }
 0x105   : > { %v7120_v48 = vadd.f32 %v5290_v47, %v7105_v39  ;;  %v706_v49 = vpop.f32.mrb[3].mxu0 }
 0x106   : > { %v895_v50 = vrot.slane %v894_v45, 4  ;;  %v1053_v51 = vadd.f32 %v1022_v44, %v1021_v46  ;;  %v7123_v52 = vadd.f32 %v7105_v39, %v706_v49 }
 0x107   : > { %v1024_v55 = vmul.f32 %v7120_v48, %v7120_v48 }
 0x108   : > { %v896_v57 = vadd.f32 %v895_v50, %v894_v45  ;;  %v1054_v58 = vrot.slane %v1053_v51, 4  ;;  %v901_v59 = vadd.f32 %v7120_v48, %v7123_v52  ;;  %v1023_v60 = vmul.f32 %v7123_v52, %v7123_v52  ;;  %v5293_v61 = vpop.f32.mrb[4].mxu0 }
 0x109   : > { %v7138_v62 = vadd.f32 %v5293_v61, %v7105_v39  ;;  %v716_v63 = vpop.f32.mrb[5].mxu0 }
 0x10a   : > { %v897_v0 = vrot.slane %v896_v57, 2  ;;  %v1055_v1 = vadd.f32 %v1054_v58, %v1053_v51  ;;  %v902_v2 = vrot.slane %v901_v59, 4  ;;  %v1060_v3 = vadd.f32 %v1024_v55, %v1023_v60 }
 0x10b   : > { %v1026_v6 = vmul.f32 %v7138_v62, %v7138_v62  ;;  %v7149_v7 = vadd.f32 %v7105_v39, %v716_v63 }
 0x10c   : > { %v898_v9 = vadd.f32 %v897_v0, %v896_v57  ;;  %v1056_v10 = vrot.slane %v1055_v1, 2  ;;  %v903_v11 = vadd.f32 %v902_v2, %v901_v59  ;;  %v1061_v12 = vrot.slane %v1060_v3, 4  ;;  %v5296_v13 = vpop.f32.mrb[6].mxu0 }
 0x10d   : > { %v908_v14 = vadd.f32 %v7138_v62, %v7149_v7  ;;  %v1025_v15 = vmul.f32 %v7149_v7, %v7149_v7  ;;  %v7156_v16 = vadd.f32 %v5296_v13, %v7105_v39  ;;  %v726_v17 = vpop.f32.mrb[7].mxu0 }
 0x10e   : > { %v899_v18 = vrot.slane %v898_v9, 1  ;;  %v1057_v19 = vadd.f32 %v1056_v10, %v1055_v1  ;;  %v904_v20 = vrot.slane %v903_v11, 2  ;;  %v1062_v21 = vadd.f32 %v1061_v12, %v1060_v3 }
 0x10f   : > { %v909_v22 = vrot.slane %v908_v14, 4  ;;  %v1067_v23 = vadd.f32 %v1026_v6, %v1025_v15  ;;  %v1028_v24 = vmul.f32 %v7156_v16, %v7156_v16  ;;  %v7161_v25 = vadd.f32 %v7105_v39, %v726_v17 }
 0x110   : > { %v900_v26 = vadd.f32 %v899_v18, %v898_v9  ;;  %v1058_v27 = vrot.slane %v1057_v19, 1  ;;  %v905_v28 = vadd.f32 %v904_v20, %v903_v11  ;;  %v1063_v29 = vrot.slane %v1062_v21, 2  ;;  %v5299_v30 = vpop.f32.mrb[8].mxu0 }
 0x111   : > { %v910_v31 = vadd.f32 %v909_v22, %v908_v14  ;;  %v1068_v32 = vrot.slane %v1067_v23, 4  ;;  %v915_v33 = vadd.f32 %v7156_v16, %v7161_v25  ;;  %v1027_v34 = vmul.f32 %v7161_v25, %v7161_v25  ;;  %v736_v35 = vpop.f32.mrb[9].mxu0 }
 0x112   : > { %v1059_v36 = vadd.f32 %v1058_v27, %v1057_v19  ;;  %v906_v37 = vrot.slane %v905_v28, 1  ;;  %v1064_v38 = vadd.f32 %v1063_v29, %v1062_v21  ;;  %v7168_v40 = vadd.f32 %v5299_v30, %v7105_v39 }
 0x113   : > { %v911_v42 = vrot.slane %v910_v31, 2  ;;  %v1069_v44 = vadd.f32 %v1068_v32, %v1067_v23  ;;  %v916_v45 = vrot.slane %v915_v33, 4  ;;  %v1074_v46 = vadd.f32 %v1028_v24, %v1027_v34 }
 0x114   : > { %v907_v47 = vadd.f32 %v906_v37, %v905_v28  ;;  %v1065_v49 = vrot.slane %v1064_v38, 1  ;;  %v1030_v50 = vmul.f32 %v7168_v40, %v7168_v40  ;;  %v7173_v51 = vadd.f32 %v7105_v39, %v736_v35  ;;  %v5302_v53 = vpop.f32.mrb[10].mxu0 }
 0x115   : > { %v912_v54 = vadd.f32 %v911_v42, %v910_v31  ;;  %v1070_v55 = vrot.slane %v1069_v44, 2  ;;  %v917_v56 = vadd.f32 %v916_v45, %v915_v33  ;;  %v1075_v57 = vrot.slane %v1074_v46, 4  ;;  %v746_v58 = vpop.f32.mrb[11].mxu0 }
 0x116   : > { %v1006_v59 = vadd.f32 %v907_v47, %v900_v26  ;;  %v1066_v60 = vadd.f32 %v1065_v49, %v1064_v38  ;;  %v922_v61 = vadd.f32 %v7168_v40, %v7173_v51  ;;  %v1029_v63 = vmul.f32 %v7173_v51, %v7173_v51 }
 0x117   : > { %v913_v0 = vrot.slane %v912_v54, 1  ;;  %v1071_v1 = vadd.f32 %v1070_v55, %v1069_v44  ;;  %v918_v2 = vrot.slane %v917_v56, 2  ;;  %v1076_v3 = vadd.f32 %v1075_v57, %v1074_v46 }
 0x118   : > { %v1165_v4 = vadd.f32 %v1066_v60, %v1059_v36  ;;  %v923_v5 = vrot.slane %v922_v61, 4  ;;  %v1081_v6 = vadd.f32 %v1030_v50, %v1029_v63  ;;  %v7180_v8 = vadd.f32 %v5302_v53, %v7105_v39  ;;  %v5305_v9 = vpop.f32.mrb[12].mxu0 }
 0x119   : > { %v914_v10 = vadd.f32 %v913_v0, %v912_v54  ;;  %v1072_v11 = vrot.slane %v1071_v1, 1  ;;  %v919_v12 = vadd.f32 %v918_v2, %v917_v56  ;;  %v1077_v13 = vrot.slane %v1076_v3, 2  ;;  %v756_v14 = vpop.f32.mrb[13].mxu0 }
 0x11a   : > { %v924_v15 = vadd.f32 %v923_v5, %v922_v61  ;;  %v1082_v17 = vrot.slane %v1081_v6, 4  ;;  %v1032_v18 = vmul.f32 %v7180_v8, %v7180_v8  ;;  %v7185_v19 = vadd.f32 %v7105_v39, %v746_v58 }
 0x11b   : > { %v1007_v20 = vadd.f32 %v1006_v59, %v914_v10  ;;  %v1073_v21 = vadd.f32 %v1072_v11, %v1071_v1  ;;  %v920_v22 = vrot.slane %v919_v12, 1  ;;  %v1078_v23 = vadd.f32 %v1077_v13, %v1076_v3 }
 0x11c   : > { %v925_v24 = vrot.slane %v924_v15, 2  ;;  %v1083_v26 = vadd.f32 %v1082_v17, %v1081_v6  ;;  %v929_v27 = vadd.f32 %v7180_v8, %v7185_v19  ;;  %v1031_v28 = vmul.f32 %v7185_v19, %v7185_v19  ;;  %v5308_v29 = vpop.f32.mrb[14].mxu0 }
 0x11d   : > { %v1166_v30 = vadd.f32 %v1165_v4, %v1073_v21  ;;  %v921_v31 = vadd.f32 %v920_v22, %v919_v12  ;;  %v1079_v32 = vrot.slane %v1078_v23, 1  ;;  %v7192_v33 = vadd.f32 %v5305_v9, %v7105_v39  ;;  %v766_v34 = vpop.f32.mrb[15].mxu0 }
 0x11e   : > { %v926_v35 = vadd.f32 %v925_v24, %v924_v15  ;;  %v1084_v36 = vrot.slane %v1083_v26, 2  ;;  %v930_v37 = vrot.slane %v929_v27, 4  ;;  %v1088_v38 = vadd.f32 %v1032_v18, %v1031_v28 }
 0x11f   : > { %v1008_v42 = vadd.f32 %v1007_v20, %v921_v31  ;;  %v1080_v44 = vadd.f32 %v1079_v32, %v1078_v23  ;;  %v1034_v45 = vmul.f32 %v7192_v33, %v7192_v33  ;;  %v7197_v46 = vadd.f32 %v7105_v39, %v756_v14 }
 0x120   : > { %v927_v47 = vrot.slane %v926_v35, 1  ;;  %v1085_v49 = vadd.f32 %v1084_v36, %v1083_v26  ;;  %v931_v50 = vadd.f32 %v930_v37, %v929_v27  ;;  %v1089_v53 = vrot.slane %v1088_v38, 4  ;;  %v5311_v54 = vpop.f32.mrb[16].mxu0 }
 0x121   : > { %v1167_v55 = vadd.f32 %v1166_v30, %v1080_v44  ;;  %v936_v56 = vadd.f32 %v7192_v33, %v7197_v46  ;;  %v1033_v57 = vmul.f32 %v7197_v46, %v7197_v46  ;;  %v7204_v58 = vadd.f32 %v5308_v29, %v7105_v39  ;;  %v776_v59 = vpop.f32.mrb[17].mxu0 }
 0x122   : > { %v928_v60 = vadd.f32 %v927_v47, %v926_v35  ;;  %v1086_v61 = vrot.slane %v1085_v49, 1  ;;  %v932_v63 = vrot.slane %v931_v50, 2  ;;  %v1090_v0 = vadd.f32 %v1089_v53, %v1088_v38 }
 0x123   : > { %v937_v1 = vrot.slane %v936_v56, 4  ;;  %v1095_v2 = vadd.f32 %v1034_v45, %v1033_v57  ;;  %v1036_v3 = vmul.f32 %v7204_v58, %v7204_v58  ;;  %v7209_v4 = vadd.f32 %v7105_v39, %v766_v34 }
 0x124   : > { %v1009_v5 = vadd.f32 %v1008_v42, %v928_v60  ;;  %v1087_v6 = vadd.f32 %v1086_v61, %v1085_v49  ;;  %v933_v9 = vadd.f32 %v932_v63, %v931_v50  ;;  %v1091_v10 = vrot.slane %v1090_v0, 2  ;;  %v5314_v11 = vpop.f32.mrb[18].mxu0 }
 0x125   : > { %v938_v12 = vadd.f32 %v937_v1, %v936_v56  ;;  %v1096_v13 = vrot.slane %v1095_v2, 4  ;;  %v943_v14 = vadd.f32 %v7204_v58, %v7209_v4  ;;  %v1035_v15 = vmul.f32 %v7209_v4, %v7209_v4  ;;  %v786_v17 = vpop.f32.mrb[19].mxu0 }
 0x126   : > { %v1168_v18 = vadd.f32 %v1167_v55, %v1087_v6  ;;  %v934_v20 = vrot.slane %v933_v9, 1  ;;  %v1092_v21 = vadd.f32 %v1091_v10, %v1090_v0  ;;  %v7216_v22 = vadd.f32 %v5311_v54, %v7105_v39 }
 0x127   : > { %v939_v23 = vrot.slane %v938_v12, 2  ;;  %v1097_v24 = vadd.f32 %v1096_v13, %v1095_v2  ;;  %v944_v26 = vrot.slane %v943_v14, 4  ;;  %v1102_v27 = vadd.f32 %v1036_v3, %v1035_v15 }
 0x128   : > { %v935_v28 = vadd.f32 %v934_v20, %v933_v9  ;;  %v1093_v29 = vrot.slane %v1092_v21, 1  ;;  %v1038_v30 = vmul.f32 %v7216_v22, %v7216_v22  ;;  %v7221_v31 = vadd.f32 %v7105_v39, %v776_v59  ;;  %v5317_v32 = vpop.f32.mrb[20].mxu0 }
 0x129   : > { %v940_v34 = vadd.f32 %v939_v23, %v938_v12  ;;  %v1098_v35 = vrot.slane %v1097_v24, 2  ;;  %v945_v36 = vadd.f32 %v944_v26, %v943_v14  ;;  %v1103_v37 = vrot.slane %v1102_v27, 4  ;;  %v796_v38 = vpop.f32.mrb[21].mxu0 }
 0x12a   : > { %v1010_v42 = vadd.f32 %v1009_v5, %v935_v28  ;;  %v1094_v44 = vadd.f32 %v1093_v29, %v1092_v21  ;;  %v950_v45 = vadd.f32 %v7216_v22, %v7221_v31  ;;  %v1037_v47 = vmul.f32 %v7221_v31, %v7221_v31 }
 0x12b   : > { %v941_v49 = vrot.slane %v940_v34, 1  ;;  %v1099_v50 = vadd.f32 %v1098_v35, %v1097_v24  ;;  %v946_v53 = vrot.slane %v945_v36, 2  ;;  %v1104_v54 = vadd.f32 %v1103_v37, %v1102_v27 }
 0x12c   : > { %v1169_v55 = vadd.f32 %v1168_v18, %v1094_v44  ;;  %v951_v56 = vrot.slane %v950_v45, 4  ;;  %v1109_v57 = vadd.f32 %v1038_v30, %v1037_v47  ;;  %v7228_v59 = vadd.f32 %v5314_v11, %v7105_v39  ;;  %v5320_v60 = vpop.f32.mrb[22].mxu0 }
 0x12d   : > { %v942_v61 = vadd.f32 %v941_v49, %v940_v34  ;;  %v1100_v63 = vrot.slane %v1099_v50, 1  ;;  %v947_v0 = vadd.f32 %v946_v53, %v945_v36  ;;  %v1105_v1 = vrot.slane %v1104_v54, 2  ;;  %v806_v2 = vpop.f32.mrb[23].mxu0 }
 0x12e   : > { %v952_v3 = vadd.f32 %v951_v56, %v950_v45  ;;  %v1110_v5 = vrot.slane %v1109_v57, 4  ;;  %v1040_v6 = vmul.f32 %v7228_v59, %v7228_v59  ;;  %v7233_v9 = vadd.f32 %v7105_v39, %v786_v17 }
 0x12f   : > { %v1011_v10 = vadd.f32 %v1010_v42, %v942_v61  ;;  %v1101_v12 = vadd.f32 %v1100_v63, %v1099_v50  ;;  %v948_v13 = vrot.slane %v947_v0, 1  ;;  %v1106_v14 = vadd.f32 %v1105_v1, %v1104_v54 }
 0x130   : > { %v953_v11 = vrot.slane %v952_v3, 2  ;;  %v1111_v15 = vadd.f32 %v1110_v5, %v1109_v57  ;;  %v957_v18 = vadd.f32 %v7228_v59, %v7233_v9  ;;  %v1039_v20 = vmul.f32 %v7233_v9, %v7233_v9  ;;  %v5323_v21 = vpop.f32.mrb[24].mxu0 }
 0x131   : > { %v1170_v23 = vadd.f32 %v1169_v55, %v1101_v12  ;;  %v949_v24 = vadd.f32 %v948_v13, %v947_v0  ;;  %v1107_v26 = vrot.slane %v1106_v14, 1  ;;  %v7240_v27 = vadd.f32 %v5317_v32, %v7105_v39  ;;  %v816_v17 = vpop.f32.mrb[25].mxu0 }
 0x132   : > { %v954_v28 = vadd.f32 %v953_v11, %v952_v3  ;;  %v1112_v29 = vrot.slane %v1111_v15, 2  ;;  %v958_v30 = vrot.slane %v957_v18, 4  ;;  %v1116_v34 = vadd.f32 %v1040_v6, %v1039_v20 }
 0x133   : > { %v1012_v35 = vadd.f32 %v1011_v10, %v949_v24  ;;  %v1108_v36 = vadd.f32 %v1107_v26, %v1106_v14  ;;  %v1042_v37 = vmul.f32 %v7240_v27, %v7240_v27  ;;  %v7245_v42 = vadd.f32 %v7105_v39, %v796_v38 }
 0x134   : > { %v955_v44 = vrot.slane %v954_v28, 1  ;;  %v1113_v45 = vadd.f32 %v1112_v29, %v1111_v15  ;;  %v959_v47 = vadd.f32 %v958_v30, %v957_v18  ;;  %v1117_v49 = vrot.slane %v1116_v34, 4  ;;  %v5326_v50 = vpop.f32.mrb[26].mxu0 }
 0x135   : > { %v1171_v32 = vadd.f32 %v1170_v23, %v1108_v36  ;;  %v964_v53 = vadd.f32 %v7240_v27, %v7245_v42  ;;  %v1041_v54 = vmul.f32 %v7245_v42, %v7245_v42  ;;  %v7252_v55 = vadd.f32 %v5320_v60, %v7105_v39  ;;  %v826_v56 = vpop.f32.mrb[27].mxu0 }
 0x136   : > { %v956_v57 = vadd.f32 %v955_v44, %v954_v28  ;;  %v1114_v61 = vrot.slane %v1113_v45, 1  ;;  %v960_v38 = vrot.slane %v959_v47, 2  ;;  %v1118_v63 = vadd.f32 %v1117_v49, %v1116_v34 }
 0x137   : > { %v965_v0 = vrot.slane %v964_v53, 4  ;;  %v1123_v1 = vadd.f32 %v1042_v37, %v1041_v54  ;;  %v1044_v3 = vmul.f32 %v7252_v55, %v7252_v55  ;;  %v7257_v5 = vadd.f32 %v7105_v39, %v806_v2 }
 0x138   : > { %v1013_v6 = vadd.f32 %v1012_v35, %v956_v57  ;;  %v1115_v10 = vadd.f32 %v1114_v61, %v1113_v45  ;;  %v961_v12 = vadd.f32 %v960_v38, %v959_v47  ;;  %v1119_v13 = vrot.slane %v1118_v63, 2  ;;  %v5329_v14 = vpop.f32.mrb[28].mxu0 }
 0x139   : > { %v966_v60 = vadd.f32 %v965_v0, %v964_v53  ;;  %v1124_v11 = vrot.slane %v1123_v1, 4  ;;  %v971_v15 = vadd.f32 %v7252_v55, %v7257_v5  ;;  %v1043_v18 = vmul.f32 %v7257_v5, %v7257_v5  ;;  %v836_v20 = vpop.f32.mrb[29].mxu0 }
 0x13a   : > { %v1172_v23 = vadd.f32 %v1171_v32, %v1115_v10  ;;  %v962_v24 = vrot.slane %v961_v12, 1  ;;  %v1120_v26 = vadd.f32 %v1119_v13, %v1118_v63  ;;  %v7264_v2 = vadd.f32 %v5323_v21, %v7105_v39 }
 0x13b   : > { %v967_v28 = vrot.slane %v966_v60, 2  ;;  %v1125_v29 = vadd.f32 %v1124_v11, %v1123_v1  ;;  %v972_v30 = vrot.slane %v971_v15, 4  ;;  %v1130_v34 = vadd.f32 %v1044_v3, %v1043_v18 }
 0x13c   : > { %v963_v35 = vadd.f32 %v962_v24, %v961_v12  ;;  %v1121_v36 = vrot.slane %v1120_v26, 1  ;;  %v1046_v37 = vmul.f32 %v7264_v2, %v7264_v2  ;;  %v7269_v44 = vadd.f32 %v7105_v39, %v816_v17  ;;  %v5332_v45 = vpop.f32.mrb[30].mxu0 }
 0x13d   : > { %v968_v47 = vadd.f32 %v967_v28, %v966_v60  ;;  %v1126_v49 = vrot.slane %v1125_v29, 2  ;;  %v973_v32 = vadd.f32 %v972_v30, %v971_v15  ;;  %v1131_v53 = vrot.slane %v1130_v34, 4  ;;  %v846_v54 = vpop.f32.mrb[31].mxu0 }
 0x13e   : > { %v1014_v21 = vadd.f32 %v1013_v6, %v963_v35  ;;  %v1122_v57 = vadd.f32 %v1121_v36, %v1120_v26  ;;  %v978_v61 = vadd.f32 %v7264_v2, %v7269_v44  ;;  %v1045_v38 = vmul.f32 %v7269_v44, %v7269_v44 }
 0x13f   : > { %v969_v63 = vrot.slane %v968_v47, 1  ;;  %v1127_v0 = vadd.f32 %v1126_v49, %v1125_v29  ;;  %v974_v1 = vrot.slane %v973_v32, 2  ;;  %v1132_v3 = vadd.f32 %v1131_v53, %v1130_v34 }
 0x140   : > { %v1173_v17 = vadd.f32 %v1172_v23, %v1122_v57  ;;  %v979_v10 = vrot.slane %v978_v61, 4  ;;  %v1137_v12 = vadd.f32 %v1046_v37, %v1045_v38  ;;  %v7276_v13 = vadd.f32 %v5326_v50, %v7105_v39 }
 0x141   : > { %v970_v60 = vadd.f32 %v969_v63, %v968_v47  ;;  %v1128_v11 = vrot.slane %v1127_v0, 1  ;;  %v975_v6 = vadd.f32 %v974_v1, %v973_v32  ;;  %v1133_v15 = vrot.slane %v1132_v3, 2 }
 0x142   : > { %v980_v18 = vadd.f32 %v979_v10, %v978_v61  ;;  %v1138_v24 = vrot.slane %v1137_v12, 4  ;;  %v1048_v26 = vmul.f32 %v7276_v13, %v7276_v13  ;;  %v7281_v28 = vadd.f32 %v7105_v39, %v826_v56 }
 0x143   : > { %v1015_v29 = vadd.f32 %v1014_v21, %v970_v60  ;;  %v1129_v30 = vadd.f32 %v1128_v11, %v1127_v0  ;;  %v976_v23 = vrot.slane %v975_v6, 1  ;;  %v1134_v34 = vadd.f32 %v1133_v15, %v1132_v3 }
 0x144   : > { %v981_v35 = vrot.slane %v980_v18, 2  ;;  %v1139_v36 = vadd.f32 %v1138_v24, %v1137_v12  ;;  %v985_v50 = vadd.f32 %v7276_v13, %v7281_v28  ;;  %v1047_v37 = vmul.f32 %v7281_v28, %v7281_v28 }
 0x145   : > { %v1174_v47 = vadd.f32 %v1173_v17, %v1129_v30  ;;  %v977_v49 = vadd.f32 %v976_v23, %v975_v6  ;;  %v1135_v32 = vrot.slane %v1134_v34, 1  ;;  %v7288_v53 = vadd.f32 %v5329_v14, %v7105_v39 }
 0x146   : > { %v982_v56 = vadd.f32 %v981_v35, %v980_v18  ;;  %v1140_v57 = vrot.slane %v1139_v36, 2  ;;  %v986_v21 = vrot.slane %v985_v50, 4  ;;  %v1144_v61 = vadd.f32 %v1048_v26, %v1047_v37 }
 0x147   : > { %v1016_v38 = vadd.f32 %v1015_v29, %v977_v49  ;;  %v1136_v63 = vadd.f32 %v1135_v32, %v1134_v34  ;;  %v1050_v0 = vmul.f32 %v7288_v53, %v7288_v53  ;;  %v7293_v1 = vadd.f32 %v7105_v39, %v836_v20  ;;  %v4480_v34 = vld [vmem:[%s9181_s5 + $0xa0] sm:$0xff] }
 0x148   : > { %v983_v3 = vrot.slane %v982_v56, 1  ;;  %v1141_v10 = vadd.f32 %v1140_v57, %v1139_v36  ;;  %v987_v17 = vadd.f32 %v986_v21, %v985_v50  ;;  %v1145_v12 = vrot.slane %v1144_v61, 4 }
 0x149   : > { %v1175_v60 = vadd.f32 %v1174_v47, %v1136_v63  ;;  %v992_v14 = vadd.f32 %v7288_v53, %v7293_v1  ;;  %v1049_v11 = vmul.f32 %v7293_v1, %v7293_v1  ;;  %v7300_v6 = vadd.f32 %v5332_v45, %v7105_v39  ;;  %v4481_v45 = vld [vmem:[%s9181_s5 + $0xa8] sm:$0xff] }
 0x14a   : > { %v984_v15 = vadd.f32 %v983_v3, %v982_v56  ;;  %v1142_v18 = vrot.slane %v1141_v10, 1  ;;  %v988_v24 = vrot.slane %v987_v17, 2  ;;  %v1146_v26 = vadd.f32 %v1145_v12, %v1144_v61  ;;  %v4483_v56 = vld [vmem:[%s9181_s5 + $0xb8] sm:$0xff]  ;;  %v4485_v12 = vld [vmem:[%s9181_s5 + $0xc8] sm:$0xff] }
 0x14b   : > { %v993_v20 = vrot.slane %v992_v14, 4  ;;  %v1151_v29 = vadd.f32 %v1050_v0, %v1049_v11  ;;  %v1052_v30 = vmul.f32 %v7300_v6, %v7300_v6  ;;  %v7305_v23 = vadd.f32 %v7105_v39, %v846_v54  ;;  %v4482_v54 = vld [vmem:[%s9181_s5 + $0xb0] sm:$0xff] }
 0x14c   : > { %v1017_v35 = vadd.f32 %v1016_v38, %v984_v15  ;;  %v1143_v36 = vadd.f32 %v1142_v18, %v1141_v10  ;;  %v989_v50 = vadd.f32 %v988_v24, %v987_v17  ;;  %v1147_v37 = vrot.slane %v1146_v26, 2  ;;  %v4484_v17 = vld [vmem:[%s9181_s5 + $0xc0] sm:$0xff] }
 0x14d   : > { %v994_v47 = vadd.f32 %v993_v20, %v992_v14  ;;  %v1152_v49 = vrot.slane %v1151_v29, 4  ;;  %v999_v32 = vadd.f32 %v7300_v6, %v7305_v23  ;;  %v1051_v39 = vmul.f32 %v7305_v23, %v7305_v23 }
 0x14e   : > { %v1176_v57 = vadd.f32 %v1175_v60, %v1143_v36  ;;  %v990_v21 = vrot.slane %v989_v50, 1  ;;  %v1148_v61 = vadd.f32 %v1147_v37, %v1146_v26  ;;  %v6060_v38 = vpack.c.bf16 %v4481_v45, %v4480_v34 }
 0x14f   : > { %v995_v63 = vrot.slane %v994_v47, 2  ;;  %v1153_v0 = vadd.f32 %v1152_v49, %v1151_v29  ;;  %v1000_v3 = vrot.slane %v999_v32, 4  ;;  %v1158_v10 = vadd.f32 %v1052_v30, %v1051_v39 }
 0x150   : > { %v991_v14 = vadd.f32 %v990_v21, %v989_v50  ;;  %v1149_v11 = vrot.slane %v1148_v61, 1  ;;  %6061 = vmatprep.subr.bf16.mxu1 %v6060_v38  ;;  %v6064_v15 = vpack.c.bf16 %v4483_v56, %v4482_v54  ;;  %v6068_v30 = vpack.c.bf16 %v4485_v12, %v4484_v17  ;;  %v4486_v50 = vld [vmem:[%s9181_s5 + $0xd0] sm:$0xff] }
 0x151   : > { %v996_v60 = vadd.f32 %v995_v63, %v994_v47  ;;  %v1154_v18 = vrot.slane %v1153_v0, 2  ;;  %v1001_v24 = vadd.f32 %v1000_v3, %v999_v32  ;;  %v1159_v26 = vrot.slane %v1158_v10, 4  ;;  %6063 = vmatpush3.bf16.msra.mxu1 %v6060_v38  ;;  %v4487_v47 = vld [vmem:[%s9181_s5 + $0xd8] sm:$0xff]  ;;  %v4488_v3 = vld [vmem:[%s9181_s5 + $0xe0] sm:$0xff] }
 0x152   : > { %v1018_v20 = vadd.f32 %v1017_v35, %v991_v14  ;;  %v1150_v29 = vadd.f32 %v1149_v11, %v1148_v61  ;;  %6065 = vmatprep.subr.bf16.mxu1 %v6064_v15  ;;  %v9195_v56 = vmov 0.0   ;;  %v6072_v21 = vpack.c.bf16 %v4487_v47, %v4486_v50  ;;  %v4490_v11 = vld [vmem:[%s9181_s5 + $0xf0] sm:$0xff] }
 0x153   : > { %v997_v34 = vrot.slane %v996_v60, 1  ;;  %v1155_v45 = vadd.f32 %v1154_v18, %v1153_v0  ;;  %v1002_v36 = vrot.slane %v1001_v24, 2  ;;  %v1160_v37 = vadd.f32 %v1159_v26, %v1158_v10  ;;  %5365 = vmatprep.mubr.f32.mxu1 %v9195_v56  ;;  %v4491_v18 = vld [vmem:[%s9181_s5 + $0xf8] sm:$0xff]  ;;  %v1676_v26 = vld [vmem:[%s9181_s5 + $0x8] sm:$0xff] }
 0x154   : > { %v1177_v49 = vadd.f32 %v1176_v57, %v1150_v29  ;;  %v4489_v57 = vld [vmem:[%s9181_s5 + $0xe8] sm:$0xff] }
 0x155   : > { %v998_v32 = vadd.f32 %v997_v34, %v996_v60  ;;  %v1156_v39 = vrot.slane %v1155_v45, 1  ;;  %v1003_v54 = vadd.f32 %v1002_v36, %v1001_v24  ;;  %v1161_v35 = vrot.slane %v1160_v37, 2  ;;  %6067 = vmatpush3.bf16.msra.mxu1 %v6064_v15  ;;  %v1675_v24 = vld [vmem:[%s9181_s5] sm:$0xff] }
 0x156   : > { %6069 = vmatprep.subr.bf16.mxu1 %v6068_v30  ;;  %v6076_v14 = vpack.c.bf16 %v4489_v57, %v4488_v3  ;;  %v7356_v34 = vpack.c.bf16 %v1676_v26, %v1675_v24 }
 0x157   : > { %v1019_v61 = vadd.f32 %v1018_v20, %v998_v32  ;;  %v1157_v38 = vadd.f32 %v1156_v39, %v1155_v45  ;;  %v1004_v63 = vrot.slane %v1003_v54, 1  ;;  %v1162_v0 = vadd.f32 %v1161_v35, %v1160_v37 }
 0x158   : > { %9210 = vst [vmem:[#allocation8_spill] sm:$0xff] %v7356_v34 }
 0x159   : > { %v1178_v10 = vadd.f32 %v1177_v49, %v1157_v38  ;;  %v1005_v17 = vadd.f32 %v1004_v63, %v1003_v54  ;;  %v1163_v12 = vrot.slane %v1162_v0, 1  ;;  %6071 = vmatpush3.bf16.msra.mxu1 %v6068_v30  ;;  %v6080_v30 = vpack.c.bf16 %v4491_v18, %v4490_v11 }
 0x15a   : > { %6073 = vmatprep.subr.bf16.mxu1 %v6072_v21  ;;  %v1412_v38 = vlaneseq }
 0x15b   : > { %v1020_v15 = vadd.f32 %v1019_v61, %v1005_v17  ;;  %v1164_v60 = vadd.f32 %v1163_v12, %v1162_v0 }
 0x15d   : > { %v1179_v20 = vadd.f32 %v1178_v10, %v1164_v60  ;;  %v7354_v29 = vmul.f32 0.00390625, %v1020_v15  ;;  %6075 = vmatpush3.bf16.msra.mxu1 %v6072_v21 }
 0x15e   : > { %6077 = vmatprep.subr.bf16.mxu1 %v6076_v14 }
 0x15f   : > { %v1181_v45 = vmul.f32 0.00390625, %v1179_v20  ;;  %v1182_v36 = vmul.f32 %v7354_v29, %v7354_v29  ;;  %v1213_v37 = vsub.f32 %v7293_v1, %v7354_v29  ;;  %v1215_v50 = vsub.f32 %v7305_v23, %v7354_v29 }
 0x160   : > { %v1185_v47 = vsub.f32 %v7111_v43, %v7354_v29  ;;  %v1186_v49 = vsub.f32 %v7108_v41, %v7354_v29  ;;  %v1187_v32 = vsub.f32 %v7123_v52, %v7354_v29  ;;  %v1188_v39 = vsub.f32 %v7120_v48, %v7354_v29 }
 0x161   : > { %v1183_v54 = vsub.f32 %v1181_v45, %v1182_v36  ;;  %v1189_v35 = vsub.f32 %v7149_v7, %v7354_v29  ;;  %v1190_v1 = vsub.f32 %v7138_v62, %v7354_v29  ;;  %v1191_v23 = vsub.f32 %v7161_v25, %v7354_v29  ;;  %6079 = vmatpush3.bf16.msra.mxu1 %v6076_v14 }
 0x162   : > { %v1192_v41 = vsub.f32 %v7156_v16, %v7354_v29  ;;  %v1193_v43 = vsub.f32 %v7173_v51, %v7354_v29  ;;  %v1194_v48 = vsub.f32 %v7168_v40, %v7354_v29  ;;  %v1195_v52 = vsub.f32 %v7185_v19, %v7354_v29  ;;  %6081 = vmatprep.subr.bf16.mxu1 %v6080_v30 }
 0x163   : > { %v1184_v7 = vmax.f32 %v1183_v54, 0.0  ;;  %v1196_v62 = vsub.f32 %v7180_v8, %v7354_v29  ;;  %v1197_v25 = vsub.f32 %v7197_v46, %v7354_v29  ;;  %v1198_v16 = vsub.f32 %v7192_v33, %v7354_v29 }
 0x164   : > { %v1199_v51 = vsub.f32 %v7209_v4, %v7354_v29  ;;  %v1200_v40 = vsub.f32 %v7204_v58, %v7354_v29  ;;  %v1201_v19 = vsub.f32 %v7221_v31, %v7354_v29  ;;  %v1202_v21 = vsub.f32 %v7216_v22, %v7354_v29 }
 0x165   : > { %v1217_v61 = vadd.f32 1e-05, %v1184_v7  ;;  %v1203_v8 = vsub.f32 %v7233_v9, %v7354_v29  ;;  %v1204_v46 = vsub.f32 %v7228_v59, %v7354_v29  ;;  %v1205_v33 = vsub.f32 %v7245_v42, %v7354_v29  ;;  %6083 = vmatpush3.bf16.msra.mxu1 %v6080_v30 }
 0x166   : > { %v1206_v58 = vsub.f32 %v7240_v27, %v7354_v29  ;;  %v1207_v4 = vsub.f32 %v7257_v5, %v7354_v29  ;;  %v1208_v22 = vsub.f32 %v7252_v55, %v7354_v29  ;;  %v1209_v31 = vsub.f32 %v7269_v44, %v7354_v29  ;;  %6085 = vmatprep.subr.bf16.mxu1 %v7356_v34 }
 0x167   : > { %6813 = vrsqrt.f32 %v1217_v61  ;;  %v1210_v59 = vsub.f32 %v7264_v2, %v7354_v29  ;;  %v1211_v9 = vsub.f32 %v7281_v28, %v7354_v29  ;;  %v1212_v27 = vsub.f32 %v7276_v13, %v7354_v29  ;;  %v7428_v2 = vld [vmem:[%s9179_s3] ss:$0 sm:$0xff] }
 0x168   : > { %v1214_v42 = vsub.f32 %v7288_v53, %v7354_v29  ;;  %v1216_v55 = vsub.f32 %v7300_v6, %v7354_v29  ;;  %v6884_v5 = vmov 1966171168   ;;  %v7430_v28 = vshrl.u32 %v1412_v38, 7  ;;  %v7435_v53 = vld [vmem:[%s9180_s4] ss:$0 sm:$0xff] }
 0x169   : > { %v1410_v44 = vunpack.c.l.s4 %v6884_v5 }
 0x16a   : > { %9211 = vst [vmem:[#allocation9_spill] sm:$0xff] %v7430_v28 }
 0x16b   : > { %v1411_v0 = vunpack.c.0.s8 %v1410_v44 }
 0x171   : > { %v6814_v63 = vpop.eup %6813 }
 0x172   : > { %v1247_v3 = vmul.f32 %v6814_v63, %v1213_v37  ;;  %v1249_v13 = vmul.f32 %v6814_v63, %v1215_v50  ;;  %v1219_v57 = vmul.f32 %v6814_v63, %v1185_v47  ;;  %v1220_v10 = vmul.f32 %v6814_v63, %v1186_v49 }
 0x173   : > { %v1221_v6 = vmul.f32 %v6814_v63, %v1187_v32  ;;  %v1222_v17 = vmul.f32 %v6814_v63, %v1188_v39  ;;  %v1223_v12 = vmul.f32 %v6814_v63, %v1189_v35  ;;  %v1224_v14 = vmul.f32 %v6814_v63, %v1190_v1 }
 0x174   : > { %v1286_v11 = vmul.f32 %v7428_v2, %v1247_v3  ;;  %v1288_v15 = vmul.f32 %v7428_v2, %v1249_v13  ;;  %v1225_v60 = vmul.f32 %v6814_v63, %v1191_v23  ;;  %v1226_v18 = vmul.f32 %v6814_v63, %v1192_v41 }
 0x175   : > { %v1227_v24 = vmul.f32 %v6814_v63, %v1193_v43  ;;  %v1228_v26 = vmul.f32 %v6814_v63, %v1194_v48  ;;  %v1229_v20 = vmul.f32 %v6814_v63, %v1195_v52  ;;  %v1230_v29 = vmul.f32 %v6814_v63, %v1196_v62 }
 0x176   : > { %v1325_v30 = vadd.f32 %v7435_v53, %v1286_v11  ;;  %v1327_v45 = vadd.f32 %v7435_v53, %v1288_v15  ;;  %v1231_v36 = vmul.f32 %v6814_v63, %v1197_v25  ;;  %v1232_v37 = vmul.f32 %v6814_v63, %v1198_v16 }
 0x177   : > { %v1233_v50 = vmul.f32 %v6814_v63, %v1199_v51  ;;  %v1234_v47 = vmul.f32 %v6814_v63, %v1200_v40  ;;  %v1235_v49 = vmul.f32 %v6814_v63, %v1201_v19  ;;  %v1236_v32 = vmul.f32 %v6814_v63, %v1202_v21 }
 0x178   : > { %v1357_v39 = vmul.f32 0.01, %v1325_v30  ;;  %v1359_v54 = vmul.f32 0.01, %v1327_v45  ;;  %v1237_v35 = vmul.f32 %v6814_v63, %v1203_v8  ;;  %v1238_v1 = vmul.f32 %v6814_v63, %v1204_v46 }
 0x179   : > { %v1239_v23 = vmul.f32 %v6814_v63, %v1205_v33  ;;  %v1240_v41 = vmul.f32 %v6814_v63, %v1206_v58  ;;  %v1241_v43 = vmul.f32 %v6814_v63, %v1207_v4  ;;  %v1242_v48 = vmul.f32 %v6814_v63, %v1208_v22 }
 0x17a   : > { %v1389_v52 = vmax.f32 %v1325_v30, %v1357_v39  ;;  %v1391_v7 = vmax.f32 %v1327_v45, %v1359_v54  ;;  %v1243_v62 = vmul.f32 %v6814_v63, %v1209_v31  ;;  %v1244_v61 = vmul.f32 %v6814_v63, %v1210_v59 }
 0x17b   : > { %v1245_v5 = vmul.f32 %v6814_v63, %v1211_v9  ;;  %v1246_v44 = vmul.f32 %v6814_v63, %v1212_v27  ;;  %v1248_v25 = vmul.f32 %v6814_v63, %v1214_v42  ;;  %v1250_v16 = vmul.f32 %v6814_v63, %v1216_v55 }
 0x17c   : > { %v7442_v51 = vsub.s32 %v1411_v0, %v7430_v28  ;;  %v7444_v40 = vadd.f32 %v1391_v7, %v1389_v52  ;;  %v1258_v19 = vmul.f32 %v7428_v2, %v1219_v57  ;;  %v1259_v21 = vmul.f32 %v7428_v2, %v1220_v10 }
 0x17d   : > { %v1260_v8 = vmul.f32 %v7428_v2, %v1221_v6  ;;  %v1261_v46 = vmul.f32 %v7428_v2, %v1222_v17  ;;  %v1262_v33 = vmul.f32 %v7428_v2, %v1223_v12  ;;  %v1263_v58 = vmul.f32 %v7428_v2, %v1224_v14 }
 0x17e   : > { %9212 = vst [vmem:[#allocation10_spill] sm:$0xff] %v7442_v51  ;;  %9213 = vst [vmem:[#allocation11_spill] sm:$0xff] %v7444_v40  ;;  %v1264_v4 = vmul.f32 %v7428_v2, %v1225_v60  ;;  %v1265_v22 = vmul.f32 %v7428_v2, %v1226_v18  ;;  %v1266_v31 = vmul.f32 %v7428_v2, %v1227_v24 }
 0x17f   : > { %v1267_v59 = vmul.f32 %v7428_v2, %v1228_v26  ;;  %v1268_v9 = vmul.f32 %v7428_v2, %v1229_v20  ;;  %v1269_v27 = vmul.f32 %v7428_v2, %v1230_v29  ;;  %v1270_v42 = vmul.f32 %v7428_v2, %v1231_v36 }
 0x180   : > { %v1271_v55 = vmul.f32 %v7428_v2, %v1232_v37  ;;  %v1272_v38 = vmul.f32 %v7428_v2, %v1233_v50  ;;  %v1273_v63 = vmul.f32 %v7428_v2, %v1234_v47  ;;  %v1274_v0 = vmul.f32 %v7428_v2, %v1235_v49 }
 0x181   : > { %v1275_v3 = vmul.f32 %v7428_v2, %v1236_v32  ;;  %v1276_v13 = vmul.f32 %v7428_v2, %v1237_v35  ;;  %v1277_v57 = vmul.f32 %v7428_v2, %v1238_v1  ;;  %v1278_v10 = vmul.f32 %v7428_v2, %v1239_v23 }
 0x182   : > { %v1279_v6 = vmul.f32 %v7428_v2, %v1240_v41  ;;  %v1280_v17 = vmul.f32 %v7428_v2, %v1241_v43  ;;  %v1281_v12 = vmul.f32 %v7428_v2, %v1242_v48  ;;  %v1282_v14 = vmul.f32 %v7428_v2, %v1243_v62 }
 0x183   : > { %v1283_v11 = vmul.f32 %v7428_v2, %v1244_v61  ;;  %v1284_v15 = vmul.f32 %v7428_v2, %v1245_v5  ;;  %v1287_v60 = vmul.f32 %v7428_v2, %v1248_v25  ;;  %v1285_v18 = vmul.f32 %v7428_v2, %v1246_v44 }
 0x184   : > { %v1289_v24 = vmul.f32 %v7428_v2, %v1250_v16  ;;  %v7477_v26 = vadd.f32 %v7435_v53, %v1258_v19  ;;  %v7480_v20 = vadd.f32 %v7435_v53, %v1259_v21  ;;  %v7483_v29 = vadd.f32 %v7435_v53, %v1260_v8 }
 0x185   : > { %v7486_v30 = vadd.f32 %v7435_v53, %v1261_v46  ;;  %v7489_v45 = vadd.f32 %v7435_v53, %v1262_v33  ;;  %v7492_v36 = vadd.f32 %v7435_v53, %v1263_v58  ;;  %v7495_v2 = vadd.f32 %v7435_v53, %v1264_v4 }
 0x186   : > { %v7498_v37 = vadd.f32 %v7435_v53, %v1265_v22  ;;  %v7501_v50 = vadd.f32 %v7435_v53, %v1266_v31  ;;  %v7504_v47 = vadd.f32 %v7435_v53, %v1267_v59  ;;  %v7507_v49 = vadd.f32 %v7435_v53, %v1268_v9 }
 0x187   : > { %v7510_v32 = vadd.f32 %v7435_v53, %v1269_v27  ;;  %v7513_v39 = vadd.f32 %v7435_v53, %v1270_v42  ;;  %v7516_v54 = vadd.f32 %v7435_v53, %v1271_v55  ;;  %v7519_v35 = vadd.f32 %v7435_v53, %v1272_v38 }
 0x188   : > { %v7522_v1 = vadd.f32 %v7435_v53, %v1273_v63  ;;  %v7525_v23 = vadd.f32 %v7435_v53, %v1274_v0  ;;  %v7528_v41 = vadd.f32 %v7435_v53, %v1275_v3  ;;  %v7531_v43 = vadd.f32 %v7435_v53, %v1276_v13 }
 0x189   : > { %v7534_v48 = vadd.f32 %v7435_v53, %v1277_v57  ;;  %v7537_v52 = vadd.f32 %v7435_v53, %v1278_v10  ;;  %v7540_v7 = vadd.f32 %v7435_v53, %v1279_v6  ;;  %v7543_v62 = vadd.f32 %v7435_v53, %v1280_v17 }
 0x18a   : > { %v7546_v61 = vadd.f32 %v7435_v53, %v1281_v12  ;;  %v7549_v5 = vadd.f32 %v7435_v53, %v1282_v14  ;;  %v7552_v44 = vadd.f32 %v7435_v53, %v1283_v11  ;;  %v7555_v25 = vadd.f32 %v7435_v53, %v1284_v15 }
 0x18b   : > { %v7558_v16 = vadd.f32 %v7435_v53, %v1287_v60  ;;  %v7561_v19 = vadd.f32 %v7435_v53, %v1289_v24  ;;  %v7564_v21 = vmul.f32 0.01, %v7477_v26  ;;  %v7567_v8 = vadd.f32 %v7435_v53, %v1285_v18 }
 0x18c   : > { %v7570_v46 = vmul.f32 0.01, %v7480_v20  ;;  %v7573_v33 = vmul.f32 0.01, %v7483_v29  ;;  %v7576_v58 = vmul.f32 0.01, %v7486_v30 }
 0x18d   : > { %v1333_v4 = vmul.f32 0.01, %v7489_v45  ;;  %v1334_v22 = vmul.f32 0.01, %v7492_v36  ;;  %v1335_v31 = vmul.f32 0.01, %v7495_v2 }
 0x18e   : > { %v1336_v53 = vmul.f32 0.01, %v7498_v37  ;;  %v1337_v9 = vmul.f32 0.01, %v7501_v50  ;;  %v1338_v27 = vmul.f32 0.01, %v7504_v47  ;;  %v1363_v0 = vmax.f32 %v7483_v29, %v7573_v33 }
 0x18f   : > { %v1339_v55 = vmul.f32 0.01, %v7507_v49  ;;  %v1340_v38 = vmul.f32 0.01, %v7510_v32  ;;  %v1341_v63 = vmul.f32 0.01, %v7513_v39  ;;  %v1364_v10 = vmax.f32 %v7486_v30, %v7576_v58 }
 0x190   : > { %v1342_v3 = vmul.f32 0.01, %v7516_v54  ;;  %v1343_v13 = vmul.f32 0.01, %v7519_v35  ;;  %v1344_v57 = vmul.f32 0.01, %v7522_v1  ;;  %v1365_v14 = vmax.f32 %v7489_v45, %v1333_v4 }
 0x191   : > { %v1345_v6 = vmul.f32 0.01, %v7525_v23  ;;  %v1346_v17 = vmul.f32 0.01, %v7528_v41  ;;  %v1347_v12 = vmul.f32 0.01, %v7531_v43  ;;  %v1366_v18 = vmax.f32 %v7492_v36, %v1334_v22 }
 0x192   : > { %v1348_v11 = vmul.f32 0.01, %v7534_v48  ;;  %v1349_v15 = vmul.f32 0.01, %v7537_v52  ;;  %v1350_v60 = vmul.f32 0.01, %v7540_v7  ;;  %v1367_v33 = vmax.f32 %v7495_v2, %v1335_v31 }
 0x193   : > { %v1351_v24 = vmul.f32 0.01, %v7543_v62  ;;  %v1352_v29 = vmul.f32 0.01, %v7546_v61  ;;  %v1353_v30 = vmul.f32 0.01, %v7549_v5  ;;  %v1368_v56 = vmax.f32 %v7498_v37, %v1336_v53 }
 0x194   : > { %v1354_v58 = vmul.f32 0.01, %v7552_v44  ;;  %v1355_v45 = vmul.f32 0.01, %v7555_v25  ;;  %v1356_v4 = vmul.f32 0.01, %v7567_v8  ;;  %v1369_v22 = vmax.f32 %v7501_v50, %v1337_v9 }
 0x195   : > { %v1358_v42 = vmul.f32 0.01, %v7558_v16  ;;  %v1360_v36 = vmul.f32 0.01, %v7561_v19  ;;  %v1370_v59 = vmax.f32 %v7504_v47, %v1338_v27  ;;  %v1371_v28 = vmax.f32 %v7507_v49, %v1339_v55 }
 0x196   : > { %v1372_v2 = vmax.f32 %v7510_v32, %v1340_v38  ;;  %v1373_v31 = vmax.f32 %v7513_v39, %v1341_v63  ;;  %v1374_v40 = vmax.f32 %v7516_v54, %v1342_v3  ;;  %v1375_v34 = vmax.f32 %v7519_v35, %v1343_v13 }
 0x197   : > { %v1376_v37 = vmax.f32 %v7522_v1, %v1344_v57  ;;  %v1377_v53 = vmax.f32 %v7525_v23, %v1345_v6  ;;  %v1378_v51 = vmax.f32 %v7528_v41, %v1346_v17  ;;  %v1379_v50 = vmax.f32 %v7531_v43, %v1347_v12 }
 0x198   : > { %v1380_v47 = vmax.f32 %v7534_v48, %v1348_v11  ;;  %v1381_v49 = vmax.f32 %v7537_v52, %v1349_v15  ;;  %v1382_v32 = vmax.f32 %v7540_v7, %v1350_v60  ;;  %v1383_v39 = vmax.f32 %v7543_v62, %v1351_v24 }
 0x199   : > { %v1384_v54 = vmax.f32 %v7546_v61, %v1352_v29  ;;  %v1385_v35 = vmax.f32 %v7549_v5, %v1353_v30  ;;  %v1386_v1 = vmax.f32 %v7552_v44, %v1354_v58  ;;  %v1387_v23 = vmax.f32 %v7555_v25, %v1355_v45 }
 0x19a   : > { %v1388_v41 = vmax.f32 %v7567_v8, %v1356_v4  ;;  %v1390_v43 = vmax.f32 %v7558_v16, %v1358_v42  ;;  %v1392_v48 = vmax.f32 %v7561_v19, %v1360_v36  ;;  %v1395_v9 = vadd.f32 %v1367_v33, %v1365_v14 }
 0x19b   : > { %v1396_v52 = vadd.f32 %v1368_v56, %v1366_v18  ;;  %v1397_v27 = vadd.f32 %v1371_v28, %v1369_v22  ;;  %v1398_v7 = vadd.f32 %v1372_v2, %v1370_v59  ;;  %v1399_v55 = vadd.f32 %v1375_v34, %v1373_v31  ;;  %v9216_v56 = vld [vmem:[#allocation10_spill] sm:$0xff] }
 0x19c   : > { %v1400_v62 = vadd.f32 %v1376_v37, %v1374_v40  ;;  %v1401_v38 = vadd.f32 %v1379_v50, %v1377_v53  ;;  %v1402_v61 = vadd.f32 %v1380_v47, %v1378_v51  ;;  %v1403_v63 = vadd.f32 %v1383_v39, %v1381_v49  ;;  %v1677_v51 = vld [vmem:[%s9181_s5 + $0x10] sm:$0xff]  ;;  %v1678_v40 = vld [vmem:[%s9181_s5 + $0x18] sm:$0xff]  ;;  %v1680_v39 = vld [vmem:[%s9181_s5 + $0x28] sm:$0xff] }
 0x19d   : > { %v1404_v5 = vadd.f32 %v1384_v54, %v1382_v32  ;;  %v1405_v3 = vadd.f32 %v1387_v23, %v1385_v35  ;;  %v1406_v44 = vadd.f32 %v1388_v41, %v1386_v1  ;;  %v1408_v13 = vadd.f32 %v1392_v48, %v1390_v43  ;;  %v1679_v32 = vld [vmem:[%s9181_s5 + $0x20] sm:$0xff] }
 0x19e   : > { %v9214_v25 = vmax.f32 %v7477_v26, %v7564_v21  ;;  %v9215_v16 = vmax.f32 %v7480_v20, %v7570_v46  ;;  %v1429_v28 = vrot.slane %v1395_v9, %v9216_v56  ;;  %v1436_v34 = vrot.slane %v1396_v52, %v9216_v56 }
 0x19f   : > { %v1443_v59 = vrot.slane %v1397_v27, %v9216_v56  ;;  %v1450_v26 = vrot.slane %v1398_v7, %v9216_v56  ;;  %v1457_v21 = vrot.slane %v1399_v55, %v9216_v56  ;;  %v1464_v6 = vrot.slane %v1400_v62, %v9216_v56  ;;  %v9217_v62 = vld [vmem:[#allocation8_spill] sm:$0xff] }
 0x1a0   : > { %v1393_v8 = vadd.f32 %v1363_v0, %v9214_v25  ;;  %v1394_v19 = vadd.f32 %v1364_v10, %v9215_v16  ;;  %v1539_v42 = vrot.slane %v1429_v28, 4  ;;  %v1540_v0 = vrot.slane %v1436_v34, 4 }
 0x1a1   : > { %v1541_v57 = vrot.slane %v1443_v59, 4  ;;  %v1542_v10 = vrot.slane %v1450_v26, 4  ;;  %v6088_v11 = vpack.c.bf16 %v1678_v40, %v1677_v51  ;;  %v1543_v24 = vrot.slane %v1457_v21, 4  ;;  %v1681_v51 = vld [vmem:[%s9181_s5 + $0x30] sm:$0xff]  ;;  %v1682_v40 = vld [vmem:[%s9181_s5 + $0x38] sm:$0xff] }
 0x1a2   : > { %v1415_v20 = vrot.slane %v1393_v8, %v9216_v56  ;;  %v1422_v46 = vrot.slane %v1394_v19, %v9216_v56  ;;  %v1571_v14 = vadd.f32 %v1539_v42, %v1429_v28  ;;  %v1572_v15 = vadd.f32 %v1540_v0, %v1436_v34 }
 0x1a3   : > { %v1573_v60 = vadd.f32 %v1541_v57, %v1443_v59  ;;  %v1574_v18 = vadd.f32 %v1542_v10, %v1450_v26  ;;  %v1544_v58 = vrot.slane %v1464_v6, 4  ;;  %v1575_v22 = vadd.f32 %v1543_v24, %v1457_v21  ;;  %v1686_v24 = vld [vmem:[%s9181_s5 + $0x58] sm:$0xff] }
 0x1a4   : > { %v1537_v17 = vrot.slane %v1415_v20, 4  ;;  %v1538_v12 = vrot.slane %v1422_v46, 4  ;;  %v1587_v33 = vmul.f32 0.25, %v1571_v14  ;;  %v1588_v45 = vmul.f32 0.25, %v1572_v15 }
 0x1a5   : > { %v1589_v4 = vmul.f32 0.25, %v1573_v60  ;;  %v1590_v36 = vmul.f32 0.25, %v1574_v18  ;;  %v1576_v37 = vadd.f32 %v1544_v58, %v1464_v6  ;;  %v1471_v53 = vrot.slane %v1401_v38, %v9216_v56  ;;  %v1685_v18 = vld [vmem:[%s9181_s5 + $0x50] sm:$0xff] }
 0x1a6   : > { %v1569_v29 = vadd.f32 %v1537_v17, %v1415_v20  ;;  %v1570_v30 = vadd.f32 %v1538_v12, %v1422_v46  ;;  %v7659_v50 = vcombine.low %v1587_v33, %v1588_v45  ;;  %v1591_v49 = vmul.f32 0.25, %v1575_v22  ;;  %v1683_v17 = vld [vmem:[%s9181_s5 + $0x40] sm:$0xff]  ;;  %v1684_v12 = vld [vmem:[%s9181_s5 + $0x48] sm:$0xff] }
 0x1a7   : > { %v7661_v47 = vcombine.low %v1589_v4, %v1590_v36  ;;  %v1478_v54 = vrot.slane %v1402_v61, %v9216_v56  ;;  %v1592_v1 = vmul.f32 0.25, %v1576_v37  ;;  %v1545_v23 = vrot.slane %v1471_v53, 4  ;;  %v1687_v4 = vld [vmem:[%s9181_s5 + $0x60] sm:$0xff]  ;;  %v1688_v36 = vld [vmem:[%s9181_s5 + $0x68] sm:$0xff] }
 0x1a8   : > { %v1585_v2 = vmul.f32 0.25, %v1569_v29  ;;  %v1586_v31 = vmul.f32 0.25, %v1570_v30  ;;  %v1485_v41 = vrot.slane %v1403_v63, %v9216_v56  ;;  %v1492_v48 = vrot.slane %v1404_v5, %v9216_v56  ;;  %v9218_v5 = vld [vmem:[#allocation11_spill] sm:$0xff] }
 0x1a9   : > { %v1546_v43 = vrot.slane %v1478_v54, 4  ;;  %v1499_v9 = vrot.slane %v1405_v3, %v9216_v56  ;;  %v1506_v52 = vrot.slane %v1406_v44, %v9216_v56  ;;  %v7677_v27 = vcombine.low %v1591_v49, %v1592_v1  ;;  %v4500_v49 = vld [vmem:[%s9181_s5 + $0x108] sm:$0xff] }
 0x1aa   : > { %v7670_v35 = vcombine.low %v1585_v2, %v1586_v31  ;;  %v6092_v7 = vpack.c.bf16 %v1680_v39, %v1679_v32  ;;  %v1577_v55 = vadd.f32 %v1545_v23, %v1471_v53  ;;  %v1547_v61 = vrot.slane %v1485_v41, 4  ;;  %v1689_v2 = vld [vmem:[%s9181_s5 + $0x70] sm:$0xff]  ;;  %v1690_v31 = vld [vmem:[%s9181_s5 + $0x78] sm:$0xff]  ;;  %v4499_v53 = vld [vmem:[%s9181_s5 + $0x100] sm:$0xff] }
 0x1ab   : > { %v1578_v38 = vadd.f32 %v1546_v43, %v1478_v54  ;;  %v1548_v63 = vrot.slane %v1492_v48, 4  ;;  %v1549_v25 = vrot.slane %v1499_v9, 4  ;;  %v1513_v8 = vrot.slane %v9218_v5, %v9216_v56  ;;  %v4501_v39 = vld [vmem:[%s9181_s5 + $0x110] sm:$0xff]  ;;  %v4502_v54 = vld [vmem:[%s9181_s5 + $0x118] sm:$0xff]  ;;  %v4507_v5 = vld [vmem:[%s9181_s5 + $0x140] sm:$0xff] }
 0x1ac   : > { %5366 = vmatmul.mubr.f32.vlgmr.msra.gmra.mrb[0].mxu1 %v7670_v35  ;;  %v1520_v3 = vrot.slane %v1408_v13, %v9216_v56  ;;  %v1593_v44 = vmul.f32 0.25, %v1577_v55  ;;  %v1550_v16 = vrot.slane %v1506_v52, 4  ;;  %v1579_v28 = vadd.f32 %v1547_v61, %v1485_v41  ;;  %v9220_v1 = vld [vmem:[#allocation9_spill] sm:$0xff] }
 0x1ad   : > { %6087 = vmatpush3.bf16.msra.mxu1 %v9217_v62  ;;  %5368 = vmatprep.mubr.f32.mxu1 %v7659_v50  ;;  %v1594_v19 = vmul.f32 0.25, %v1578_v38  ;;  %v1580_v34 = vadd.f32 %v1548_v63, %v1492_v48  ;;  %v1581_v59 = vadd.f32 %v1549_v25, %v1499_v9  ;;  %v1551_v42 = vrot.slane %v1513_v8, 4  ;;  %v4503_v48 = vld [vmem:[%s9181_s5 + $0x120] sm:$0xff]  ;;  %v4504_v9 = vld [vmem:[%s9181_s5 + $0x128] sm:$0xff]  ;;  %v4505_v62 = vld [vmem:[%s9181_s5 + $0x130] sm:$0xff] }
 0x1ae   : > { %6089 = vmatprep.subr.bf16.mxu1 %v6088_v11  ;;  %v1582_v26 = vadd.f32 %v1550_v16, %v1506_v52  ;;  %v1595_v21 = vmul.f32 0.25, %v1579_v28  ;;  %v1552_v0 = vrot.slane %v1520_v3, 4  ;;  %v6096_v57 = vpack.c.bf16 %v1682_v40, %v1681_v51  ;;  %v4506_v38 = vld [vmem:[%s9181_s5 + $0x138] sm:$0xff]  ;;  %v4509_v16 = vld [vmem:[%s9181_s5 + $0x150] sm:$0xff]  ;;  %v4512_v51 = vld [vmem:[%s9181_s5 + $0x168] sm:$0xff] }
 0x1af   : > { %v7692_v13 = vcombine.low %v1593_v44, %v1594_v19  ;;  %v1596_v20 = vmul.f32 0.25, %v1580_v34  ;;  %v1597_v46 = vmul.f32 0.25, %v1581_v59  ;;  %v1583_v15 = vadd.f32 %v1551_v42, %v1513_v8  ;;  %v4508_v8 = vld [vmem:[%s9181_s5 + $0x148] sm:$0xff]  ;;  %v4510_v19 = vld [vmem:[%s9181_s5 + $0x158] sm:$0xff]  ;;  %v4511_v34 = vld [vmem:[%s9181_s5 + $0x160] sm:$0xff] }
 0x1b0   : > { %5369 = vmatmul.mubr.f32.gmra.mrb[2].mxu1 %v7661_v47  ;;  %v1598_v10 = vmul.f32 0.25, %v1582_v26  ;;  %v1584_v60 = vadd.f32 %v1552_v0, %v1520_v3  ;;  %v9219_v33 = vmov 0.0   ;;  %v6104_v58 = vpack.c.bf16 %v1686_v24, %v1685_v18  ;;  %v4513_v59 = vld [vmem:[%s9181_s5 + $0x170] sm:$0xff]  ;;  %v4514_v26 = vld [vmem:[%s9181_s5 + $0x178] sm:$0xff] }
 0x1b1   : > { %6091 = vmatpush3.bf16.msra.mxu1 %v6088_v11  ;;  %5371 = vmatprep.mubr.f32.mxu1 %v7677_v27  ;;  %v7694_v6 = vcombine.low %v1595_v21, %v1596_v20  ;;  %v6100_v11 = vpack.c.bf16 %v1684_v12, %v1683_v17  ;;  %v1599_v29 = vmul.f32 0.25, %v1583_v15  ;;  %v6108_v22 = vpack.c.bf16 %v1688_v36, %v1687_v4  ;;  %v4522_v20 = vld [vmem:[%s9181_s5 + $0x180] sm:$0xff]  ;;  %v4524_v0 = vld [vmem:[%s9181_s5 + $0x190] sm:$0xff]  ;;  %v4527_v15 = vld [vmem:[%s9181_s5 + $0x1a8] sm:$0xff] }
 0x1b2   : > { %6093 = vmatprep.subr.bf16.mxu1 %v6092_v7  ;;  %v7703_v14 = vcombine.low %v1597_v46, %v1598_v10  ;;  %v1600_v30 = vmul.f32 0.25, %v1584_v60  ;;  %v6112_v37 = vpack.c.bf16 %v1690_v31, %v1689_v2  ;;  %v6116_v32 = vpack.c.bf16 %v4500_v49, %v4499_v53  ;;  %v4523_v46 = vld [vmem:[%s9181_s5 + $0x188] sm:$0xff]  ;;  %v4532_v53 = vld [vmem:[%s9181_s5 + $0x1d0] sm:$0xff]  ;;  %v4533_v49 = vld [vmem:[%s9181_s5 + $0x1d8] sm:$0xff] }
 0x1b3   : > { %vm1635_vm2 = vcmp.ge.s32.totalorder %v9220_v1, 1  ;;  %v1637_v23 = vrot.slane %v7670_v35, 7  ;;  %v6120_v41 = vpack.c.bf16 %v4502_v54, %v4501_v39  ;;  %v7743_v43 = vrot.slane %v7659_v50, 7  ;;  %v4531_v2 = vld [vmem:[%s9181_s5 + $0x1c8] sm:$0xff]  ;;  %v4534_v39 = vld [vmem:[%s9181_s5 + $0x1e0] sm:$0xff] }
 0x1b4   : > { %5372 = vmatmul.mubr.f32.gmra.mrb[4].mxu1 %v7692_v13  ;;  %v7714_v45 = vcombine.low %v1599_v29, %v1600_v30  ;;  %v7759_v52 = vrot.slane %v7661_v47, 7  ;;  %v7762_v55 = vrot.slane %v7677_v27, 7  ;;  %v7777_v61 = vrot.slane %v7692_v13, 7  ;;  %v4528_v29 = vld [vmem:[%s9181_s5 + $0x1b0] sm:$0xff]  ;;  %v4529_v30 = vld [vmem:[%s9181_s5 + $0x1b8] sm:$0xff]  ;;  %v4535_v54 = vld [vmem:[%s9181_s5 + $0x1e8] sm:$0xff] }
 0x1b5   : > { %6095 = vmatpush3.bf16.msra.mxu1 %v6092_v7  ;;  %5374 = vmatprep.mubr.f32.mxu1 %v7694_v6  ;;  %v6124_v7 = vpack.c.bf16 %v4504_v9, %v4503_v48  ;;  %v6128_v63 = vpack.c.bf16 %v4506_v38, %v4505_v62  ;;  %v7780_v25 = vrot.slane %v7694_v6, 7  ;;  %v7795_v3 = vrot.slane %v7703_v14, 7  ;;  %v4536_v48 = vld [vmem:[%s9181_s5 + $0x1f0] sm:$0xff]  ;;  %v4547_v62 = vld [vmem:[%s9181_s5 + $0x208] sm:$0xff] }
 0x1b6   : > { %6097 = vmatprep.subr.bf16.mxu1 %v6096_v57  ;;  %v6132_v44 = vpack.c.bf16 %v4508_v8, %v4507_v5  ;;  %v6136_v28 = vpack.c.bf16 %v4510_v19, %v4509_v16  ;;  %v6140_v40 = vpack.c.bf16 %v4512_v51, %v4511_v34  ;;  %v6144_v21 = vpack.c.bf16 %v4514_v26, %v4513_v59  ;;  %v4549_v5 = vld [vmem:[%s9181_s5 + $0x218] sm:$0xff]  ;;  %v4551_v16 = vld [vmem:[%s9181_s5 + $0x228] sm:$0xff] }
 0x1b7   : > { %v6148_v42 = vpack.c.bf16 %v4523_v46, %v4522_v20  ;;  %vm1636_vm3 = vcmp.lt.s32.totalorder %v9220_v1, 7  ;;  %v1656_v10 = vrot.slane %v7670_v35, 1  ;;  %v7834_v12 = vrot.slane %v7659_v50, 1  ;;  %v4553_v34 = vld [vmem:[%s9181_s5 + $0x238] sm:$0xff]  ;;  %v4555_v59 = vld [vmem:[%s9181_s5 + $0x248] sm:$0xff]  ;;  %v4556_v20 = vld [vmem:[%s9181_s5 + $0x250] sm:$0xff] }
 0x1b8   : > { %5375 = vmatmul.mubr.f32.gmra.mrb[6].mxu1 %v7703_v14  ;;  %v7850_v60 = vrot.slane %v7661_v47, 1  ;;  %v7853_v24 = vrot.slane %v7677_v27, 1  ;;  %v6160_v4 = vpack.c.bf16 %v4529_v30, %v4528_v29  ;;  %v7871_v36 = vrot.slane %v7694_v6, 1  ;;  %v4557_v46 = vld [vmem:[%s9181_s5 + $0x258] sm:$0xff]  ;;  %v4562_v29 = vld [vmem:[%s9181_s5 + $0x280] sm:$0xff]  ;;  %v4563_v30 = vld [vmem:[%s9181_s5 + $0x288] sm:$0xff] }
 0x1b9   : > { %6099 = vmatpush3.bf16.msra.mxu1 %v6096_v57  ;;  %5409 = vmatprep.mubr.f32.mxu1 %v9219_v33  ;;  %v4525_v57 = vld [vmem:[%s9181_s5 + $0x198] sm:$0xff]  ;;  %v7886_v31 = vrot.slane %v7703_v14, 1  ;;  %v1644_v26 = vrot.slane %v7714_v45, 7 }
 0x1ba   : > { %6101 = vmatprep.subr.bf16.mxu1 %v6100_v11  ;;  %v6152_v17 = vpack.c.bf16 %v4525_v57, %v4524_v0  ;;  %v4558_v0 = vld [vmem:[%s9181_s5 + $0x260] sm:$0xff]  ;;  %v4559_v57 = vld [vmem:[%s9181_s5 + $0x268] sm:$0xff]  ;;  %v4654_v1 = vld [vmem:[%s9185_s9 + $0x98] sm:$0xff] }
 0x1bd   : > { %6103 = vmatpush3.bf16.msra.mxu1 %v6100_v11  ;;  %v4526_v11 = vld [vmem:[%s9181_s5 + $0x1a0] sm:$0xff] }
 0x1be   : > { %6105 = vmatprep.subr.bf16.mxu1 %v6104_v58  ;;  %v6156_v18 = vpack.c.bf16 %v4527_v15, %v4526_v11  ;;  %v4560_v11 = vld [vmem:[%s9181_s5 + $0x270] sm:$0xff]  ;;  %v4561_v15 = vld [vmem:[%s9181_s5 + $0x278] sm:$0xff] }
 0x1c1   : > { %6107 = vmatpush3.bf16.msra.mxu1 %v6104_v58  ;;  %v7868_v58 = vrot.slane %v7692_v13, 1 }
 0x1c2   : > { %6109 = vmatprep.subr.bf16.mxu1 %v6108_v22 }
 0x1c5   : > { %6111 = vmatpush3.bf16.msra.mxu1 %v6108_v22  ;;  %v4530_v22 = vld [vmem:[%s9181_s5 + $0x1c0] sm:$0xff] }
 0x1c6   : > { %6113 = vmatprep.subr.bf16.mxu1 %v6112_v37 }
 0x1c9   : > { %6115 = vmatpush3.bf16.msra.mxu1 %v6112_v37  ;;  %v6164_v37 = vpack.c.bf16 %v4531_v2, %v4530_v22  ;;  %v4564_v22 = vld [vmem:[%s9181_s5 + $0x290] sm:$0xff]  ;;  %v4565_v2 = vld [vmem:[%s9181_s5 + $0x298] sm:$0xff] }
 0x1ca   : > { %6117 = vmatprep.subr.bf16.mxu1 %v6116_v32 }
 0x1cc   : > { %5410 = vmatmul.mubr.msk.f32.vlgmr.msra.gmra.mrb[0].mxu1 %vm1635_vm2, %v1637_v23 }
 0x1cd   : > { %5412 = vmatprep.mubr.msk.f32.mxu1 %vm1635_vm2, %v7743_v43  ;;  %6119 = vmatpush3.bf16.msra.mxu1 %v6116_v32  ;;  %v6168_v32 = vpack.c.bf16 %v4533_v49, %v4532_v53  ;;  %v4566_v53 = vld [vmem:[%s9181_s5 + $0x2a0] sm:$0xff]  ;;  %v4567_v49 = vld [vmem:[%s9181_s5 + $0x2a8] sm:$0xff] }
 0x1ce   : > { %6121 = vmatprep.subr.bf16.mxu1 %v6120_v41 }
 0x1d0   : > { %5413 = vmatmul.mubr.msk.f32.gmra.mrb[2].mxu1 %vm1635_vm2, %v7759_v52 }
 0x1d1   : > { %5415 = vmatprep.mubr.msk.f32.mxu1 %vm1635_vm2, %v7762_v55  ;;  %6123 = vmatpush3.bf16.msra.mxu1 %v6120_v41  ;;  %v6172_v41 = vpack.c.bf16 %v4535_v54, %v4534_v39  ;;  %v4568_v39 = vld [vmem:[%s9181_s5 + $0x2b0] sm:$0xff]  ;;  %v4569_v54 = vld [vmem:[%s9181_s5 + $0x2b8] sm:$0xff] }
 0x1d2   : > { %6125 = vmatprep.subr.bf16.mxu1 %v6124_v7 }
 0x1d4   : > { %5416 = vmatmul.mubr.msk.f32.gmra.mrb[4].mxu1 %vm1635_vm2, %v7777_v61 }
 0x1d5   : > { %5418 = vmatprep.mubr.msk.f32.mxu1 %vm1635_vm2, %v7780_v25  ;;  %6127 = vmatpush3.bf16.msra.mxu1 %v6124_v7  ;;  %v4546_v7 = vld [vmem:[%s9181_s5 + $0x200] sm:$0xff] }
 0x1d6   : > { %6129 = vmatprep.subr.bf16.mxu1 %v6128_v63  ;;  %v6180_v38 = vpack.c.bf16 %v4547_v62, %v4546_v7  ;;  %v4572_v7 = vld [vmem:[%s9181_s5 + $0x2d0] sm:$0xff]  ;;  %v4573_v62 = vld [vmem:[%s9181_s5 + $0x2d8] sm:$0xff] }
 0x1d8   : > { %5419 = vmatmul.mubr.msk.f32.gmra.mrb[6].mxu1 %vm1635_vm2, %v7795_v3 }
 0x1d9   : > { %6131 = vmatpush3.bf16.msra.mxu1 %v6128_v63  ;;  %5453 = vmatprep.mubr.f32.mxu1 %v9219_v33  ;;  %v4548_v63 = vld [vmem:[%s9181_s5 + $0x210] sm:$0xff] }
 0x1da   : > { %6133 = vmatprep.subr.bf16.mxu1 %v6132_v44  ;;  %v6184_v8 = vpack.c.bf16 %v4549_v5, %v4548_v63  ;;  %v4574_v63 = vld [vmem:[%s9181_s5 + $0x2e0] sm:$0xff]  ;;  %v4575_v5 = vld [vmem:[%s9181_s5 + $0x2e8] sm:$0xff] }
 0x1dd   : > { %6135 = vmatpush3.bf16.msra.mxu1 %v6132_v44  ;;  %v4550_v44 = vld [vmem:[%s9181_s5 + $0x220] sm:$0xff] }
 0x1de   : > { %6137 = vmatprep.subr.bf16.mxu1 %v6136_v28  ;;  %v6188_v19 = vpack.c.bf16 %v4551_v16, %v4550_v44  ;;  %v4586_v16 = vld [vmem:[%s9181_s5 + $0x300] sm:$0xff] }
 0x1e1   : > { %6139 = vmatpush3.bf16.msra.mxu1 %v6136_v28  ;;  %v4552_v28 = vld [vmem:[%s9181_s5 + $0x230] sm:$0xff] }
 0x1e2   : > { %6141 = vmatprep.subr.bf16.mxu1 %v6140_v40  ;;  %v6192_v51 = vpack.c.bf16 %v4553_v34, %v4552_v28  ;;  %v4588_v34 = vld [vmem:[%s9181_s5 + $0x310] sm:$0xff] }
 0x1e5   : > { %6143 = vmatpush3.bf16.msra.mxu1 %v6140_v40  ;;  %v4554_v40 = vld [vmem:[%s9181_s5 + $0x240] sm:$0xff] }
 0x1e6   : > { %6145 = vmatprep.subr.bf16.mxu1 %v6144_v21 }
 0x1e9   : > { %6147 = vmatpush3.bf16.msra.mxu1 %v6144_v21  ;;  %v6196_v21 = vpack.c.bf16 %v4555_v59, %v4554_v40  ;;  %v4590_v59 = vld [vmem:[%s9181_s5 + $0x320] sm:$0xff] }
 0x1ea   : > { %6149 = vmatprep.subr.bf16.mxu1 %v6148_v42 }
 0x1ec   : > { %5454 = vmatmul.mubr.msk.f32.vlgmr.msra.gmra.mrb[0].mxu1 %vm1636_vm3, %v1656_v10 }
 0x1ed   : > { %5456 = vmatprep.mubr.msk.f32.mxu1 %vm1636_vm3, %v7834_v12  ;;  %6151 = vmatpush3.bf16.msra.mxu1 %v6148_v42  ;;  %v6200_v42 = vpack.c.bf16 %v4557_v46, %v4556_v20  ;;  %v4592_v46 = vld [vmem:[%s9181_s5 + $0x330] sm:$0xff] }
 0x1ee   : > { %6153 = vmatprep.subr.bf16.mxu1 %v6152_v17 }
 0x1f0   : > { %5457 = vmatmul.mubr.msk.f32.gmra.mrb[2].mxu1 %vm1636_vm3, %v7850_v60 }
 0x1f1   : > { %5459 = vmatprep.mubr.msk.f32.mxu1 %vm1636_vm3, %v7853_v24  ;;  %6155 = vmatpush3.bf16.msra.mxu1 %v6152_v17  ;;  %v6204_v17 = vpack.c.bf16 %v4559_v57, %v4558_v0  ;;  %v4594_v57 = vld [vmem:[%s9181_s5 + $0x340] sm:$0xff] }
 0x1f2   : > { %6157 = vmatprep.subr.bf16.mxu1 %v6156_v18 }
 0x1f4   : > { %5460 = vmatmul.mubr.msk.f32.gmra.mrb[4].mxu1 %vm1636_vm3, %v7868_v58 }
 0x1f5   : > { %5462 = vmatprep.mubr.msk.f32.mxu1 %vm1636_vm3, %v7871_v36  ;;  %6159 = vmatpush3.bf16.msra.mxu1 %v6156_v18  ;;  %v6208_v18 = vpack.c.bf16 %v4561_v15, %v4560_v11  ;;  %v1663_v11 = vrot.slane %v7714_v45, 1 }
 0x1f6   : > { %6161 = vmatprep.subr.bf16.mxu1 %v6160_v4 }
 0x1f8   : > { %5463 = vmatmul.mubr.msk.f32.gmra.mrb[6].mxu1 %vm1636_vm3, %v7886_v31 }
 0x1f9   : > { %6163 = vmatpush3.bf16.msra.mxu1 %v6160_v4  ;;  %5497 = vmatprep.mubr.msk.f32.mxu1 %vm1635_vm2, %v1637_v23  ;;  %v4537_v23 = vld [vmem:[%s9181_s5 + $0x1f8] sm:$0xff]  ;;  %v6212_v4 = vpack.c.bf16 %v4563_v30, %v4562_v29 }
 0x1fa   : > { %6165 = vmatprep.subr.bf16.mxu1 %v6164_v37  ;;  %v6176_v9 = vpack.c.bf16 %v4537_v23, %v4536_v48  ;;  %v4570_v48 = vld [vmem:[%s9181_s5 + $0x2c0] sm:$0xff]  ;;  %v4571_v23 = vld [vmem:[%s9181_s5 + $0x2c8] sm:$0xff]  ;;  %v4597_v29 = vld [vmem:[%s9181_s5 + $0x358] sm:$0xff] }
 0x1fd   : > { %6167 = vmatpush3.bf16.msra.mxu1 %v6164_v37  ;;  %v6216_v37 = vpack.c.bf16 %v4565_v2, %v4564_v22  ;;  %v4599_v22 = vld [vmem:[%s9181_s5 + $0x368] sm:$0xff] }
 0x1fe   : > { %6169 = vmatprep.subr.bf16.mxu1 %v6168_v32 }
 0x201   : > { %6171 = vmatpush3.bf16.msra.mxu1 %v6168_v32  ;;  %v6220_v32 = vpack.c.bf16 %v4567_v49, %v4566_v53  ;;  %v4609_v49 = vld [vmem:[%s9181_s5 + $0x380] sm:$0xff] }
 0x202   : > { %6173 = vmatprep.subr.bf16.mxu1 %v6172_v41 }
 0x205   : > { %6175 = vmatpush3.bf16.msra.mxu1 %v6172_v41  ;;  %v6224_v41 = vpack.c.bf16 %v4569_v54, %v4568_v39  ;;  %v4611_v54 = vld [vmem:[%s9181_s5 + $0x390] sm:$0xff] }
 0x206   : > { %6177 = vmatprep.subr.bf16.mxu1 %v6176_v9 }
 0x209   : > { %6179 = vmatpush3.bf16.msra.mxu1 %v6176_v9  ;;  %v6228_v9 = vpack.c.bf16 %v4571_v23, %v4570_v48  ;;  %v4613_v23 = vld [vmem:[%s9181_s5 + $0x3a0] sm:$0xff] }
 0x20a   : > { %6181 = vmatprep.subr.bf16.mxu1 %v6180_v38 }
 0x20c   : > { %5498 = vmatmul.mubr.msk.f32.vlgmr.msra.gmra.mrb[0].mxu1 %vm1635_vm2, %v7743_v43 }
 0x20d   : > { %5500 = vmatprep.mubr.msk.f32.mxu1 %vm1635_vm2, %v7759_v52  ;;  %6183 = vmatpush3.bf16.msra.mxu1 %v6180_v38  ;;  %v6232_v38 = vpack.c.bf16 %v4573_v62, %v4572_v7  ;;  %v4615_v62 = vld [vmem:[%s9181_s5 + $0x3b0] sm:$0xff] }
 0x20e   : > { %6185 = vmatprep.subr.bf16.mxu1 %v6184_v8 }
 0x210   : > { %5501 = vmatmul.mubr.msk.f32.gmra.mrb[2].mxu1 %vm1635_vm2, %v7762_v55 }
 0x211   : > { %5503 = vmatprep.mubr.msk.f32.mxu1 %vm1635_vm2, %v7777_v61  ;;  %6187 = vmatpush3.bf16.msra.mxu1 %v6184_v8  ;;  %v6236_v8 = vpack.c.bf16 %v4575_v5, %v4574_v63  ;;  %v4618_v63 = vld [vmem:[%s9181_s5 + $0x3c8] sm:$0xff]  ;;  %v4620_v5 = vld [vmem:[%s9181_s5 + $0x3d8] sm:$0xff] }
 0x212   : > { %6189 = vmatprep.subr.bf16.mxu1 %v6188_v19 }
 0x214   : > { %5504 = vmatmul.mubr.msk.f32.gmra.mrb[4].mxu1 %vm1635_vm2, %v7780_v25 }
 0x215   : > { %5506 = vmatprep.mubr.msk.f32.mxu1 %vm1635_vm2, %v7795_v3  ;;  %6191 = vmatpush3.bf16.msra.mxu1 %v6188_v19  ;;  %v4587_v19 = vld [vmem:[%s9181_s5 + $0x308] sm:$0xff] }
 0x216   : > { %6193 = vmatprep.subr.bf16.mxu1 %v6192_v51  ;;  %v6244_v28 = vpack.c.bf16 %v4587_v19, %v4586_v16  ;;  %v4625_v16 = vld [vmem:[%s9181_s5 + $0x400] sm:$0xff]  ;;  %v4626_v19 = vld [vmem:[%s9181_s5 + $0x408] sm:$0xff] }
 0x218   : > { %5507 = vmatmul.mubr.msk.f32.gmra.mrb[6].mxu1 %vm1635_vm2, %v1644_v26 }
 0x219   : > { %6195 = vmatpush3.bf16.msra.mxu1 %v6192_v51  ;;  %5541 = vmatprep.mubr.f32.mxu1 %v7670_v35  ;;  %v4576_v35 = vld [vmem:[%s9181_s5 + $0x2f0] sm:$0xff]  ;;  %v4589_v51 = vld [vmem:[%s9181_s5 + $0x318] sm:$0xff] }
 0x21a   : > { %6197 = vmatprep.subr.bf16.mxu1 %v6196_v21  ;;  %v6248_v40 = vpack.c.bf16 %v4589_v51, %v4588_v34  ;;  %v4627_v34 = vld [vmem:[%s9181_s5 + $0x410] sm:$0xff]  ;;  %v4628_v51 = vld [vmem:[%s9181_s5 + $0x418] sm:$0xff] }
 0x21d   : > { %6199 = vmatpush3.bf16.msra.mxu1 %v6196_v21  ;;  %v4591_v21 = vld [vmem:[%s9181_s5 + $0x328] sm:$0xff] }
 0x21e   : > { %6201 = vmatprep.subr.bf16.mxu1 %v6200_v42  ;;  %v6252_v20 = vpack.c.bf16 %v4591_v21, %v4590_v59  ;;  %v4629_v59 = vld [vmem:[%s9181_s5 + $0x420] sm:$0xff]  ;;  %v4630_v21 = vld [vmem:[%s9181_s5 + $0x428] sm:$0xff] }
 0x221   : > { %6203 = vmatpush3.bf16.msra.mxu1 %v6200_v42  ;;  %v4593_v42 = vld [vmem:[%s9181_s5 + $0x338] sm:$0xff] }
 0x222   : > { %6205 = vmatprep.subr.bf16.mxu1 %v6204_v17  ;;  %v6256_v0 = vpack.c.bf16 %v4593_v42, %v4592_v46  ;;  %v4631_v46 = vld [vmem:[%s9181_s5 + $0x430] sm:$0xff]  ;;  %v4632_v42 = vld [vmem:[%s9181_s5 + $0x438] sm:$0xff] }
 0x225   : > { %6207 = vmatpush3.bf16.msra.mxu1 %v6204_v17  ;;  %v4595_v17 = vld [vmem:[%s9181_s5 + $0x348] sm:$0xff] }
 0x226   : > { %6209 = vmatprep.subr.bf16.mxu1 %v6208_v18  ;;  %v6260_v15 = vpack.c.bf16 %v4595_v17, %v4594_v57  ;;  %v4636_v57 = vld [vmem:[%s9181_s5 + $0x458] sm:$0xff]  ;;  %v4637_v17 = vld [vmem:[%s9181_s5 + $0x460] sm:$0xff] }
 0x229   : > { %6211 = vmatpush3.bf16.msra.mxu1 %v6208_v18  ;;  %v4596_v18 = vld [vmem:[%s9181_s5 + $0x350] sm:$0xff] }
 0x22a   : > { %6213 = vmatprep.subr.bf16.mxu1 %v6212_v4  ;;  %v6264_v30 = vpack.c.bf16 %v4597_v29, %v4596_v18  ;;  %v4639_v29 = vld [vmem:[%s9181_s5 + $0x470] sm:$0xff] }
 0x22c   : > { %5542 = vmatmul.mubr.f32.vlgmr.msra.gmra.mrb[0].mxu1 %v7659_v50 }
 0x22d   : > { %5544 = vmatprep.mubr.f32.mxu1 %v7661_v47  ;;  %6215 = vmatpush3.bf16.msra.mxu1 %v6212_v4  ;;  %v4598_v4 = vld [vmem:[%s9181_s5 + $0x360] sm:$0xff] }
 0x22e   : > { %6217 = vmatprep.subr.bf16.mxu1 %v6216_v37  ;;  %v6268_v2 = vpack.c.bf16 %v4599_v22, %v4598_v4  ;;  %v4657_v22 = vld [vmem:[%s9185_s9 + $0xb0] sm:$0xff] }
 0x230   : > { %5545 = vmatmul.mubr.f32.gmra.mrb[2].mxu1 %v7677_v27 }
 0x231   : > { %5547 = vmatprep.mubr.f32.mxu1 %v7692_v13  ;;  %6219 = vmatpush3.bf16.msra.mxu1 %v6216_v37  ;;  %v4600_v37 = vld [vmem:[%s9181_s5 + $0x370] sm:$0xff] }
 0x232   : > { %6221 = vmatprep.subr.bf16.mxu1 %v6220_v32 }
 0x234   : > { %5548 = vmatmul.mubr.f32.gmra.mrb[4].mxu1 %v7694_v6 }
 0x235   : > { %5550 = vmatprep.mubr.f32.mxu1 %v7703_v14  ;;  %6223 = vmatpush3.bf16.msra.mxu1 %v6220_v32  ;;  %v4610_v32 = vld [vmem:[%s9181_s5 + $0x388] sm:$0xff] }
 0x236   : > { %6225 = vmatprep.subr.bf16.mxu1 %v6224_v41  ;;  %v6276_v39 = vpack.c.bf16 %v4610_v32, %v4609_v49  ;;  %v4661_v32 = vld [vmem:[%s9185_s9 + $0xd0] sm:$0xff] }
 0x238   : > { %5551 = vmatmul.mubr.f32.gmra.mrb[6].mxu1 %v7714_v45 }
 0x239   : > { %6227 = vmatpush3.bf16.msra.mxu1 %v6224_v41  ;;  %5585 = vmatprep.mubr.msk.f32.mxu1 %vm1636_vm3, %v1656_v10  ;;  %v4577_v10 = vld [vmem:[%s9181_s5 + $0x2f8] sm:$0xff] }
 0x23a   : > { %6229 = vmatprep.subr.bf16.mxu1 %v6228_v9  ;;  %v6240_v44 = vpack.c.bf16 %v4577_v10, %v4576_v35  ;;  %v4612_v41 = vld [vmem:[%s9181_s5 + $0x398] sm:$0xff]  ;;  %v4623_v10 = vld [vmem:[%s9181_s5 + $0x3f0] sm:$0xff] }
 0x23b   : > { %v6280_v48 = vpack.c.bf16 %v4612_v41, %v4611_v54  ;;  %v4663_v54 = vld [vmem:[%s9185_s9 + $0xe0] sm:$0xff] }
 0x23d   : > { %6231 = vmatpush3.bf16.msra.mxu1 %v6228_v9  ;;  %v4614_v9 = vld [vmem:[%s9181_s5 + $0x3a8] sm:$0xff] }
 0x23e   : > { %6233 = vmatprep.subr.bf16.mxu1 %v6232_v38  ;;  %v6284_v7 = vpack.c.bf16 %v4614_v9, %v4613_v23  ;;  %v4665_v9 = vld [vmem:[%s9185_s9 + $0xf0] sm:$0xff] }
 0x241   : > { %6235 = vmatpush3.bf16.msra.mxu1 %v6232_v38  ;;  %v4616_v38 = vld [vmem:[%s9181_s5 + $0x3b8] sm:$0xff] }
 0x242   : > { %6237 = vmatprep.subr.bf16.mxu1 %v6236_v8 }
 0x245   : > { %6239 = vmatpush3.bf16.msra.mxu1 %v6236_v8  ;;  %v4622_v8 = vld [vmem:[%s9181_s5 + $0x3e8] sm:$0xff] }
 0x246   : > { %6241 = vmatprep.subr.bf16.mxu1 %v6240_v44 }
 0x249   : > { %6243 = vmatpush3.bf16.msra.mxu1 %v6240_v44 }
 0x24a   : > { %6245 = vmatprep.subr.bf16.mxu1 %v6244_v28 }
 0x24c   : > { %5586 = vmatmul.mubr.msk.f32.vlgmr.msra.gmra.mrb[0].mxu1 %vm1636_vm3, %v7834_v12 }
 0x24d   : > { %5588 = vmatprep.mubr.msk.f32.mxu1 %vm1636_vm3, %v7850_v60  ;;  %6247 = vmatpush3.bf16.msra.mxu1 %v6244_v28  ;;  %v6308_v28 = vpack.c.bf16 %v4626_v19, %v4625_v16 }
 0x24e   : > { %6249 = vmatprep.subr.bf16.mxu1 %v6248_v40 }
 0x250   : > { %5589 = vmatmul.mubr.msk.f32.gmra.mrb[2].mxu1 %vm1636_vm3, %v7853_v24 }
 0x251   : > { %5591 = vmatprep.mubr.msk.f32.mxu1 %vm1636_vm3, %v7868_v58  ;;  %6251 = vmatpush3.bf16.msra.mxu1 %v6248_v40  ;;  %v6312_v40 = vpack.c.bf16 %v4628_v51, %v4627_v34 }
 0x252   : > { %6253 = vmatprep.subr.bf16.mxu1 %v6252_v20 }
 0x254   : > { %5592 = vmatmul.mubr.msk.f32.gmra.mrb[4].mxu1 %vm1636_vm3, %v7871_v36 }
 0x255   : > { %5594 = vmatprep.mubr.msk.f32.mxu1 %vm1636_vm3, %v7886_v31  ;;  %6255 = vmatpush3.bf16.msra.mxu1 %v6252_v20  ;;  %v6316_v20 = vpack.c.bf16 %v4630_v21, %v4629_v59 }
 0x256   : > { %6257 = vmatprep.subr.bf16.mxu1 %v6256_v0 }
 0x258   : > { %5595 = vmatmul.mubr.msk.f32.gmra.mrb[6].mxu1 %vm1636_vm3, %v1663_v11 }
 0x259   : > { %6259 = vmatpush3.bf16.msra.mxu1 %v6256_v0  ;;  %5629 = vmatprep.mubr.msk.f32.mxu1 %vm1635_vm2, %v7743_v43  ;;  %v4601_v43 = vld [vmem:[%s9181_s5 + $0x378] sm:$0xff]  ;;  %v4634_v0 = vld [vmem:[%s9181_s5 + $0x448] sm:$0xff] }
 0x25a   : > { %6261 = vmatprep.subr.bf16.mxu1 %v6260_v15  ;;  %v6272_v53 = vpack.c.bf16 %v4601_v43, %v4600_v37  ;;  %v4659_v43 = vld [vmem:[%s9185_s9 + $0xc0] sm:$0xff] }
 0x25d   : > { %6263 = vmatpush3.bf16.msra.mxu1 %v6260_v15  ;;  %v4638_v15 = vld [vmem:[%s9181_s5 + $0x468] sm:$0xff] }
 0x25e   : > { %6265 = vmatprep.subr.bf16.mxu1 %v6264_v30  ;;  %v6332_v18 = vpack.c.bf16 %v4638_v15, %v4637_v17 }
 0x261   : > { %6267 = vmatpush3.bf16.msra.mxu1 %v6264_v30 }
 0x262   : > { %6269 = vmatprep.subr.bf16.mxu1 %v6268_v2 }
 0x265   : > { %6271 = vmatpush3.bf16.msra.mxu1 %v6268_v2  ;;  %v4658_v2 = vld [vmem:[%s9185_s9 + $0xb8] sm:$0xff] }
 0x266   : > { %6273 = vmatprep.subr.bf16.mxu1 %v6272_v53  ;;  %v6352_v37 = vpack.c.bf16 %v4658_v2, %v4657_v22 }
 0x269   : > { %6275 = vmatpush3.bf16.msra.mxu1 %v6272_v53  ;;  %v4660_v53 = vld [vmem:[%s9185_s9 + $0xc8] sm:$0xff] }
 0x26a   : > { %6277 = vmatprep.subr.bf16.mxu1 %v6276_v39  ;;  %v6356_v49 = vpack.c.bf16 %v4660_v53, %v4659_v43 }
 0x26c   : > { %5630 = vmatmul.mubr.msk.f32.vlgmr.msra.gmra.mrb[0].mxu1 %vm1635_vm2, %v7759_v52  ;;  %v6288_v52 = vpack.c.bf16 %v4616_v38, %v4615_v62  ;;  %v3119_v38 = vld [vmem:[%s9185_s9] sm:$0xff] }
 0x26d   : > { %5632 = vmatprep.mubr.msk.f32.mxu1 %vm1635_vm2, %v7762_v55  ;;  %6279 = vmatpush3.bf16.msra.mxu1 %v6276_v39  ;;  %v4617_v55 = vld [vmem:[%s9181_s5 + $0x3c0] sm:$0xff]  ;;  %v4662_v39 = vld [vmem:[%s9185_s9 + $0xd8] sm:$0xff] }
 0x26e   : > { %6281 = vmatprep.subr.bf16.mxu1 %v6280_v48  ;;  %v6360_v41 = vpack.c.bf16 %v4662_v39, %v4661_v32 }
 0x270   : > { %5633 = vmatmul.mubr.msk.f32.gmra.mrb[2].mxu1 %vm1635_vm2, %v7777_v61  ;;  %v6292_v61 = vpack.c.bf16 %v4618_v63, %v4617_v55  ;;  %v8325_v63 = vld [vmem:[%s9182_s6] ss:$0 sm:$0xff] }
 0x271   : > { %5635 = vmatprep.mubr.msk.f32.mxu1 %vm1635_vm2, %v7780_v25  ;;  %6283 = vmatpush3.bf16.msra.mxu1 %v6280_v48  ;;  %v4619_v25 = vld [vmem:[%s9181_s5 + $0x3d0] sm:$0xff]  ;;  %v4664_v48 = vld [vmem:[%s9185_s9 + $0xe8] sm:$0xff] }
 0x272   : > { %6285 = vmatprep.subr.bf16.mxu1 %v6284_v7  ;;  %v6364_v23 = vpack.c.bf16 %v4664_v48, %v4663_v54 }
 0x274   : > { %5636 = vmatmul.mubr.msk.f32.gmra.mrb[4].mxu1 %vm1635_vm2, %v7795_v3  ;;  %v6296_v3 = vpack.c.bf16 %v4620_v5, %v4619_v25 }
 0x275   : > { %5638 = vmatprep.mubr.msk.f32.mxu1 %vm1635_vm2, %v1644_v26  ;;  %6287 = vmatpush3.bf16.msra.mxu1 %v6284_v7  ;;  %v4621_v26 = vld [vmem:[%s9181_s5 + $0x3e0] sm:$0xff]  ;;  %v4666_v7 = vld [vmem:[%s9185_s9 + $0xf8] sm:$0xff] }
 0x276   : > { %6289 = vmatprep.subr.bf16.mxu1 %v6288_v52  ;;  %v6300_v35 = vpack.c.bf16 %v4622_v8, %v4621_v26  ;;  %v6368_v62 = vpack.c.bf16 %v4666_v7, %v4665_v9 }
 0x278   : > { %5639 = vmatmul.mubr.f32.gmra.mrb[6].mxu1 %v9219_v33 }
 0x279   : > { %6291 = vmatpush3.bf16.msra.mxu1 %v6288_v52  ;;  %5673 = vmatprep.mubr.f32.mxu1 %v7659_v50  ;;  %v4624_v50 = vld [vmem:[%s9181_s5 + $0x3f8] sm:$0xff]  ;;  %v3120_v52 = vld [vmem:[%s9185_s9 + $0x8] sm:$0xff] }
 0x27a   : > { %6293 = vmatprep.subr.bf16.mxu1 %v6292_v61  ;;  %v6304_v44 = vpack.c.bf16 %v4624_v50, %v4623_v10  ;;  %v8319_v55 = vpack.c.bf16 %v3120_v52, %v3119_v38 }
 0x27d   : > { %6295 = vmatpush3.bf16.msra.mxu1 %v6292_v61 }
 0x27e   : > { %6297 = vmatprep.subr.bf16.mxu1 %v6296_v3 }
 0x281   : > { %6299 = vmatpush3.bf16.msra.mxu1 %v6296_v3 }
 0x282   : > { %6301 = vmatprep.subr.bf16.mxu1 %v6300_v35 }
 0x285   : > { %6303 = vmatpush3.bf16.msra.mxu1 %v6300_v35 }
 0x286   : > { %6305 = vmatprep.subr.bf16.mxu1 %v6304_v44 }
 0x289   : > { %6307 = vmatpush3.bf16.msra.mxu1 %v6304_v44 }
 0x28a   : > { %6309 = vmatprep.subr.bf16.mxu1 %v6308_v28 }
 0x28c   : > { %5674 = vmatmul.mubr.f32.vlgmr.msra.gmra.mrb[0].mxu1 %v7661_v47  ;;  %v6320_v47 = vpack.c.bf16 %v4632_v42, %v4631_v46 }
 0x28d   : > { %5676 = vmatprep.mubr.f32.mxu1 %v7677_v27  ;;  %6311 = vmatpush3.bf16.msra.mxu1 %v6308_v28  ;;  %v4633_v27 = vld [vmem:[%s9181_s5 + $0x440] sm:$0xff] }
 0x28e   : > { %6313 = vmatprep.subr.bf16.mxu1 %v6312_v40 }
 0x290   : > { %5677 = vmatmul.mubr.f32.gmra.mrb[2].mxu1 %v7692_v13  ;;  %v6324_v13 = vpack.c.bf16 %v4634_v0, %v4633_v27 }
 0x291   : > { %5679 = vmatprep.mubr.f32.mxu1 %v7694_v6  ;;  %6315 = vmatpush3.bf16.msra.mxu1 %v6312_v40  ;;  %v4635_v6 = vld [vmem:[%s9181_s5 + $0x450] sm:$0xff] }
 0x292   : > { %6317 = vmatprep.subr.bf16.mxu1 %v6316_v20 }
 0x294   : > { %5680 = vmatmul.mubr.f32.gmra.mrb[4].mxu1 %v7703_v14  ;;  %v6328_v14 = vpack.c.bf16 %v4636_v57, %v4635_v6 }
 0x295   : > { %5682 = vmatprep.mubr.f32.mxu1 %v7714_v45  ;;  %6319 = vmatpush3.bf16.msra.mxu1 %v6316_v20  ;;  %v4653_v45 = vld [vmem:[%s9185_s9 + $0x90] sm:$0xff] }
 0x296   : > { %6321 = vmatprep.subr.bf16.mxu1 %v6320_v47 }
 0x298   : > { %5683 = vmatmul.mubr.f32.gmra.mrb[6].mxu1 %v9219_v33 }
 0x299   : > { %6323 = vmatpush3.bf16.msra.mxu1 %v6320_v47  ;;  %5717 = vmatprep.mubr.msk.f32.mxu1 %vm1636_vm3, %v7834_v12  ;;  %v4640_v12 = vld [vmem:[%s9181_s5 + $0x478] sm:$0xff] }
 0x29a   : > { %6325 = vmatprep.subr.bf16.mxu1 %v6324_v13  ;;  %v6336_v30 = vpack.c.bf16 %v4640_v12, %v4639_v29 }
 0x29d   : > { %6327 = vmatpush3.bf16.msra.mxu1 %v6324_v13 }
 0x29e   : > { %6329 = vmatprep.subr.bf16.mxu1 %v6328_v14 }
 0x2a1   : > { %6331 = vmatpush3.bf16.msra.mxu1 %v6328_v14 }
 0x2a2   : > { %6333 = vmatprep.subr.bf16.mxu1 %v6332_v18 }
 0x2a5   : > { %6335 = vmatpush3.bf16.msra.mxu1 %v6332_v18 }
 0x2a6   : > { %6337 = vmatprep.subr.bf16.mxu1 %v6336_v30 }
 0x2a9   : > { %6339 = vmatpush3.bf16.msra.mxu1 %v6336_v30 }
 0x2ac   : > { %5718 = vmatmul.mubr.msk.f32.vlgmr.msra.gmra.mrb[0].mxu1 %vm1636_vm3, %v7850_v60  ;;  %v4651_v60 = vld [vmem:[%s9185_s9 + $0x80] sm:$0xff] }
 0x2ad   : > { %5720 = vmatprep.mubr.msk.f32.mxu1 %vm1636_vm3, %v7853_v24  ;;  %v4652_v24 = vld [vmem:[%s9185_s9 + $0x88] sm:$0xff] }
 0x2b0   : > { %5721 = vmatmul.mubr.msk.f32.gmra.mrb[2].mxu1 %vm1636_vm3, %v7868_v58  ;;  %v6340_v58 = vpack.c.bf16 %v4652_v24, %v4651_v60 }
 0x2b1   : > { %5723 = vmatprep.mubr.msk.f32.mxu1 %vm1636_vm3, %v7871_v36  ;;  %v6344_v36 = vpack.c.bf16 %v4654_v1, %v4653_v45 }
 0x2b2   : > { %6341 = vmatprep.subr.bf16.mxu0 %v6340_v58 }
 0x2b3   : > { %6343 = vmatpush3.bf16.msra.mxu0 %v6340_v58 }
 0x2b4   : > { %5724 = vmatmul.mubr.msk.f32.gmra.mrb[4].mxu1 %vm1636_vm3, %v7886_v31  ;;  %6345 = vmatprep.subr.bf16.mxu0 %v6344_v36  ;;  %v4655_v31 = vld [vmem:[%s9185_s9 + $0xa0] sm:$0xff] }
 0x2b5   : > { %5726 = vmatprep.mubr.msk.f32.mxu1 %vm1636_vm3, %v1663_v11  ;;  %v4656_v11 = vld [vmem:[%s9185_s9 + $0xa8] sm:$0xff] }
 0x2b6   : > { %v6348_v4 = vpack.c.bf16 %v4656_v11, %v4655_v31 }
 0x2b7   : > { %6347 = vmatpush3.bf16.msra.mxu0 %v6344_v36 }
 0x2b8   : > { %5727 = vmatmul.mubr.f32.gmra.mrb[6].mxu1 %v9219_v33  ;;  %6349 = vmatprep.subr.bf16.mxu0 %v6348_v4 }
 0x2bb   : > { %6351 = vmatpush3.bf16.msra.mxu0 %v6348_v4 }
 0x2bc   : > { %6353 = vmatprep.subr.bf16.mxu0 %v6352_v37 }
 0x2bf   : > { %6355 = vmatpush3.bf16.msra.mxu0 %v6352_v37 }
 0x2c0   : > { %6357 = vmatprep.subr.bf16.mxu0 %v6356_v49 }
 0x2c3   : > { %6359 = vmatpush3.bf16.msra.mxu0 %v6356_v49 }
 0x2c4   : > { %6361 = vmatprep.subr.bf16.mxu0 %v6360_v41 }
 0x2c7   : > { %6363 = vmatpush3.bf16.msra.mxu0 %v6360_v41 }
 0x2c8   : > { %6365 = vmatprep.subr.bf16.mxu0 %v6364_v23 }
 0x2cb   : > { %6367 = vmatpush3.bf16.msra.mxu0 %v6364_v23 }
 0x2cc   : > { %6369 = vmatprep.subr.bf16.mxu0 %v6368_v62 }
 0x2cf   : > { %6371 = vmatpush3.bf16.msra.mxu0 %v6368_v62 }
 0x2d0   : > { %6373 = vmatprep.subr.bf16.mxu0 %v8319_v55 }
 0x37f   : > { %v5719_v61 = vpop.f32.mrb[0].mxu1 }
 0x380   : > { %v8328_v25 = vadd.f32 %v5719_v61, %v8325_v63  ;;  %v2781_v5 = vpop.f32.mrb[1].mxu1 }
 0x381   : > { %v8331_v3 = vadd.f32 %v8325_v63, %v2781_v5 }
 0x382   : > { %v2849_v26 = vrot.slane %v8328_v25, 4  ;;  %v2899_v8 = vmul.f32 %v8328_v25, %v8328_v25 }
 0x383   : > { %v2843_v35 = vrot.slane %v8331_v3, 4  ;;  %v2898_v10 = vmul.f32 %v8331_v3, %v8331_v3  ;;  %v5722_v50 = vpop.f32.mrb[2].mxu1 }
 0x384   : > { %v2850_v44 = vadd.f32 %v2849_v26, %v8328_v25  ;;  %v2912_v16 = vrot.slane %v2899_v8, 4  ;;  %v8341_v19 = vadd.f32 %v5722_v50, %v8325_v63  ;;  %v2791_v28 = vpop.f32.mrb[3].mxu1 }
 0x385   : > { %v2844_v34 = vadd.f32 %v2843_v35, %v8331_v3  ;;  %v2906_v51 = vrot.slane %v2898_v10, 4  ;;  %v8345_v40 = vadd.f32 %v8325_v63, %v2791_v28 }
 0x386   : > { %v2851_v59 = vrot.slane %v2850_v44, 2  ;;  %v2913_v21 = vadd.f32 %v2912_v16, %v2899_v8  ;;  %v2861_v20 = vrot.slane %v8341_v19, 4  ;;  %v2901_v46 = vmul.f32 %v8341_v19, %v8341_v19 }
 0x387   : > { %v2845_v42 = vrot.slane %v2844_v34, 2  ;;  %v2907_v47 = vadd.f32 %v2906_v51, %v2898_v10  ;;  %v2855_v27 = vrot.slane %v8345_v40, 4  ;;  %v2900_v0 = vmul.f32 %v8345_v40, %v8345_v40  ;;  %v5725_v13 = vpop.f32.mrb[4].mxu1 }
 0x388   : > { %v2852_v6 = vadd.f32 %v2851_v59, %v2850_v44  ;;  %v2914_v57 = vrot.slane %v2913_v21, 2  ;;  %v2862_v14 = vadd.f32 %v2861_v20, %v8341_v19  ;;  %v2924_v17 = vrot.slane %v2901_v46, 4  ;;  %v2801_v15 = vpop.f32.mrb[5].mxu1 }
 0x389   : > { %v2846_v18 = vadd.f32 %v2845_v42, %v2844_v34  ;;  %v2908_v29 = vrot.slane %v2907_v47, 2  ;;  %v2856_v12 = vadd.f32 %v2855_v27, %v8345_v40  ;;  %v2918_v30 = vrot.slane %v2900_v0, 4 }
 0x38a   : > { %v2853_v60 = vrot.slane %v2852_v6, 1  ;;  %v2915_v24 = vadd.f32 %v2914_v57, %v2913_v21  ;;  %v2863_v58 = vrot.slane %v2862_v14, 2  ;;  %v2925_v45 = vadd.f32 %v2924_v17, %v2901_v46 }
 0x38b   : > { %v2847_v1 = vrot.slane %v2846_v18, 1  ;;  %v2909_v36 = vadd.f32 %v2908_v29, %v2907_v47  ;;  %v2857_v31 = vrot.slane %v2856_v12, 2  ;;  %v2919_v11 = vadd.f32 %v2918_v30, %v2900_v0  ;;  %v5728_v4 = vpop.f32.mrb[6].mxu1 }
 0x38c   : > { %v2854_v22 = vadd.f32 %v2853_v60, %v2852_v6  ;;  %v2916_v2 = vrot.slane %v2915_v24, 1  ;;  %v2864_v37 = vadd.f32 %v2863_v58, %v2862_v14  ;;  %v2926_v43 = vrot.slane %v2925_v45, 2  ;;  %v2811_v53 = vpop.f32.mrb[7].mxu1 }
 0x38d   : > { %v2848_v49 = vadd.f32 %v2847_v1, %v2846_v18  ;;  %v2910_v32 = vrot.slane %v2909_v36, 1  ;;  %v2858_v39 = vadd.f32 %v2857_v31, %v2856_v12  ;;  %v2920_v54 = vrot.slane %v2919_v11, 2 }
 0x38e   : > { %v2917_v41 = vadd.f32 %v2916_v2, %v2915_v24  ;;  %v2865_v48 = vrot.slane %v2864_v37, 1  ;;  %v2927_v23 = vadd.f32 %v2926_v43, %v2925_v45  ;;  %v8356_v9 = vadd.f32 %v5725_v13, %v8325_v63 }
 0x38f   : > { %v2891_v7 = vadd.f32 %v2854_v22, %v2848_v49  ;;  %v2911_v62 = vadd.f32 %v2910_v32, %v2909_v36  ;;  %v2859_v38 = vrot.slane %v2858_v39, 1  ;;  %v2921_v52 = vadd.f32 %v2920_v54, %v2919_v11 }
 0x390   : > { %v2866_v61 = vadd.f32 %v2865_v48, %v2864_v37  ;;  %v2928_v5 = vrot.slane %v2927_v23, 1  ;;  %v2873_v26 = vrot.slane %v8356_v9, 4  ;;  %v2903_v8 = vmul.f32 %v8356_v9, %v8356_v9 }
 0x391   : > { %v2954_v35 = vadd.f32 %v2917_v41, %v2911_v62  ;;  %v2860_v10 = vadd.f32 %v2859_v38, %v2858_v39  ;;  %v2922_v50 = vrot.slane %v2921_v52, 1  ;;  %v8362_v44 = vadd.f32 %v8325_v63, %v2801_v15 }
 0x392   : > { %v2929_v16 = vadd.f32 %v2928_v5, %v2927_v23  ;;  %v2874_v28 = vadd.f32 %v2873_v26, %v8356_v9  ;;  %v2936_v34 = vrot.slane %v2903_v8, 4  ;;  %v8366_v51 = vadd.f32 %v5728_v4, %v8325_v63 }
 0x393   : > { %v2892_v59 = vadd.f32 %v2891_v7, %v2860_v10  ;;  %v2923_v21 = vadd.f32 %v2922_v50, %v2921_v52  ;;  %v2867_v20 = vrot.slane %v8362_v44, 4  ;;  %v2902_v46 = vmul.f32 %v8362_v44, %v8362_v44 }
 0x394   : > { %v2875_v42 = vrot.slane %v2874_v28, 2  ;;  %v2937_v47 = vadd.f32 %v2936_v34, %v2903_v8  ;;  %v2885_v27 = vrot.slane %v8366_v51, 4  ;;  %v2905_v0 = vmul.f32 %v8366_v51, %v8366_v51 }
 0x395   : > { %v2955_v13 = vadd.f32 %v2954_v35, %v2923_v21  ;;  %v2868_v6 = vadd.f32 %v2867_v20, %v8362_v44  ;;  %v2893_v57 = vadd.f32 %v2892_v59, %v2866_v61  ;;  %v2930_v14 = vrot.slane %v2902_v46, 4 }
 0x396   : > { %v2876_v17 = vadd.f32 %v2875_v42, %v2874_v28  ;;  %v2938_v15 = vrot.slane %v2937_v47, 2  ;;  %v2886_v18 = vadd.f32 %v2885_v27, %v8366_v51  ;;  %v2948_v29 = vrot.slane %v2905_v0, 4 }
 0x397   : > { %v2869_v12 = vrot.slane %v2868_v6, 2  ;;  %v2931_v30 = vadd.f32 %v2930_v14, %v2902_v46  ;;  %v2956_v60 = vadd.f32 %v2955_v13, %v2929_v16  ;;  %v2841_v24 = vadd.f32 %v8325_v63, %v2811_v53 }
 0x398   : > { %v2939_v58 = vadd.f32 %v2938_v15, %v2937_v47  ;;  %v2887_v45 = vrot.slane %v2886_v18, 2  ;;  %v2949_v1 = vadd.f32 %v2948_v29, %v2905_v0  ;;  %v2877_v22 = vrot.slane %v2876_v17, 1 }
 0x399   : > { %v2870_v36 = vadd.f32 %v2869_v12, %v2868_v6  ;;  %v2932_v31 = vrot.slane %v2931_v30, 2  ;;  %v2879_v11 = vrot.slane %v2841_v24, 4  ;;  %v2904_v4 = vmul.f32 %v2841_v24, %v2841_v24 }
 0x39a   : > { %v2950_v2 = vrot.slane %v2949_v1, 2  ;;  %v2940_v39 = vrot.slane %v2939_v58, 1  ;;  %v2888_v54 = vadd.f32 %v2887_v45, %v2886_v18  ;;  %v2878_v63 = vadd.f32 %v2877_v22, %v2876_v17 }
 0x39b   : > { %v2871_v37 = vrot.slane %v2870_v36, 1  ;;  %v2933_v43 = vadd.f32 %v2932_v31, %v2931_v30  ;;  %v2880_v49 = vadd.f32 %v2879_v11, %v2841_v24  ;;  %v2942_v32 = vrot.slane %v2904_v4, 4 }
 0x39c   : > { %v2951_v53 = vadd.f32 %v2950_v2, %v2949_v1  ;;  %v2941_v5 = vadd.f32 %v2940_v39, %v2939_v58  ;;  %v2889_v26 = vrot.slane %v2888_v54, 1 }
 0x39d   : > { %v2872_v41 = vadd.f32 %v2871_v37, %v2870_v36  ;;  %v2934_v48 = vrot.slane %v2933_v43, 1  ;;  %v2881_v23 = vrot.slane %v2880_v49, 2  ;;  %v2943_v7 = vadd.f32 %v2942_v32, %v2904_v4 }
 0x39e   : > { %v2952_v16 = vrot.slane %v2951_v53, 1  ;;  %v2890_v21 = vadd.f32 %v2889_v26, %v2888_v54 }
 0x39f   : > { %v2894_v62 = vadd.f32 %v2893_v57, %v2872_v41  ;;  %v2935_v38 = vadd.f32 %v2934_v48, %v2933_v43  ;;  %v2882_v52 = vadd.f32 %v2881_v23, %v2880_v49  ;;  %v2944_v61 = vrot.slane %v2943_v7, 2 }
 0x3a0   : > { %v2953_v42 = vadd.f32 %v2952_v16, %v2951_v53 }
 0x3a1   : > { %v2957_v8 = vadd.f32 %v2956_v60, %v2935_v38  ;;  %v2883_v35 = vrot.slane %v2882_v52, 1  ;;  %v2895_v10 = vadd.f32 %v2894_v62, %v2878_v63  ;;  %v2945_v50 = vadd.f32 %v2944_v61, %v2943_v7 }
 0x3a3   : > { %v2884_v28 = vadd.f32 %v2883_v35, %v2882_v52  ;;  %v2946_v34 = vrot.slane %v2945_v50, 1  ;;  %v2958_v59 = vadd.f32 %v2957_v8, %v2941_v5 }
 0x3a5   : > { %v2896_v20 = vadd.f32 %v2895_v10, %v2884_v28  ;;  %v2947_v46 = vadd.f32 %v2946_v34, %v2945_v50 }
 0x3a7   : > { %v2897_v47 = vadd.f32 %v2896_v20, %v2890_v21  ;;  %v2959_v27 = vadd.f32 %v2958_v59, %v2947_v46 }
 0x3a9   : > { %v2960_v0 = vadd.f32 %v2959_v27, %v2953_v42  ;;  %v2961_v13 = vmul.f32 0.015625, %v2897_v47 }
 0x3ab   : > { %v2962_v6 = vmul.f32 0.015625, %v2960_v0  ;;  %v2963_v57 = vmul.f32 %v2961_v13, %v2961_v13  ;;  %v2972_v14 = vsub.f32 %v2841_v24, %v2961_v13  ;;  %v2973_v17 = vsub.f32 %v8366_v51, %v2961_v13  ;;  %v4649_v51 = vld [vmem:[%s9183_s7] ss:$0 sm:$0xff] }
 0x3ac   : > { %v2966_v15 = vsub.f32 %v8331_v3, %v2961_v13  ;;  %v2967_v18 = vsub.f32 %v8328_v25, %v2961_v13  ;;  %v2968_v29 = vsub.f32 %v8345_v40, %v2961_v13  ;;  %v2969_v12 = vsub.f32 %v8341_v19, %v2961_v13  ;;  %v4650_v19 = vld [vmem:[%s9184_s8] ss:$0 sm:$0xff] }
 0x3ad   : > { %v2964_v30 = vsub.f32 %v2962_v6, %v2963_v57  ;;  %v2970_v60 = vsub.f32 %v8362_v44, %v2961_v13  ;;  %v2971_v58 = vsub.f32 %v8356_v9, %v2961_v13 }
 0x3af   : > { %v2965_v45 = vmax.f32 %v2964_v30, 0.0  ;;  %v3103_v30 = vrot.slane %v9219_v33, 1 }
 0x3b1   : > { %v2974_v1 = vadd.f32 1e-05, %v2965_v45 }
 0x3b3   : > { %6815 = vrsqrt.f32 %v2974_v1  ;;  %v3121_v1 = vld [vmem:[%s9185_s9 + $0x10] sm:$0xff] }
 0x3bd   : > { %v6816_v36 = vpop.eup %6815 }
 0x3be   : > { %v2982_v3 = vmul.f32 %v6816_v36, %v2972_v14  ;;  %v2983_v24 = vmul.f32 %v6816_v36, %v2973_v17  ;;  %v2976_v25 = vmul.f32 %v6816_v36, %v2966_v15  ;;  %v2977_v31 = vmul.f32 %v6816_v36, %v2967_v18 }
 0x3bf   : > { %v2978_v40 = vmul.f32 %v6816_v36, %v2968_v29  ;;  %v2979_v44 = vmul.f32 %v6816_v36, %v2969_v12  ;;  %v2980_v11 = vmul.f32 %v6816_v36, %v2970_v60  ;;  %v2981_v9 = vmul.f32 %v6816_v36, %v2971_v58  ;;  %v3122_v36 = vld [vmem:[%s9185_s9 + $0x18] sm:$0xff] }
 0x3c0   : > { %v2997_v4 = vmul.f32 %v4649_v51, %v2982_v3  ;;  %v2998_v22 = vmul.f32 %v4649_v51, %v2983_v24  ;;  %v2991_v2 = vmul.f32 %v4649_v51, %v2976_v25  ;;  %v2992_v37 = vmul.f32 %v4649_v51, %v2977_v31 }
 0x3c1   : > { %v2993_v43 = vmul.f32 %v4649_v51, %v2978_v40  ;;  %v2994_v49 = vmul.f32 %v4649_v51, %v2979_v44  ;;  %v2995_v32 = vmul.f32 %v4649_v51, %v2980_v11  ;;  %v2996_v39 = vmul.f32 %v4649_v51, %v2981_v9 }
 0x3c2   : > { %v3012_v54 = vadd.f32 %v4650_v19, %v2997_v4  ;;  %v3013_v41 = vadd.f32 %v4650_v19, %v2998_v22  ;;  %v3006_v48 = vadd.f32 %v4650_v19, %v2991_v2  ;;  %v3007_v23 = vadd.f32 %v4650_v19, %v2992_v37 }
 0x3c3   : > { %v3008_v7 = vadd.f32 %v4650_v19, %v2993_v43  ;;  %v3009_v63 = vadd.f32 %v4650_v19, %v2994_v49  ;;  %v3010_v53 = vadd.f32 %v4650_v19, %v2995_v32  ;;  %v3011_v62 = vadd.f32 %v4650_v19, %v2996_v39 }
 0x3c4   : > { %v3020_v38 = vmul.f32 0.01, %v3012_v54  ;;  %v3021_v52 = vmul.f32 0.01, %v3013_v41  ;;  %v3014_v61 = vmul.f32 0.01, %v3006_v48  ;;  %v6376_v40 = vpack.c.bf16 %v3122_v36, %v3121_v1 }
 0x3c5   : > { %v3015_v5 = vmul.f32 0.01, %v3007_v23  ;;  %v3016_v26 = vmul.f32 0.01, %v3008_v7  ;;  %v3017_v8 = vmul.f32 0.01, %v3009_v63 }
 0x3c6   : > { %v3028_v35 = vmax.f32 %v3012_v54, %v3020_v38  ;;  %v3029_v10 = vmax.f32 %v3013_v41, %v3021_v52  ;;  %v3022_v50 = vmax.f32 %v3006_v48, %v3014_v61  ;;  %v3018_v16 = vmul.f32 0.01, %v3010_v53 }
 0x3c7   : > { %v3023_v28 = vmax.f32 %v3007_v23, %v3015_v5  ;;  %v3019_v34 = vmul.f32 0.01, %v3011_v62  ;;  %v3024_v59 = vmax.f32 %v3008_v7, %v3016_v26  ;;  %v3025_v21 = vmax.f32 %v3009_v63, %v3017_v8  ;;  %v3123_v7 = vld [vmem:[%s9185_s9 + $0x20] sm:$0xff]  ;;  %v3124_v63 = vld [vmem:[%s9185_s9 + $0x28] sm:$0xff] }
 0x3c8   : > { %v3033_v20 = vadd.f32 %v3029_v10, %v3028_v35  ;;  %v3026_v46 = vmax.f32 %v3010_v53, %v3018_v16  ;;  %v3087_v29 = vrot.slane %v9219_v33, 7  ;;  %v8414_v11 = vsel %vm3113_vm5, %v3103_v30, 0.0  ;;  %v4668_v30 = vld [vmem:[%s9185_s9 + $0x108] sm:$0xff] }
 0x3c9   : > { %v3030_v42 = vadd.f32 %v3023_v28, %v3022_v50  ;;  %v3027_v47 = vmax.f32 %v3011_v62, %v3019_v34  ;;  %v3031_v27 = vadd.f32 %v3025_v21, %v3024_v59  ;;  %v6380_v10 = vpack.c.bf16 %v3124_v63, %v3123_v7  ;;  %v3125_v28 = vld [vmem:[%s9185_s9 + $0x30] sm:$0xff]  ;;  %v3126_v34 = vld [vmem:[%s9185_s9 + $0x38] sm:$0xff]  ;;  %v4679_v63 = vld [vmem:[%s9185_s9 + $0x160] sm:$0xff] }
 0x3ca   : > { %v3061_v0 = vrot.slane %v3033_v20, %v9216_v56  ;;  %v8409_v31 = vsel %vm3097_vm4, 0.0, %v3087_v29 }
 0x3cb   : > { %v3040_v13 = vrot.slane %v3030_v42, %v9216_v56  ;;  %v3032_v6 = vadd.f32 %v3027_v47, %v3026_v46  ;;  %v3047_v57 = vrot.slane %v3031_v27, %v9216_v56  ;;  %v6384_v46 = vpack.c.bf16 %v3126_v34, %v3125_v28  ;;  %v3127_v42 = vld [vmem:[%s9185_s9 + $0x40] sm:$0xff]  ;;  %v3128_v47 = vld [vmem:[%s9185_s9 + $0x48] sm:$0xff]  ;;  %v4681_v28 = vld [vmem:[%s9185_s9 + $0x170] sm:$0xff] }
 0x3cc   : > { %v3069_v14 = vrot.slane %v3061_v0, 4  ;;  %v6388_v27 = vpack.c.bf16 %v3128_v47, %v3127_v42  ;;  %v4682_v34 = vld [vmem:[%s9185_s9 + $0x178] sm:$0xff]  ;;  %v4683_v42 = vld [vmem:[%s9185_s9 + $0x180] sm:$0xff]  ;;  %v4684_v47 = vld [vmem:[%s9185_s9 + $0x188] sm:$0xff] }
 0x3cd   : > { %v3066_v17 = vrot.slane %v3040_v13, 4  ;;  %v3054_v15 = vrot.slane %v3032_v6, %v9216_v56  ;;  %v3067_v18 = vrot.slane %v3047_v57, 4 }
 0x3ce   : > { %v3077_v12 = vadd.f32 %v3069_v14, %v3061_v0  ;;  %v3129_v0 = vld [vmem:[%s9185_s9 + $0x50] sm:$0xff]  ;;  %v3132_v14 = vld [vmem:[%s9185_s9 + $0x68] sm:$0xff] }
 0x3cf   : > { %v3074_v60 = vadd.f32 %v3066_v17, %v3040_v13  ;;  %v3068_v58 = vrot.slane %v3054_v15, 4  ;;  %v3075_v45 = vadd.f32 %v3067_v18, %v3047_v57  ;;  %v3130_v13 = vld [vmem:[%s9185_s9 + $0x58] sm:$0xff]  ;;  %v3131_v57 = vld [vmem:[%s9185_s9 + $0x60] sm:$0xff] }
 0x3d0   : > { %v8402_v51 = vmul.f32 0.25, %v3077_v12  ;;  %v6392_v6 = vpack.c.bf16 %v3130_v13, %v3129_v0  ;;  %v6396_v17 = vpack.c.bf16 %v3132_v14, %v3131_v57  ;;  %v3134_v18 = vld [vmem:[%s9185_s9 + $0x78] sm:$0xff]  ;;  %v4667_v12 = vld [vmem:[%s9185_s9 + $0x100] sm:$0xff]  ;;  %v4685_v0 = vld [vmem:[%s9185_s9 + $0x190] sm:$0xff] }
 0x3d1   : > { %v8404_v3 = vmul.f32 0.25, %v3074_v60  ;;  %v3076_v24 = vadd.f32 %v3068_v58, %v3054_v15  ;;  %v8406_v25 = vmul.f32 0.25, %v3075_v45  ;;  %v3133_v15 = vld [vmem:[%s9185_s9 + $0x70] sm:$0xff]  ;;  %v6404_v60 = vpack.c.bf16 %v4668_v30, %v4667_v12  ;;  %v4670_v45 = vld [vmem:[%s9185_s9 + $0x118] sm:$0xff]  ;;  %v4687_v57 = vld [vmem:[%s9185_s9 + $0x1a0] sm:$0xff] }
 0x3d2   : > { %v3091_v19 = vrot.slane %v8402_v51, 7  ;;  %v3107_v44 = vrot.slane %v8402_v51, 1  ;;  %v6400_v29 = vpack.c.bf16 %v3134_v18, %v3133_v15  ;;  %v4669_v58 = vld [vmem:[%s9185_s9 + $0x110] sm:$0xff]  ;;  %v4686_v13 = vld [vmem:[%s9185_s9 + $0x198] sm:$0xff]  ;;  %v4688_v14 = vld [vmem:[%s9185_s9 + $0x1a8] sm:$0xff] }
 0x3d3   : > { %v3152_v9 = vcombine.low %v9219_v33, %v8404_v3  ;;  %v8418_v4 = vmul.f32 0.25, %v3076_v24  ;;  %v3088_v22 = vrot.slane %v8404_v3, 7  ;;  %v3089_v2 = vrot.slane %v8406_v25, 7  ;;  %v4671_v24 = vld [vmem:[%s9185_s9 + $0x120] sm:$0xff]  ;;  %v4689_v15 = vld [vmem:[%s9185_s9 + $0x1b0] sm:$0xff]  ;;  %v4690_v18 = vld [vmem:[%s9185_s9 + $0x1b8] sm:$0xff] }
 0x3d4   : > { %v8423_v37 = vsel %vm3097_vm4, 0.0, %v3091_v19  ;;  %v3104_v43 = vrot.slane %v8404_v3, 1  ;;  %v8427_v49 = vsel %vm3113_vm5, %v3107_v44, 0.0  ;;  %v3105_v32 = vrot.slane %v8406_v25, 1  ;;  %v4672_v19 = vld [vmem:[%s9185_s9 + $0x128] sm:$0xff]  ;;  %v4673_v44 = vld [vmem:[%s9185_s9 + $0x130] sm:$0xff] }
 0x3d5   : > { %5761 = vmatprep.mubr.f32.mxu0 %v3152_v9  ;;  %v8432_v39 = vcombine.low %v8406_v25, %v8418_v4  ;;  %v8435_v54 = vsel %vm3097_vm4, 0.0, %v3088_v22  ;;  %v3729_v41 = vcombine.low %v8423_v37, %v8409_v31  ;;  %v3090_v48 = vrot.slane %v8418_v4, 7  ;;  %v4674_v9 = vld [vmem:[%s9185_s9 + $0x138] sm:$0xff]  ;;  %v4691_v12 = vld [vmem:[%s9185_s9 + $0x1c0] sm:$0xff] }
 0x3d6   : > { %v3235_v23 = vcombine.low %v8409_v31, %v8435_v54  ;;  %v8449_v53 = vsel %vm3097_vm4, 0.0, %v3089_v2  ;;  %v3921_v62 = vcombine.low %v8427_v49, %v8414_v11  ;;  %v8458_v52 = vsel %vm3113_vm5, %v3104_v43, 0.0  ;;  %v4675_v2 = vld [vmem:[%s9185_s9 + $0x140] sm:$0xff]  ;;  %v4676_v43 = vld [vmem:[%s9185_s9 + $0x148] sm:$0xff]  ;;  %v4694_v30 = vld [vmem:[%s9185_s9 + $0x1d8] sm:$0xff] }
 0x3d7   : > { %5762 = vmatmul.mubr.f32.vlgmr.msra.gmra.mrb[32].mxu0 %v8432_v39  ;;  %v8455_v38 = vsel %vm3097_vm4, 0.0, %v3090_v48  ;;  %v3106_v61 = vrot.slane %v8418_v4, 1  ;;  %v8462_v5 = vsel %vm3113_vm5, %v3105_v32, 0.0  ;;  %v3434_v8 = vcombine.low %v8435_v54, %v8449_v53  ;;  %v4677_v48 = vld [vmem:[%s9185_s9 + $0x150] sm:$0xff]  ;;  %v4692_v54 = vld [vmem:[%s9185_s9 + $0x1c8] sm:$0xff]  ;;  %v4755_v31 = vld [vmem:[%s9185_s9 + $0x3c0] sm:$0xff] }
 0x3d8   : > { %6375 = vmatpush3.bf16.msra.mxu0 %v8319_v55  ;;  %5796 = vmatprep.mubr.f32.mxu0 %v3235_v23  ;;  %v8467_v26 = vcombine.low %v8449_v53, %v8455_v38  ;;  %v3435_v35 = vcombine.low %v8455_v38, %v8423_v37  ;;  %v3532_v16 = vcombine.low %v8404_v3, %v8406_v25  ;;  %v4678_v23 = vld [vmem:[%s9185_s9 + $0x158] sm:$0xff]  ;;  %v4707_v38 = vld [vmem:[%s9185_s9 + $0x240] sm:$0xff]  ;;  %v4708_v3 = vld [vmem:[%s9185_s9 + $0x248] sm:$0xff] }
 0x3d9   : > { %6377 = vmatprep.subr.bf16.mxu0 %v6376_v40  ;;  %v8474_v50 = vsel %vm3113_vm5, %v3106_v61, 0.0  ;;  %v3533_v55 = vcombine.low %v8418_v4, %v8402_v51  ;;  %v3631_v21 = vcombine.low %v8458_v52, %v8462_v5  ;;  %v6408_v1 = vpack.c.bf16 %v4670_v45, %v4669_v58  ;;  %v4680_v61 = vld [vmem:[%s9185_s9 + $0x168] sm:$0xff]  ;;  %v4695_v58 = vld [vmem:[%s9185_s9 + $0x1e0] sm:$0xff] }
 0x3da   : > { %v8488_v59 = vcombine.low %v8462_v5, %v8474_v50  ;;  %v3632_v20 = vcombine.low %v8474_v50, %v8427_v49  ;;  %v3335_v36 = vcombine.low %v8414_v11, %v8458_v52  ;;  %v6416_v22 = vpack.c.bf16 %v4674_v9, %v4673_v44  ;;  %v4696_v45 = vld [vmem:[%s9185_s9 + $0x1e8] sm:$0xff]  ;;  %v4723_v4 = vld [vmem:[%s9185_s9 + $0x2c0] sm:$0xff]  ;;  %v4178_v11 = vld [vmem:[%s9189_s13 + $0x90] sm:$0xff] }
 0x3db   : > { %v6420_v32 = vpack.c.bf16 %v4676_v43, %v4675_v2  ;;  %v6424_v7 = vpack.c.bf16 %v4678_v23, %v4677_v48  ;;  %v6452_v53 = vpack.c.bf16 %v4692_v54, %v4691_v12  ;;  %v4700_v44 = vld [vmem:[%s9185_s9 + $0x208] sm:$0xff]  ;;  %v4702_v2 = vld [vmem:[%s9185_s9 + $0x218] sm:$0xff]  ;;  %v6484_v25 = vpack.c.bf16 %v4708_v3, %v4707_v38  ;;  %v4721_v12 = vld [vmem:[%s9185_s9 + $0x2b0] sm:$0xff] }
 0x3dc   : > { %6379 = vmatpush3.bf16.msra.mxu0 %v6376_v40  ;;  %v6412_v40 = vpack.c.bf16 %v4672_v19, %v4671_v24  ;;  %v4698_v24 = vld [vmem:[%s9185_s9 + $0x1f8] sm:$0xff]  ;;  %v4704_v48 = vld [vmem:[%s9185_s9 + $0x228] sm:$0xff]  ;;  %v4739_v50 = vld [vmem:[%s9185_s9 + $0x340] sm:$0xff] }
 0x3dd   : > { %6381 = vmatprep.subr.bf16.mxu0 %v6380_v10  ;;  %v4722_v54 = vld [vmem:[%s9185_s9 + $0x2b8] sm:$0xff]  ;;  %v4724_v52 = vld [vmem:[%s9185_s9 + $0x2c8] sm:$0xff]  ;;  %v4743_v3 = vld [vmem:[%s9185_s9 + $0x360] sm:$0xff] }
 0x3de   : > { %v6516_v5 = vpack.c.bf16 %v4724_v52, %v4723_v4  ;;  %v4756_v37 = vld [vmem:[%s9185_s9 + $0x3c8] sm:$0xff]  ;;  %v4761_v4 = vld [vmem:[%s9185_s9 + $0x3f0] sm:$0xff]  ;;  %v4762_v52 = vld [vmem:[%s9185_s9 + $0x3f8] sm:$0xff] }
 0x3df   : > { %v4179_v49 = vld [vmem:[%s9189_s13 + $0x98] sm:$0xff] }
 0x3e0   : > { %6383 = vmatpush3.bf16.msra.mxu0 %v6380_v10  ;;  %v6428_v10 = vpack.c.bf16 %v4680_v61, %v4679_v63  ;;  %v4706_v63 = vld [vmem:[%s9185_s9 + $0x238] sm:$0xff] }
 0x3e1   : > { %6385 = vmatprep.subr.bf16.mxu0 %v6384_v46 }
 0x3e4   : > { %6387 = vmatpush3.bf16.msra.mxu0 %v6384_v46  ;;  %v6432_v46 = vpack.c.bf16 %v4682_v34, %v4681_v28  ;;  %v4711_v28 = vld [vmem:[%s9185_s9 + $0x260] sm:$0xff]  ;;  %v4712_v34 = vld [vmem:[%s9185_s9 + $0x268] sm:$0xff] }
 0x3e5   : > { %6389 = vmatprep.subr.bf16.mxu0 %v6388_v27 }
 0x3e8   : > { %6391 = vmatpush3.bf16.msra.mxu0 %v6388_v27  ;;  %v6436_v27 = vpack.c.bf16 %v4684_v47, %v4683_v42  ;;  %v4713_v42 = vld [vmem:[%s9185_s9 + $0x270] sm:$0xff]  ;;  %v4714_v47 = vld [vmem:[%s9185_s9 + $0x278] sm:$0xff] }
 0x3e9   : > { %6393 = vmatprep.subr.bf16.mxu0 %v6392_v6 }
 0x3ec   : > { %6395 = vmatpush3.bf16.msra.mxu0 %v6392_v6  ;;  %v6440_v6 = vpack.c.bf16 %v4686_v13, %v4685_v0  ;;  %v4715_v0 = vld [vmem:[%s9185_s9 + $0x280] sm:$0xff]  ;;  %v4716_v13 = vld [vmem:[%s9185_s9 + $0x288] sm:$0xff] }
 0x3ed   : > { %6397 = vmatprep.subr.bf16.mxu0 %v6396_v17 }
 0x3f0   : > { %6399 = vmatpush3.bf16.msra.mxu0 %v6396_v17  ;;  %v6444_v17 = vpack.c.bf16 %v4688_v14, %v4687_v57  ;;  %v4717_v57 = vld [vmem:[%s9185_s9 + $0x290] sm:$0xff]  ;;  %v4718_v14 = vld [vmem:[%s9185_s9 + $0x298] sm:$0xff] }
 0x3f1   : > { %6401 = vmatprep.subr.bf16.mxu0 %v6400_v29 }
 0x3f4   : > { %6403 = vmatpush3.bf16.msra.mxu0 %v6400_v29  ;;  %v6448_v29 = vpack.c.bf16 %v4690_v18, %v4689_v15  ;;  %v4719_v15 = vld [vmem:[%s9185_s9 + $0x2a0] sm:$0xff]  ;;  %v4720_v18 = vld [vmem:[%s9185_s9 + $0x2a8] sm:$0xff] }
 0x3f5   : > { %6405 = vmatprep.subr.bf16.mxu0 %v6404_v60 }
 0x3f7   : > { %5797 = vmatmul.mubr.f32.vlgmr.msra.gmra.mrb[32].mxu0 %v8467_v26 }
 0x3f8   : > { %6407 = vmatpush3.bf16.msra.mxu0 %v6404_v60  ;;  %5831 = vmatprep.mubr.f32.mxu0 %v3335_v36  ;;  %v4697_v36 = vld [vmem:[%s9185_s9 + $0x1f0] sm:$0xff] }
 0x3f9   : > { %6409 = vmatprep.subr.bf16.mxu0 %v6408_v1  ;;  %v6464_v19 = vpack.c.bf16 %v4698_v24, %v4697_v36  ;;  %v4731_v24 = vld [vmem:[%s9185_s9 + $0x300] sm:$0xff] }
 0x3fc   : > { %6411 = vmatpush3.bf16.msra.mxu0 %v6408_v1  ;;  %v6460_v1 = vpack.c.bf16 %v4696_v45, %v4695_v58  ;;  %v4729_v45 = vld [vmem:[%s9185_s9 + $0x2f0] sm:$0xff] }
 0x3fd   : > { %6413 = vmatprep.subr.bf16.mxu0 %v6412_v40 }
 0x400   : > { %6415 = vmatpush3.bf16.msra.mxu0 %v6412_v40  ;;  %v4699_v40 = vld [vmem:[%s9185_s9 + $0x200] sm:$0xff] }
 0x401   : > { %6417 = vmatprep.subr.bf16.mxu0 %v6416_v22  ;;  %v6468_v9 = vpack.c.bf16 %v4700_v44, %v4699_v40  ;;  %v4733_v44 = vld [vmem:[%s9185_s9 + $0x310] sm:$0xff] }
 0x404   : > { %6419 = vmatpush3.bf16.msra.mxu0 %v6416_v22  ;;  %v4701_v22 = vld [vmem:[%s9185_s9 + $0x210] sm:$0xff] }
 0x405   : > { %6421 = vmatprep.subr.bf16.mxu0 %v6420_v32  ;;  %v6472_v43 = vpack.c.bf16 %v4702_v2, %v4701_v22  ;;  %v4735_v2 = vld [vmem:[%s9185_s9 + $0x320] sm:$0xff] }
 0x408   : > { %6423 = vmatpush3.bf16.msra.mxu0 %v6420_v32  ;;  %v4703_v32 = vld [vmem:[%s9185_s9 + $0x220] sm:$0xff] }
 0x409   : > { %6425 = vmatprep.subr.bf16.mxu0 %v6424_v7  ;;  %v6476_v23 = vpack.c.bf16 %v4704_v48, %v4703_v32  ;;  %v4737_v48 = vld [vmem:[%s9185_s9 + $0x330] sm:$0xff] }
 0x40c   : > { %6427 = vmatpush3.bf16.msra.mxu0 %v6424_v7  ;;  %v4705_v7 = vld [vmem:[%s9185_s9 + $0x230] sm:$0xff] }
 0x40d   : > { %6429 = vmatprep.subr.bf16.mxu0 %v6428_v10  ;;  %v6480_v61 = vpack.c.bf16 %v4706_v63, %v4705_v7  ;;  %v4741_v63 = vld [vmem:[%s9185_s9 + $0x350] sm:$0xff] }
 0x410   : > { %6431 = vmatpush3.bf16.msra.mxu0 %v6428_v10 }
 0x411   : > { %6433 = vmatprep.subr.bf16.mxu0 %v6432_v46 }
 0x414   : > { %6435 = vmatpush3.bf16.msra.mxu0 %v6432_v46  ;;  %v6492_v46 = vpack.c.bf16 %v4712_v34, %v4711_v28  ;;  %v4747_v34 = vld [vmem:[%s9185_s9 + $0x380] sm:$0xff] }
 0x415   : > { %6437 = vmatprep.subr.bf16.mxu0 %v6436_v27 }
 0x417   : > { %5832 = vmatmul.mubr.f32.vlgmr.msra.gmra.mrb[32].mxu0 %v8488_v59 }
 0x418   : > { %6439 = vmatpush3.bf16.msra.mxu0 %v6436_v27  ;;  %5866 = vmatprep.mubr.f32.mxu0 %v3434_v8  ;;  %v4693_v8 = vld [vmem:[%s9185_s9 + $0x1d0] sm:$0xff]  ;;  %v6496_v27 = vpack.c.bf16 %v4714_v47, %v4713_v42 }
 0x419   : > { %6441 = vmatprep.subr.bf16.mxu0 %v6440_v6  ;;  %v6456_v60 = vpack.c.bf16 %v4694_v30, %v4693_v8  ;;  %v4727_v30 = vld [vmem:[%s9185_s9 + $0x2e0] sm:$0xff]  ;;  %v4749_v47 = vld [vmem:[%s9185_s9 + $0x390] sm:$0xff] }
 0x41c   : > { %6443 = vmatpush3.bf16.msra.mxu0 %v6440_v6  ;;  %v6500_v6 = vpack.c.bf16 %v4716_v13, %v4715_v0  ;;  %v4751_v13 = vld [vmem:[%s9185_s9 + $0x3a0] sm:$0xff] }
 0x41d   : > { %6445 = vmatprep.subr.bf16.mxu0 %v6444_v17 }
 0x420   : > { %6447 = vmatpush3.bf16.msra.mxu0 %v6444_v17  ;;  %v6504_v17 = vpack.c.bf16 %v4718_v14, %v4717_v57  ;;  %v4753_v14 = vld [vmem:[%s9185_s9 + $0x3b0] sm:$0xff] }
 0x421   : > { %6449 = vmatprep.subr.bf16.mxu0 %v6448_v29 }
 0x424   : > { %6451 = vmatpush3.bf16.msra.mxu0 %v6448_v29  ;;  %v6508_v29 = vpack.c.bf16 %v4720_v18, %v4719_v15  ;;  %v4758_v18 = vld [vmem:[%s9185_s9 + $0x3d8] sm:$0xff] }
 0x425   : > { %6453 = vmatprep.subr.bf16.mxu0 %v6452_v53 }
 0x428   : > { %6455 = vmatpush3.bf16.msra.mxu0 %v6452_v53  ;;  %v6512_v53 = vpack.c.bf16 %v4722_v54, %v4721_v12  ;;  %v4759_v12 = vld [vmem:[%s9185_s9 + $0x3e0] sm:$0xff]  ;;  %v4760_v54 = vld [vmem:[%s9185_s9 + $0x3e8] sm:$0xff] }
 0x429   : > { %6457 = vmatprep.subr.bf16.mxu0 %v6456_v60 }
 0x42c   : > { %6459 = vmatpush3.bf16.msra.mxu0 %v6456_v60  ;;  %v4728_v60 = vld [vmem:[%s9185_s9 + $0x2e8] sm:$0xff] }
 0x42d   : > { %6461 = vmatprep.subr.bf16.mxu0 %v6460_v1  ;;  %v6524_v58 = vpack.c.bf16 %v4728_v60, %v4727_v30  ;;  %v4765_v30 = vld [vmem:[%s9185_s9 + $0x410] sm:$0xff]  ;;  %v4766_v60 = vld [vmem:[%s9185_s9 + $0x418] sm:$0xff] }
 0x430   : > { %6463 = vmatpush3.bf16.msra.mxu0 %v6460_v1  ;;  %v4730_v1 = vld [vmem:[%s9185_s9 + $0x2f8] sm:$0xff] }
 0x431   : > { %6465 = vmatprep.subr.bf16.mxu0 %v6464_v19  ;;  %v6528_v36 = vpack.c.bf16 %v4730_v1, %v4729_v45  ;;  %v6600_v45 = vpack.c.bf16 %v4766_v60, %v4765_v30  ;;  %v4767_v1 = vld [vmem:[%s9185_s9 + $0x420] sm:$0xff]  ;;  %v4190_v30 = vld [vmem:[%s9189_s13 + $0xf0] sm:$0xff]  ;;  %v4191_v60 = vld [vmem:[%s9189_s13 + $0xf8] sm:$0xff] }
 0x434   : > { %6467 = vmatpush3.bf16.msra.mxu0 %v6464_v19  ;;  %v4732_v19 = vld [vmem:[%s9185_s9 + $0x308] sm:$0xff] }
 0x435   : > { %6469 = vmatprep.subr.bf16.mxu0 %v6468_v9  ;;  %v6532_v40 = vpack.c.bf16 %v4732_v19, %v4731_v24 }
 0x437   : > { %5867 = vmatmul.mubr.f32.vlgmr.msra.gmra.mrb[32].mxu0 %v3435_v35  ;;  %v4709_v35 = vld [vmem:[%s9185_s9 + $0x250] sm:$0xff] }
 0x438   : > { %6471 = vmatpush3.bf16.msra.mxu0 %v6468_v9  ;;  %5901 = vmatprep.mubr.f32.mxu0 %v3532_v16  ;;  %v4710_v16 = vld [vmem:[%s9185_s9 + $0x258] sm:$0xff] }
 0x439   : > { %6473 = vmatprep.subr.bf16.mxu0 %v6472_v43  ;;  %v6488_v10 = vpack.c.bf16 %v4710_v16, %v4709_v35  ;;  %v4734_v9 = vld [vmem:[%s9185_s9 + $0x318] sm:$0xff]  ;;  %v4745_v16 = vld [vmem:[%s9185_s9 + $0x370] sm:$0xff] }
 0x43a   : > { %v6536_v22 = vpack.c.bf16 %v4734_v9, %v4733_v44  ;;  %v4773_v9 = vld [vmem:[%s9185_s9 + $0x450] sm:$0xff] }
 0x43c   : > { %6475 = vmatpush3.bf16.msra.mxu0 %v6472_v43  ;;  %v4736_v43 = vld [vmem:[%s9185_s9 + $0x328] sm:$0xff] }
 0x43d   : > { %6477 = vmatprep.subr.bf16.mxu0 %v6476_v23  ;;  %v6540_v32 = vpack.c.bf16 %v4736_v43, %v4735_v2  ;;  %v4775_v43 = vld [vmem:[%s9185_s9 + $0x460] sm:$0xff] }
 0x440   : > { %6479 = vmatpush3.bf16.msra.mxu0 %v6476_v23  ;;  %v4738_v23 = vld [vmem:[%s9185_s9 + $0x338] sm:$0xff] }
 0x441   : > { %6481 = vmatprep.subr.bf16.mxu0 %v6480_v61  ;;  %v6544_v7 = vpack.c.bf16 %v4738_v23, %v4737_v48  ;;  %v4777_v23 = vld [vmem:[%s9185_s9 + $0x470] sm:$0xff] }
 0x444   : > { %6483 = vmatpush3.bf16.msra.mxu0 %v6480_v61  ;;  %v4742_v61 = vld [vmem:[%s9185_s9 + $0x358] sm:$0xff] }
 0x445   : > { %6485 = vmatprep.subr.bf16.mxu0 %v6484_v25  ;;  %v6552_v38 = vpack.c.bf16 %v4742_v61, %v4741_v63  ;;  %v4160_v61 = vld [vmem:[%s9189_s13] sm:$0xff] }
 0x448   : > { %6487 = vmatpush3.bf16.msra.mxu0 %v6484_v25  ;;  %v4744_v25 = vld [vmem:[%s9185_s9 + $0x368] sm:$0xff] }
 0x449   : > { %6489 = vmatprep.subr.bf16.mxu0 %v6488_v10  ;;  %v6556_v35 = vpack.c.bf16 %v4744_v25, %v4743_v3  ;;  %v4162_v25 = vld [vmem:[%s9189_s13 + $0x10] sm:$0xff] }
 0x44c   : > { %6491 = vmatpush3.bf16.msra.mxu0 %v6488_v10  ;;  %v4746_v10 = vld [vmem:[%s9185_s9 + $0x378] sm:$0xff] }
 0x44d   : > { %6493 = vmatprep.subr.bf16.mxu0 %v6492_v46  ;;  %v6560_v28 = vpack.c.bf16 %v4746_v10, %v4745_v16  ;;  %v4180_v10 = vld [vmem:[%s9189_s13 + $0xa0] sm:$0xff] }
 0x450   : > { %6495 = vmatpush3.bf16.msra.mxu0 %v6492_v46  ;;  %v4748_v46 = vld [vmem:[%s9185_s9 + $0x388] sm:$0xff] }
 0x451   : > { %6497 = vmatprep.subr.bf16.mxu0 %v6496_v27  ;;  %v6564_v42 = vpack.c.bf16 %v4748_v46, %v4747_v34  ;;  %v4164_v46 = vld [vmem:[%s9189_s13 + $0x20] sm:$0xff] }
 0x454   : > { %6499 = vmatpush3.bf16.msra.mxu0 %v6496_v27  ;;  %v4750_v27 = vld [vmem:[%s9185_s9 + $0x398] sm:$0xff] }
 0x455   : > { %6501 = vmatprep.subr.bf16.mxu0 %v6500_v6  ;;  %v6568_v0 = vpack.c.bf16 %v4750_v27, %v4749_v47  ;;  %v4182_v27 = vld [vmem:[%s9189_s13 + $0xb0] sm:$0xff] }
 0x457   : > { %5902 = vmatmul.mubr.f32.vlgmr.msra.gmra.mrb[32].mxu0 %v3533_v55  ;;  %v4725_v55 = vld [vmem:[%s9185_s9 + $0x2d0] sm:$0xff] }
 0x458   : > { %6503 = vmatpush3.bf16.msra.mxu0 %v6500_v6  ;;  %5936 = vmatprep.mubr.f32.mxu0 %v3631_v21  ;;  %v4726_v21 = vld [vmem:[%s9185_s9 + $0x2d8] sm:$0xff]  ;;  %v4752_v6 = vld [vmem:[%s9185_s9 + $0x3a8] sm:$0xff] }
 0x459   : > { %6505 = vmatprep.subr.bf16.mxu0 %v6504_v17  ;;  %v6520_v8 = vpack.c.bf16 %v4726_v21, %v4725_v55  ;;  %v6572_v57 = vpack.c.bf16 %v4752_v6, %v4751_v13  ;;  %v4763_v55 = vld [vmem:[%s9185_s9 + $0x400] sm:$0xff]  ;;  %v4764_v21 = vld [vmem:[%s9185_s9 + $0x408] sm:$0xff]  ;;  %v4166_v6 = vld [vmem:[%s9189_s13 + $0x30] sm:$0xff] }
 0x45c   : > { %6507 = vmatpush3.bf16.msra.mxu0 %v6504_v17  ;;  %v4754_v17 = vld [vmem:[%s9185_s9 + $0x3b8] sm:$0xff] }
 0x45d   : > { %6509 = vmatprep.subr.bf16.mxu0 %v6508_v29  ;;  %v6576_v15 = vpack.c.bf16 %v4754_v17, %v4753_v14  ;;  %v4184_v17 = vld [vmem:[%s9189_s13 + $0xc0] sm:$0xff] }
 0x460   : > { %6511 = vmatpush3.bf16.msra.mxu0 %v6508_v29 }
 0x461   : > { %6513 = vmatprep.subr.bf16.mxu0 %v6512_v53 }
 0x464   : > { %6515 = vmatpush3.bf16.msra.mxu0 %v6512_v53  ;;  %v6588_v53 = vpack.c.bf16 %v4760_v54, %v4759_v12  ;;  %v4170_v12 = vld [vmem:[%s9189_s13 + $0x50] sm:$0xff] }
 0x465   : > { %6517 = vmatprep.subr.bf16.mxu0 %v6516_v5 }
 0x468   : > { %6519 = vmatpush3.bf16.msra.mxu0 %v6516_v5  ;;  %v6592_v5 = vpack.c.bf16 %v4762_v52, %v4761_v4  ;;  %v4188_v4 = vld [vmem:[%s9189_s13 + $0xe0] sm:$0xff]  ;;  %v4189_v52 = vld [vmem:[%s9189_s13 + $0xe8] sm:$0xff] }
 0x469   : > { %6521 = vmatprep.subr.bf16.mxu0 %v6520_v8 }
 0x46c   : > { %6523 = vmatpush3.bf16.msra.mxu0 %v6520_v8  ;;  %v6596_v8 = vpack.c.bf16 %v4764_v21, %v4763_v55  ;;  %v6652_v55 = vpack.c.bf16 %v4189_v52, %v4188_v4  ;;  %v4172_v21 = vld [vmem:[%s9189_s13 + $0x60] sm:$0xff] }
 0x46d   : > { %6525 = vmatprep.subr.bf16.mxu0 %v6524_v58 }
 0x470   : > { %6527 = vmatpush3.bf16.msra.mxu0 %v6524_v58  ;;  %v3825_v58 = vcombine.low %v8402_v51, %v9219_v33  ;;  %v4769_v33 = vld [vmem:[%s9185_s9 + $0x430] sm:$0xff]  ;;  %v4770_v51 = vld [vmem:[%s9185_s9 + $0x438] sm:$0xff] }
 0x471   : > { %6529 = vmatprep.subr.bf16.mxu0 %v6528_v36  ;;  %v6608_v19 = vpack.c.bf16 %v4770_v51, %v4769_v33  ;;  %v4208_v33 = vld [vmem:[%s9189_s13 + $0x180] sm:$0xff]  ;;  %v4209_v51 = vld [vmem:[%s9189_s13 + $0x188] sm:$0xff] }
 0x474   : > { %6531 = vmatpush3.bf16.msra.mxu0 %v6528_v36  ;;  %v4768_v36 = vld [vmem:[%s9185_s9 + $0x428] sm:$0xff] }
 0x475   : > { %6533 = vmatprep.subr.bf16.mxu0 %v6532_v40  ;;  %v6604_v24 = vpack.c.bf16 %v4768_v36, %v4767_v1  ;;  %v4174_v1 = vld [vmem:[%s9189_s13 + $0x70] sm:$0xff]  ;;  %v4175_v36 = vld [vmem:[%s9189_s13 + $0x78] sm:$0xff] }
 0x477   : > { %5937 = vmatmul.mubr.f32.vlgmr.msra.gmra.mrb[32].mxu0 %v3632_v20 }
 0x478   : > { %6535 = vmatpush3.bf16.msra.mxu0 %v6532_v40  ;;  %5971 = vmatprep.mubr.f32.mxu0 %v8467_v26  ;;  %v4740_v26 = vld [vmem:[%s9185_s9 + $0x348] sm:$0xff]  ;;  %v4771_v40 = vld [vmem:[%s9185_s9 + $0x440] sm:$0xff] }
 0x479   : > { %6537 = vmatprep.subr.bf16.mxu0 %v6536_v22  ;;  %v6548_v20 = vpack.c.bf16 %v4740_v26, %v4739_v50  ;;  %v4176_v26 = vld [vmem:[%s9189_s13 + $0x80] sm:$0xff] }
 0x47c   : > { %6539 = vmatpush3.bf16.msra.mxu0 %v6536_v22  ;;  %v4774_v22 = vld [vmem:[%s9185_s9 + $0x458] sm:$0xff] }
 0x47d   : > { %6541 = vmatprep.subr.bf16.mxu0 %v6540_v32  ;;  %v6616_v2 = vpack.c.bf16 %v4774_v22, %v4773_v9 }
 0x480   : > { %6543 = vmatpush3.bf16.msra.mxu0 %v6540_v32  ;;  %v4776_v32 = vld [vmem:[%s9185_s9 + $0x468] sm:$0xff] }
 0x481   : > { %6545 = vmatprep.subr.bf16.mxu0 %v6544_v7  ;;  %v6620_v48 = vpack.c.bf16 %v4776_v32, %v4775_v43 }
 0x484   : > { %6547 = vmatpush3.bf16.msra.mxu0 %v6544_v7  ;;  %v4778_v7 = vld [vmem:[%s9185_s9 + $0x478] sm:$0xff] }
 0x485   : > { %6549 = vmatprep.subr.bf16.mxu0 %v6548_v20  ;;  %v6624_v50 = vpack.c.bf16 %v4778_v7, %v4777_v23 }
 0x488   : > { %6551 = vmatpush3.bf16.msra.mxu0 %v6548_v20  ;;  %v4177_v20 = vld [vmem:[%s9189_s13 + $0x88] sm:$0xff] }
 0x489   : > { %6553 = vmatprep.subr.bf16.mxu0 %v6552_v38  ;;  %v6628_v63 = vpack.c.bf16 %v4177_v20, %v4176_v26 }
 0x48b   : > { %6629 = vmatprep.subr.bf16.mxu1 %v6628_v63 }
 0x48c   : > { %6555 = vmatpush3.bf16.msra.mxu0 %v6552_v38  ;;  %v4161_v38 = vld [vmem:[%s9189_s13 + $0x8] sm:$0xff] }
 0x48d   : > { %6557 = vmatprep.subr.bf16.mxu0 %v6556_v35  ;;  %v6630_v3 = vpack.c.bf16 %v4161_v38, %v4160_v61 }
 0x48f   : > { %6631 = vmatpush3.bf16.msra.mxu1 %v6630_v3 }
 0x490   : > { %6559 = vmatpush3.bf16.msra.mxu0 %v6556_v35  ;;  %v4163_v35 = vld [vmem:[%s9189_s13 + $0x18] sm:$0xff] }
 0x491   : > { %6561 = vmatprep.subr.bf16.mxu0 %v6560_v28  ;;  %v6634_v16 = vpack.c.bf16 %v4163_v35, %v4162_v25 }
 0x494   : > { %6563 = vmatpush3.bf16.msra.mxu0 %v6560_v28  ;;  %v4181_v28 = vld [vmem:[%s9189_s13 + $0xa8] sm:$0xff] }
 0x495   : > { %6565 = vmatprep.subr.bf16.mxu0 %v6564_v42  ;;  %v6636_v34 = vpack.c.bf16 %v4181_v28, %v4180_v10 }
 0x497   : > { %5972 = vmatmul.mubr.f32.vlgmr.msra.gmra.mrb[32].mxu0 %v3729_v41  ;;  %v4757_v41 = vld [vmem:[%s9185_s9 + $0x3d0] sm:$0xff] }
 0x498   : > { %6567 = vmatpush3.bf16.msra.mxu0 %v6564_v42  ;;  %6006 = vmatprep.mubr.f32.mxu0 %v8432_v39  ;;  %v6580_v39 = vpack.c.bf16 %v4756_v37, %v4755_v31  ;;  %v6584_v29 = vpack.c.bf16 %v4758_v18, %v4757_v41  ;;  %v4165_v42 = vld [vmem:[%s9189_s13 + $0x28] sm:$0xff]  ;;  %v4168_v37 = vld [vmem:[%s9189_s13 + $0x40] sm:$0xff]  ;;  %v4186_v18 = vld [vmem:[%s9189_s13 + $0xd0] sm:$0xff] }
 0x499   : > { %6569 = vmatprep.subr.bf16.mxu0 %v6568_v0  ;;  %v6638_v47 = vpack.c.bf16 %v4165_v42, %v4164_v46 }
 0x49c   : > { %6571 = vmatpush3.bf16.msra.mxu0 %v6568_v0  ;;  %v4183_v0 = vld [vmem:[%s9189_s13 + $0xb8] sm:$0xff] }
 0x49d   : > { %6573 = vmatprep.subr.bf16.mxu0 %v6572_v57  ;;  %v6640_v13 = vpack.c.bf16 %v4183_v0, %v4182_v27 }
 0x4a0   : > { %6575 = vmatpush3.bf16.msra.mxu0 %v6572_v57  ;;  %v4167_v57 = vld [vmem:[%s9189_s13 + $0x38] sm:$0xff] }
 0x4a1   : > { %6577 = vmatprep.subr.bf16.mxu0 %v6576_v15  ;;  %v6642_v14 = vpack.c.bf16 %v4167_v57, %v4166_v6 }
 0x4a4   : > { %6579 = vmatpush3.bf16.msra.mxu0 %v6576_v15  ;;  %v4185_v15 = vld [vmem:[%s9189_s13 + $0xc8] sm:$0xff] }
 0x4a5   : > { %6581 = vmatprep.subr.bf16.mxu0 %v6580_v39  ;;  %v6644_v31 = vpack.c.bf16 %v4185_v15, %v4184_v17 }
 0x4a8   : > { %6583 = vmatpush3.bf16.msra.mxu0 %v6580_v39  ;;  %v4169_v39 = vld [vmem:[%s9189_s13 + $0x48] sm:$0xff] }
 0x4a9   : > { %6585 = vmatprep.subr.bf16.mxu0 %v6584_v29  ;;  %v6646_v41 = vpack.c.bf16 %v4169_v39, %v4168_v37 }
 0x4ac   : > { %6587 = vmatpush3.bf16.msra.mxu0 %v6584_v29  ;;  %v4187_v29 = vld [vmem:[%s9189_s13 + $0xd8] sm:$0xff] }
 0x4ad   : > { %6589 = vmatprep.subr.bf16.mxu0 %v6588_v53  ;;  %v6648_v54 = vpack.c.bf16 %v4187_v29, %v4186_v18 }
 0x4b0   : > { %6591 = vmatpush3.bf16.msra.mxu0 %v6588_v53  ;;  %v4171_v53 = vld [vmem:[%s9189_s13 + $0x58] sm:$0xff] }
 0x4b1   : > { %6593 = vmatprep.subr.bf16.mxu0 %v6592_v5 }
 0x4b4   : > { %6595 = vmatpush3.bf16.msra.mxu0 %v6592_v5  ;;  %v6650_v5 = vpack.c.bf16 %v4171_v53, %v4170_v12 }
 0x4b5   : > { %6597 = vmatprep.subr.bf16.mxu0 %v6596_v8 }
 0x4b7   : > { %6007 = vmatmul.mubr.f32.vlgmr.msra.gmra.mrb[32].mxu0 %v3825_v58 }
 0x4b8   : > { %6599 = vmatpush3.bf16.msra.mxu0 %v6596_v8  ;;  %6041 = vmatprep.mubr.f32.mxu0 %v8488_v59  ;;  %v4772_v59 = vld [vmem:[%s9185_s9 + $0x448] sm:$0xff] }
 0x4b9   : > { %6601 = vmatprep.subr.bf16.mxu0 %v6600_v45  ;;  %v6612_v44 = vpack.c.bf16 %v4772_v59, %v4771_v40  ;;  %v4173_v8 = vld [vmem:[%s9189_s13 + $0x68] sm:$0xff]  ;;  %v4779_v40 = vld [vmem:[%s9186_s10] ss:$0 sm:$0xff] }
 0x4ba   : > { %v6654_v58 = vpack.c.bf16 %v4173_v8, %v4172_v21 }
 0x4bc   : > { %6603 = vmatpush3.bf16.msra.mxu0 %v6600_v45  ;;  %v6656_v45 = vpack.c.bf16 %v4191_v60, %v4190_v30 }
 0x4bd   : > { %6605 = vmatprep.subr.bf16.mxu0 %v6604_v24 }
 0x4c0   : > { %6607 = vmatpush3.bf16.msra.mxu0 %v6604_v24  ;;  %v6658_v24 = vpack.c.bf16 %v4175_v36, %v4174_v1 }
 0x4c1   : > { %6609 = vmatprep.subr.bf16.mxu0 %v6608_v19 }
 0x4c4   : > { %6611 = vmatpush3.bf16.msra.mxu0 %v6608_v19  ;;  %v6660_v19 = vpack.c.bf16 %v4209_v51, %v4208_v33 }
 0x4c5   : > { %6613 = vmatprep.subr.bf16.mxu0 %v6612_v44 }
 0x4c8   : > { %6615 = vmatpush3.bf16.msra.mxu0 %v6612_v44 }
 0x4c9   : > { %6617 = vmatprep.subr.bf16.mxu0 %v6616_v2 }
 0x4cc   : > { %6619 = vmatpush3.bf16.msra.mxu0 %v6616_v2 }
 0x4cd   : > { %6621 = vmatprep.subr.bf16.mxu0 %v6620_v48 }
 0x4d0   : > { %6623 = vmatpush3.bf16.msra.mxu0 %v6620_v48 }
 0x4d1   : > { %6625 = vmatprep.subr.bf16.mxu0 %v6624_v50 }
 0x4d4   : > { %6627 = vmatpush3.bf16.msra.mxu0 %v6624_v50 }
 0x4d7   : > { %6042 = vmatmul.mubr.f32.vlgmr.msra.gmra.mrb[32].mxu0 %v3921_v62  ;;  %v6632_v62 = vpack.c.bf16 %v4179_v49, %v4178_v11 }
 0x4d9   : > { %6633 = vmatprep.subr.bf16.mxu1 %v6632_v62 }
 0x4da   : > { %6635 = vmatpush3.bf16.msra.mxu1 %v6634_v16 }
 0x4db   : > { %6637 = vmatprep.subr.bf16.mxu1 %v6636_v34 }
 0x4de   : > { %6639 = vmatpush3.bf16.msra.mxu1 %v6638_v47 }
 0x4df   : > { %6641 = vmatprep.subr.bf16.mxu1 %v6640_v13 }
 0x4e2   : > { %6643 = vmatpush3.bf16.msra.mxu1 %v6642_v14 }
 0x4e3   : > { %6645 = vmatprep.subr.bf16.mxu1 %v6644_v31 }
 0x4e6   : > { %6647 = vmatpush3.bf16.msra.mxu1 %v6646_v41 }
 0x4e7   : > { %6649 = vmatprep.subr.bf16.mxu1 %v6648_v54 }
 0x4ea   : > { %6651 = vmatpush3.bf16.msra.mxu1 %v6650_v5 }
 0x4eb   : > { %6653 = vmatprep.subr.bf16.mxu1 %v6652_v55 }
 0x4ee   : > { %6655 = vmatpush3.bf16.msra.mxu1 %v6654_v58 }
 0x4ef   : > { %6657 = vmatprep.subr.bf16.mxu1 %v6656_v45 }
 0x4f2   : > { %6659 = vmatpush3.bf16.msra.mxu1 %v6658_v24 }
 0x4f3   : > { %6661 = vmatprep.subr.bf16.mxu1 %v6660_v19 }
 0x5aa   : > { %v6043_v59 = vpop.f32.mrb[32].mxu0 }
 0x5ab   : > { %v4003_v44 = vcombine.high %v6043_v59, %v6043_v59  ;;  %v8992_v9 = vadd.f32 %v6043_v59, %v4779_v40  ;;  %v3989_v22 = vpop.f32.mrb[33].mxu0 }
 0x5ac   : > { %v4002_v2 = vcombine.high %v3989_v22, %v3989_v22  ;;  %v8994_v43 = vadd.f32 %v4779_v40, %v3989_v22 }
 0x5ad   : > { %v8996_v32 = vadd.f32 %v4779_v40, %v4003_v44  ;;  %v4031_v48 = vsel %vm626_vm1, %v8992_v9, 0.0  ;;  %v4050_v23 = vmul.f32 %v8992_v9, %v8992_v9 }
 0x5ae   : > { %v4032_v7 = vrot.slane %v4031_v48, 4  ;;  %v9002_v50 = vadd.f32 %v4779_v40, %v4002_v2  ;;  %v4017_v26 = vsel %vm626_vm1, %v8994_v43, 0.0  ;;  %v4048_v20 = vmul.f32 %v8994_v43, %v8994_v43 }
 0x5af   : > { %v4038_v63 = vsel %vm626_vm1, %v8996_v32, 0.0  ;;  %v4051_v61 = vmul.f32 %v8996_v32, %v8996_v32  ;;  %v4066_v38 = vsel %vm626_vm1, %v4050_v23, 0.0  ;;  %v4018_v3 = vrot.slane %v4017_v26, 4 }
 0x5b0   : > { %v4033_v11 = vadd.f32 %v4032_v7, %v4031_v48  ;;  %v4039_v49 = vrot.slane %v4038_v63, 4  ;;  %v4067_v62 = vrot.slane %v4066_v38, 4  ;;  %v4024_v25 = vsel %vm626_vm1, %v9002_v50, 0.0 }
 0x5b1   : > { %v4073_v35 = vsel %vm626_vm1, %v4051_v61, 0.0  ;;  %v4019_v16 = vadd.f32 %v4018_v3, %v4017_v26  ;;  %v4025_v10 = vrot.slane %v4024_v25, 4  ;;  %v4049_v28 = vmul.f32 %v9002_v50, %v9002_v50 }
 0x5b2   : > { %v4034_v34 = vrot.slane %v4033_v11, 2  ;;  %v4040_v46 = vadd.f32 %v4039_v49, %v4038_v63  ;;  %v4068_v42 = vadd.f32 %v4067_v62, %v4066_v38  ;;  %v4074_v47 = vrot.slane %v4073_v35, 4 }
 0x5b3   : > { %v4020_v27 = vrot.slane %v4019_v16, 2  ;;  %v4026_v0 = vadd.f32 %v4025_v10, %v4024_v25  ;;  %v4052_v13 = vsel %vm626_vm1, %v4048_v20, 0.0  ;;  %v4059_v6 = vsel %vm626_vm1, %v4049_v28, 0.0 }
 0x5b4   : > { %v4035_v57 = vadd.f32 %v4034_v34, %v4033_v11  ;;  %v4041_v14 = vrot.slane %v4040_v46, 2  ;;  %v4069_v17 = vrot.slane %v4068_v42, 2  ;;  %v4075_v15 = vadd.f32 %v4074_v47, %v4073_v35 }
 0x5b5   : > { %v4021_v31 = vadd.f32 %v4020_v27, %v4019_v16  ;;  %v4027_v37 = vrot.slane %v4026_v0, 2  ;;  %v4053_v39 = vrot.slane %v4052_v13, 4  ;;  %v4060_v41 = vrot.slane %v4059_v6, 4 }
 0x5b6   : > { %v4042_v18 = vadd.f32 %v4041_v14, %v4040_v46  ;;  %v4076_v29 = vrot.slane %v4075_v15, 2  ;;  %v4036_v52 = vrot.slane %v4035_v57, 1  ;;  %v4070_v5 = vadd.f32 %v4069_v17, %v4068_v42  ;;  %v4780_v46 = vld [vmem:[%s9187_s11] ss:$0 sm:$0xff] }
 0x5b7   : > { %v4022_v12 = vrot.slane %v4021_v31, 1  ;;  %v4028_v54 = vadd.f32 %v4027_v37, %v4026_v0  ;;  %v4054_v53 = vadd.f32 %v4053_v39, %v4052_v13  ;;  %v4061_v4 = vadd.f32 %v4060_v41, %v4059_v6 }
 0x5b8   : > { %v4043_v30 = vrot.slane %v4042_v18, 1  ;;  %v4077_v60 = vadd.f32 %v4076_v29, %v4075_v15  ;;  %v4037_v24 = vadd.f32 %v4036_v52, %v4035_v57  ;;  %v4071_v33 = vrot.slane %v4070_v5, 1 }
 0x5b9   : > { %v4029_v55 = vrot.slane %v4028_v54, 1  ;;  %v4055_v21 = vrot.slane %v4054_v53, 2  ;;  %v4062_v8 = vrot.slane %v4061_v4, 2  ;;  %v4023_v58 = vadd.f32 %v4022_v12, %v4021_v31 }
 0x5ba   : > { %v4044_v59 = vadd.f32 %v4043_v30, %v4042_v18  ;;  %v4078_v44 = vrot.slane %v4077_v60, 1  ;;  %v4072_v23 = vadd.f32 %v4071_v33, %v4070_v5  ;;  %v4193_v30 = vld [vmem:[%s9189_s13 + $0x108] sm:$0xff] }
 0x5bb   : > { %v4030_v45 = vadd.f32 %v4029_v55, %v4028_v54  ;;  %v4056_v1 = vadd.f32 %v4055_v21, %v4054_v53  ;;  %v4063_v36 = vadd.f32 %v4062_v8, %v4061_v4  ;;  %v4192_v8 = vld [vmem:[%s9189_s13 + $0x100] sm:$0xff] }
 0x5bc   : > { %v4079_v20 = vadd.f32 %v4078_v44, %v4077_v60  ;;  %v4213_v44 = vld [vmem:[%s9189_s13 + $0x1a8] sm:$0xff] }
 0x5bd   : > { %v4045_v51 = vadd.f32 %v4030_v45, %v4023_v58  ;;  %v4057_v19 = vrot.slane %v4056_v1, 1  ;;  %v4064_v40 = vrot.slane %v4063_v36, 1  ;;  %v4210_v45 = vld [vmem:[%s9189_s13 + $0x190] sm:$0xff] }
 0x5bf   : > { %v4046_v22 = vadd.f32 %v4045_v51, %v4037_v24  ;;  %v4058_v2 = vadd.f32 %v4057_v19, %v4056_v1  ;;  %v4065_v48 = vadd.f32 %v4064_v40, %v4063_v36  ;;  %v6662_v24 = vpack.c.bf16 %v4193_v30, %v4192_v8  ;;  %v4194_v51 = vld [vmem:[%s9189_s13 + $0x110] sm:$0xff]  ;;  %v4195_v19 = vld [vmem:[%s9189_s13 + $0x118] sm:$0xff] }
 0x5c1   : > { %v4047_v7 = vadd.f32 %v4046_v22, %v4044_v59  ;;  %v4080_v26 = vadd.f32 %v4065_v48, %v4058_v2  ;;  %v4212_v59 = vld [vmem:[%s9189_s13 + $0x1a0] sm:$0xff]  ;;  %v6666_v22 = vpack.c.bf16 %v4195_v19, %v4194_v51 }
 0x5c2   : > { %v6668_v2 = vpack.c.bf16 %v4213_v44, %v4212_v59  ;;  %v4196_v48 = vld [vmem:[%s9189_s13 + $0x120] sm:$0xff] }
 0x5c3   : > { %v4081_v63 = vadd.f32 %v4080_v26, %v4072_v23  ;;  %v4083_v61 = vmul.f32 0.0625, %v4047_v7  ;;  %v4197_v23 = vld [vmem:[%s9189_s13 + $0x128] sm:$0xff]  ;;  %v4214_v7 = vld [vmem:[%s9189_s13 + $0x1b0] sm:$0xff]  ;;  %v4215_v26 = vld [vmem:[%s9189_s13 + $0x1b8] sm:$0xff] }
 0x5c5   : > { %v4082_v38 = vadd.f32 %v4081_v63, %v4079_v20  ;;  %v4085_v3 = vmul.f32 %v4083_v61, %v4083_v61  ;;  %v4088_v11 = vsub.f32 %v8994_v43, %v4083_v61  ;;  %v4089_v49 = vsub.f32 %v9002_v50, %v4083_v61 }
 0x5c6   : > { %v4090_v62 = vsub.f32 %v8992_v9, %v4083_v61  ;;  %v4091_v25 = vsub.f32 %v8996_v32, %v4083_v61  ;;  %v4781_v9 = vld [vmem:[%s9188_s12] ss:$0 sm:$0xff]  ;;  %v6670_v20 = vpack.c.bf16 %v4197_v23, %v4196_v48  ;;  %v6672_v63 = vpack.c.bf16 %v4215_v26, %v4214_v7  ;;  %v4198_v61 = vld [vmem:[%s9189_s13 + $0x130] sm:$0xff] }
 0x5c7   : > { %v4084_v35 = vmul.f32 0.0625, %v4082_v38  ;;  %v4199_v38 = vld [vmem:[%s9189_s13 + $0x138] sm:$0xff] }
 0x5c9   : > { %v4086_v16 = vsub.f32 %v4084_v35, %v4085_v3  ;;  %v4216_v3 = vld [vmem:[%s9189_s13 + $0x1c0] sm:$0xff]  ;;  %v4201_v35 = vld [vmem:[%s9189_s13 + $0x148] sm:$0xff] }
 0x5cb   : > { %v4087_v10 = vmax.f32 %v4086_v16, 0.0  ;;  %v4218_v16 = vld [vmem:[%s9189_s13 + $0x1d0] sm:$0xff] }
 0x5cd   : > { %v4092_v28 = vadd.f32 1e-05, %v4087_v10  ;;  %v4219_v10 = vld [vmem:[%s9189_s13 + $0x1d8] sm:$0xff] }
 0x5cf   : > { %6817 = vrsqrt.f32 %v4092_v28 }
 0x5d9   : > { %v6818_v34 = vpop.eup %6817 }
 0x5da   : > { %v4094_v42 = vmul.f32 %v6818_v34, %v4088_v11  ;;  %v4095_v47 = vmul.f32 %v6818_v34, %v4089_v49  ;;  %v4096_v27 = vmul.f32 %v6818_v34, %v4090_v62  ;;  %v4097_v43 = vmul.f32 %v6818_v34, %v4091_v25  ;;  %v4217_v11 = vld [vmem:[%s9189_s13 + $0x1c8] sm:$0xff]  ;;  %v4200_v25 = vld [vmem:[%s9189_s13 + $0x140] sm:$0xff] }
 0x5db   : > { %v6674_v49 = vpack.c.bf16 %v4199_v38, %v4198_v61  ;;  %v6676_v62 = vpack.c.bf16 %v4217_v11, %v4216_v3  ;;  %v6678_v28 = vpack.c.bf16 %v4201_v35, %v4200_v25  ;;  %v6680_v34 = vpack.c.bf16 %v4219_v10, %v4218_v16 }
 0x5dc   : > { %v4105_v50 = vmul.f32 %v4780_v46, %v4094_v42  ;;  %v4106_v32 = vmul.f32 %v4780_v46, %v4095_v47  ;;  %v4107_v0 = vmul.f32 %v4780_v46, %v4096_v27  ;;  %v4108_v13 = vmul.f32 %v4780_v46, %v4097_v43  ;;  %v4202_v46 = vld [vmem:[%s9189_s13 + $0x150] sm:$0xff]  ;;  %v4203_v42 = vld [vmem:[%s9189_s13 + $0x158] sm:$0xff]  ;;  %v4220_v47 = vld [vmem:[%s9189_s13 + $0x1e0] sm:$0xff] }
 0x5dd   : > { %v4221_v27 = vld [vmem:[%s9189_s13 + $0x1e8] sm:$0xff]  ;;  %v6682_v43 = vpack.c.bf16 %v4203_v42, %v4202_v46 }
 0x5de   : > { %v4116_v6 = vadd.f32 %v4781_v9, %v4105_v50  ;;  %v4117_v57 = vadd.f32 %v4781_v9, %v4106_v32  ;;  %v4118_v14 = vadd.f32 %v4781_v9, %v4107_v0  ;;  %v4119_v17 = vadd.f32 %v4781_v9, %v4108_v13  ;;  %v4204_v50 = vld [vmem:[%s9189_s13 + $0x160] sm:$0xff]  ;;  %v4205_v32 = vld [vmem:[%s9189_s13 + $0x168] sm:$0xff]  ;;  %v4222_v0 = vld [vmem:[%s9189_s13 + $0x1f0] sm:$0xff] }
 0x5df   : > { %v6684_v9 = vpack.c.bf16 %v4221_v27, %v4220_v47  ;;  %v4223_v13 = vld [vmem:[%s9189_s13 + $0x1f8] sm:$0xff] }
 0x5e0   : > { %v4120_v15 = vmul.f32 0.01, %v4116_v6  ;;  %v4121_v31 = vmul.f32 0.01, %v4117_v57  ;;  %v4122_v37 = vmul.f32 0.01, %v4118_v14 }
 0x5e1   : > { %v4123_v39 = vmul.f32 0.01, %v4119_v17 }
 0x5e2   : > { %v4124_v41 = vmax.f32 %v4116_v6, %v4120_v15  ;;  %v4125_v18 = vmax.f32 %v4117_v57, %v4121_v31  ;;  %v4126_v29 = vmax.f32 %v4118_v14, %v4122_v37  ;;  %v6686_v6 = vpack.c.bf16 %v4205_v32, %v4204_v50  ;;  %v4206_v14 = vld [vmem:[%s9189_s13 + $0x170] sm:$0xff] }
 0x5e3   : > { %v4127_v12 = vmax.f32 %v4119_v17, %v4123_v39  ;;  %v6688_v57 = vpack.c.bf16 %v4223_v13, %v4222_v0  ;;  %v4207_v17 = vld [vmem:[%s9189_s13 + $0x178] sm:$0xff] }
 0x5e4   : > { %v4128_v54 = vadd.f32 %v4125_v18, %v4124_v41  ;;  %v6690_v15 = vpack.c.bf16 %v4207_v17, %v4206_v14  ;;  %v4224_v41 = vld [vmem:[%s9190_s14] sm:$0x1] }
 0x5e5   : > { %v4129_v53 = vadd.f32 %v4127_v12, %v4126_v29 }
 0x5e6   : > { %v4136_v4 = vrot.slane %v4128_v54, %v9216_v56 }
 0x5e7   : > { %v4143_v52 = vrot.slane %v4129_v53, %v9216_v56  ;;  %v4211_v56 = vld [vmem:[%s9189_s13 + $0x198] sm:$0xff] }
 0x5e8   : > { %v4146_v5 = vrot.slane %v4136_v4, 4  ;;  %v6664_v33 = vpack.c.bf16 %v4211_v56, %v4210_v45 }
 0x5e9   : > { %v4147_v55 = vrot.slane %v4143_v52, 4 }
 0x5ea   : > { %v4150_v21 = vadd.f32 %v4146_v5, %v4136_v4 }
 0x5eb   : > { %v4151_v60 = vadd.f32 %v4147_v55, %v4143_v52 }
 0x5ec   : > { %v4152_v58 = vmul.f32 0.25, %v4150_v21 }
 0x5ed   : > { %v4153_v1 = vmul.f32 0.25, %v4151_v60 }
 0x5ee   : > { %v4155_v36 = vrot.slane %v4152_v58, 1 }
 0x5ef   : > { %v4158_v40 = vrot.slane %v4153_v1, 1 }
 0x5f0   : > { %4782 = vmatprep.mubr.msk.f32.mxu1 %vm3097_vm4, %v4155_v36 }
 0x5f1   : > { %4783 = vmatmul.mubr.msk.f32.vlgmr.msra.gmra.mrb[8].mxu1 %vm3097_vm4, %v4152_v58 }
 0x5f2   : > { %6663 = vmatpush3.bf16.msra.mxu1 %v6662_v24  ;;  %4784 = vmatprep.mubr.msk.f32.mxu1 %vm3097_vm4, %v4158_v40 }
 0x5f3   : > { %6665 = vmatprep.subr.bf16.mxu1 %v6664_v33 }
 0x5f6   : > { %6667 = vmatpush3.bf16.msra.mxu1 %v6666_v22 }
 0x5f7   : > { %6669 = vmatprep.subr.bf16.mxu1 %v6668_v2 }
 0x5fa   : > { %6671 = vmatpush3.bf16.msra.mxu1 %v6670_v20 }
 0x5fb   : > { %6673 = vmatprep.subr.bf16.mxu1 %v6672_v63 }
 0x5fe   : > { %6675 = vmatpush3.bf16.msra.mxu1 %v6674_v49 }
 0x5ff   : > { %6677 = vmatprep.subr.bf16.mxu1 %v6676_v62 }
 0x602   : > { %6679 = vmatpush3.bf16.msra.mxu1 %v6678_v28 }
 0x603   : > { %6681 = vmatprep.subr.bf16.mxu1 %v6680_v34 }
 0x606   : > { %6683 = vmatpush3.bf16.msra.mxu1 %v6682_v43 }
 0x607   : > { %6685 = vmatprep.subr.bf16.mxu1 %v6684_v9 }
 0x60a   : > { %6687 = vmatpush3.bf16.msra.mxu1 %v6686_v6 }
 0x60b   : > { %6689 = vmatprep.subr.bf16.mxu1 %v6688_v57 }
 0x60e   : > { %6691 = vmatpush3.bf16.msra.mxu1 %v6690_v15 }
 0x611   : > { %4785 = vmatmul.mubr.msk.f32.vlgmr.msra.gmra.mrb[10].mxu1 %vm3097_vm4, %v4153_v1 }
 0x6c4   : > { %v5237_v31 = vpop.f32.mrb[8].mxu1 }
 0x6c5   : > { %v5238_v37 = vpop.f32.mrb[9].mxu1 }
 0x6c6   : > { %v5239_v39 = vadd.f32 %v5238_v37, %v5237_v31 }
 0x6c8   : > { %v4292_v12 = vadd.f32 %v5239_v39, %v4224_v41 }
 0x6e4   : > { %v5272_v18 = vpop.f32.mrb[10].mxu1 }
 0x6e5   : > { %v5273_v29 = vpop.f32.mrb[11].mxu1 }
 0x6e6   : > { %v5274_v54 = vadd.f32 %v5273_v29, %v5272_v18 }
 0x6e8   : > { %v4362_v53 = vadd.f32 %v5274_v54, %v4292_v12 }
 0x6ea   : > { %4365 = vst [vmem:[%s486_s20] sm:$0x1] %v4362_v53 }
 0x6eb   : > { %6832 = shalt.err (!%p6829_p3)
}
 0x6ec   : > { %s6833_s23 = scalar_lea.hbm %s9134_s16, 16  ;;  %s6837_s27 = scalar_lea.hbm %s9191_s15, 32 }
 0x6ed   : > { %p6834_p4 = scmp.ne.s32.totalorder %s9134_s16, %s6833_s23  ;;  %p6838_p9 = scmp.lt.u32.totalorder %s9134_s16, %s9191_s15 }
 0x6ee   : > { %p6839_p10 = scmp.lt.u32.totalorder %s6837_s27, %s6833_s23  ;;  %p6841_p12 = scmp.lt.u32.totalorder %s6833_s23, %s9134_s16 }
 0x6ef   : > { %p6835_p7 = pnand %p6834_p4, %p7004_p5 }
 0x6f0   : > { %p6840_p11 = por %p6839_p10, %p6838_p9 }
 0x6f1   : > { %p6836_p8 = pneg %p6835_p7 }
 0x6f2   : > { %p6842_p13 = por %p6841_p12, %p6840_p11 }
 0x6f4   : > { %p6843_p0 = pnand %p6842_p13, %p6836_p8 }
 0x6f6   : > { %6846 = shalt.err (!%p6843_p0)
}
 0x6f7   : > { %6772 = dma.vmem_to_hbm [thread:$0]  (%p7004_p5), %s9136_s24, 16, %s9134_s16, %s4367_s17  }
 0x6f8 PF: > { %p6778_p1 = scmp.ge.s32.totalorder %s6881_s21, 2  ;;  %s4391_s1 = sand.u32 1, %s6869_s18  }
 0x6f9   : > { %s4392_s0 = scalar_lea.sflag [#allocation3], %s4391_s1 }
 0x6fa   : > { %p6775_p2 = pnand %p6778_p1, %p7008_p6 }
 0x6fc   : > { %6864 = dma.done.wait (!%p6775_p2), %s4392_s0, 16  }
 0x6fd   : > { %6866 = vsyncadd (!%p6775_p2), %s4392_s0, 4294967280  ;;  %s9221_s21 = sld [smem:[#allocation6_spill]]  ;;  %s9222_s25 = sld [smem:[#allocation5_spill]] }
 0x6fe   : > { %s9223_s20 = sld [smem:[#allocation7_spill]]  ;;  %s9224_s18 = smov %s6873_s19 }
 0x703   : > { %p25_p3 = scmp.ge.s32.totalorder %s9221_s21, 4   ;;  %s9225_s19 = smov %s9222_s25 }
 0x705   :  { %27 = sbr.rel (!%p25_p3) target bundleno = 6 (0x6), region = 131 }
 0x70c   :  { %4396 = vsyncpa [#allocation3], 1 }
 0x70d   :  { %4398 = vsyncpa [#allocation3 + $0x1], 1 }

</bundles_post_ra>
